<compile_context>
chip_gen: v7x
topology: tpu7x:2x2x1
jax: 0.10.0
libtpu: 0.0.40
codegen_flags: <defaults>
</compile_context>

<pallas_src>
import functools
import math

import jax
import jax.numpy as jnp
import numpy as np
from jax import lax
from jax.experimental import pallas as pl
from jax.experimental.pallas import tpu as pltpu


# ------------------------------ Pallas kernel ------------------------------ #

def _fused_bilstm_kernel(*refs, num_layers, hidden, seq_len):
    """Fused multi-layer bidirectional LSTM forward.

    refs layout:
      refs[0]                      : x            (T, B, D_in)
      refs[1+3l : 4+3l]            : per layer l  (W_ih_cat (D_in_l, 8H),
                                                   W_hh_block (2H, 8H)  block-diagonal,
                                                   bias_cat (1, 8H))
      refs[1+3L]                   : out          (T, B, 2H)
      refs[2+3L:]                  : scratches    xproj (T,B,8H), seq_f (T,B,H),
                                                  seq_b (T,B,H), h (B,2H), c (B,2H)
    Column layout of all 8H-wide tensors: [fwd gates i,f,g,o | bwd gates i,f,g,o].
    """
    H = hidden
    T = seq_len
    x_ref = refs[0]
    layer_refs = [tuple(refs[1 + 3 * l: 4 + 3 * l]) for l in range(num_layers)]
    out_ref = refs[1 + 3 * num_layers]
    xproj_sc, seqf_sc, seqb_sc, h_sc, c_sc = refs[2 + 3 * num_layers:]

    B = x_ref.shape[1]

    def gate_update(gates, c):
        # PyTorch gate order: i, f, g, o
        i = jax.nn.sigmoid(gates[:, 0 * H:1 * H])
        f = jax.nn.sigmoid(gates[:, 1 * H:2 * H])
        g = jnp.tanh(gates[:, 2 * H:3 * H])
        o = jax.nn.sigmoid(gates[:, 3 * H:4 * H])
        c_new = f * c + i * g
        h_new = o * jnp.tanh(c_new)
        return h_new, c_new

    for layer, (wih_ref, whh_ref, b_ref) in enumerate(layer_refs):
        # ---- Hoisted input projection: both directions, all timesteps, one matmul ----
        if layer == 0:
            x_flat = x_ref[...].astype(jnp.float32).reshape(T * B, -1)     # (T*B, D_in)
            proj = jnp.dot(x_flat, wih_ref[...],
                           preferred_element_type=jnp.float32)             # (T*B, 8H)
        else:
            # Layer input is [fwd seq | bwd seq] of the previous layer; split W_ih rows.
            wih = wih_ref[...]                                             # (2H, 8H)
            f_flat = seqf_sc[...].reshape(T * B, H)
            b_flat = seqb_sc[...].reshape(T * B, H)
            proj = (jnp.dot(f_flat, wih[:H, :], preferred_element_type=jnp.float32)
                    + jnp.dot(b_flat, wih[H:, :], preferred_element_type=jnp.float32))
        xproj_sc[...] = (proj + b_ref[...]).reshape(T, B, 8 * H)

        # ---- zero-initialize h/c (both directions packed as [fwd | bwd]) ----
        h_sc[...] = jnp.zeros_like(h_sc)
        c_sc[...] = jnp.zeros_like(c_sc)

        whh = whh_ref[...]                                                 # (2H, 8H)

        def step(s, carry):
            # One MXU push covers BOTH directions' recurrent projection.
            g_h = jnp.dot(h_sc[...], whh,
                          preferred_element_type=jnp.float32)              # (B, 8H)
            xp_f = xproj_sc[s]          # fwd direction consumes timestep s
            xp_b = xproj_sc[T - 1 - s]  # bwd direction consumes timestep T-1-s
            gates_f = xp_f[:, :4 * H] + g_h[:, :4 * H]
            gates_b = xp_b[:, 4 * H:] + g_h[:, 4 * H:]

            c = c_sc[...]
            h_f, c_f = gate_update(gates_f, c[:, :H])
            h_b, c_b = gate_update(gates_b, c[:, H:])

            h_sc[...] = jnp.concatenate([h_f, h_b], axis=-1)
            c_sc[...] = jnp.concatenate([c_f, c_b], axis=-1)
            seqf_sc[s] = h_f
            seqb_sc[T - 1 - s] = h_b
            return carry

        # Short, fixed trip count -> unroll for LLO scheduling visibility.
        lax.fori_loop(0, T, step, 0, unroll=True)

    # Single lane-dense writeback of the last layer's bidirectional output.
    out_ref[...] = jnp.concatenate([seqf_sc[...], seqb_sc[...]],
                                   axis=-1).astype(out_ref.dtype)


def bidirectional_lstm(x, packed_params, hidden):
    """Run the fused bidirectional LSTM. packed_params: list of (W_ih_cat, W_hh_block, b_cat)."""
    T, B, _ = x.shape
    H = hidden
    num_layers = len(packed_params)

    flat_weights = []
    for (wih, whh, b) in packed_params:
        flat_weights += [wih, whh, b]

    kernel = functools.partial(_fused_bilstm_kernel,
                               num_layers=num_layers, hidden=H, seq_len=T)
    vmem_spec = pl.BlockSpec(memory_space=pltpu.MemorySpace.VMEM)

    return pl.pallas_call(
        kernel,
        out_shape=jax.ShapeDtypeStruct((T, B, 2 * H), x.dtype),
        in_specs=[vmem_spec] * (1 + len(flat_weights)),
        out_specs=vmem_spec,
        scratch_shapes=[
            pltpu.VMEM((T, B, 8 * H), jnp.float32),   # hoisted input projections
            pltpu.VMEM((T, B, H), jnp.float32),       # fwd hidden sequence
            pltpu.VMEM((T, B, H), jnp.float32),       # bwd hidden sequence
            pltpu.VMEM((B, 2 * H), jnp.float32),      # h state [fwd | bwd]
            pltpu.VMEM((B, 2 * H), jnp.float32),      # c state [fwd | bwd]
        ],
    )(x, *flat_weights)


# ---------------------- deterministic parameter init ----------------------- #

def init_raw_params(key, num_layers, vector_dim, hidden):
    """PyTorch-style uniform(-1/sqrt(H), 1/sqrt(H)) raw LSTM weights."""
    params = []
    scale = 1.0 / math.sqrt(hidden)
    d_in = vector_dim
    for _ in range(num_layers):
        dirs = []
        for _ in range(2):  # forward, backward
            key, k1, k2, k3, k4 = jax.random.split(key, 5)
            w_ih = jax.random.uniform(k1, (4 * hidden, d_in), jnp.float32, -scale, scale)
            w_hh = jax.random.uniform(k2, (4 * hidden, hidden), jnp.float32, -scale, scale)
            b_ih = jax.random.uniform(k3, (4 * hidden,), jnp.float32, -scale, scale)
            b_hh = jax.random.uniform(k4, (4 * hidden,), jnp.float32, -scale, scale)
            dirs.append((w_ih, w_hh, b_ih, b_hh))
        params.append(tuple(dirs))
        d_in = 2 * hidden
    return params


def pack_params(raw_params, hidden):
    """Pack per-(layer,direction) PyTorch weights into the fused kernel layout."""
    H = hidden
    packed = []
    for (fwd, bwd) in raw_params:
        w_ih_f, w_hh_f, b_ih_f, b_hh_f = fwd
        w_ih_b, w_hh_b, b_ih_b, b_hh_b = bwd
        # Columns: [fwd gates i,f,g,o | bwd gates i,f,g,o]
        wih_cat = jnp.concatenate([w_ih_f.T, w_ih_b.T], axis=1)            # (D_in, 8H)
        whh_block = jnp.zeros((2 * H, 8 * H), jnp.float32)
        whh_block = whh_block.at[:H, :4 * H].set(w_hh_f.T)
        whh_block = whh_block.at[H:, 4 * H:].set(w_hh_b.T)                 # block-diag
        b_cat = jnp.concatenate([b_ih_f + b_hh_f,
                                 b_ih_b + b_hh_b]).reshape(1, 8 * H)       # (1, 8H)
        packed.append((wih_cat, whh_block, b_cat))
    return packed


# ---------------------------- pure-JAX reference ---------------------------- #

def _ref_direction(x, w_ih, w_hh, b_ih, b_hh, hidden, reverse):
    xs = x[::-1] if reverse else x
    wih_t, whh_t, b = w_ih.T, w_hh.T, b_ih + b_hh
    B = x.shape[1]

    def step(carry, x_t):
        h, c = carry
        gates = x_t @ wih_t + h @ whh_t + b
        i = jax.nn.sigmoid(gates[:, 0 * hidden:1 * hidden])
        f = jax.nn.sigmoid(gates[:, 1 * hidden:2 * hidden])
        g = jnp.tanh(gates[:, 2 * hidden:3 * hidden])
        o = jax.nn.sigmoid(gates[:, 3 * hidden:4 * hidden])
        c = f * c + i * g
        h = o * jnp.tanh(c)
        return (h, c), h

    h0 = jnp.zeros((B, hidden), jnp.float32)
    _, hs = lax.scan(step, (h0, h0), xs)
    return hs[::-1] if reverse else hs


def reference_bidirectional_lstm(x, raw_params, hidden):
    out = x
    for (fwd, bwd) in raw_params:
        h_f = _ref_direction(out, *fwd, hidden, reverse=False)
        h_b = _ref_direction(out, *bwd, hidden, reverse=True)
        out = jnp.concatenate([h_f, h_b], axis=-1)
    return out


# ----------------------------------- main ----------------------------------- #

if __name__ == "__main__":
    # Module config: layer_size=[32, 32] -> num_layer=2, hidden_size=32
    seq_len, batch_size, vector_dim, hidden_size, num_layers = 8, 2, 16, 32, 2

    key = jax.random.PRNGKey(0)
    key, xk = jax.random.split(key)
    x = jax.random.normal(xk, (seq_len, batch_size, vector_dim), jnp.float32)

    raw_params = init_raw_params(key, num_layers, vector_dim, hidden_size)
    packed_params = pack_params(raw_params, hidden_size)

    out = bidirectional_lstm(x, packed_params, hidden_size)
    out = jax.block_until_ready(out)

    ref = jax.block_until_ready(
        reference_bidirectional_lstm(x, raw_params, hidden_size))

    assert out.shape == (seq_len, batch_size, 2 * hidden_size), out.shape
    np.testing.assert_allclose(np.asarray(out), np.asarray(ref), atol=1e-4, rtol=1e-4)

    print("KERNEL_OK")
</pallas_src>

<mosaic_0001>
module attributes {stable_mosaic.version = 11 : i64} {
  func.func @_fused_bilstm_kernel(%arg0: memref<8x2x16xf32, #tpu.memory_space<vmem>>, %arg1: memref<16x256xf32, #tpu.memory_space<vmem>>, %arg2: memref<64x256xf32, #tpu.memory_space<vmem>>, %arg3: memref<1x256xf32, #tpu.memory_space<vmem>>, %arg4: memref<64x256xf32, #tpu.memory_space<vmem>>, %arg5: memref<64x256xf32, #tpu.memory_space<vmem>>, %arg6: memref<1x256xf32, #tpu.memory_space<vmem>>, %arg7: memref<8x2x64xf32, #tpu.memory_space<vmem>>, %arg8: memref<8x2x256xf32, #tpu.memory_space<vmem>>, %arg9: memref<8x2x32xf32, #tpu.memory_space<vmem>>, %arg10: memref<8x2x32xf32, #tpu.memory_space<vmem>>, %arg11: memref<2x64xf32, #tpu.memory_space<vmem>>, %arg12: memref<2x64xf32, #tpu.memory_space<vmem>>) attributes {dimension_semantics = [], scalar_prefetch = 0 : i64, scratch_operands = 5 : i64, tpu.core_type = #tpu.core_type<tc>} {
    %c0 = arith.constant 0 : index
    %c0_0 = arith.constant 0 : index
    %c0_1 = arith.constant 0 : index
    %0 = vector.load %arg0[%c0, %c0_0, %c0_1] : memref<8x2x16xf32, #tpu.memory_space<vmem>>, vector<8x2x16xf32>
    %1 = vector.shape_cast %0 : vector<8x2x16xf32> to vector<16x16xf32>
    %c0_2 = arith.constant 0 : index
    %c0_3 = arith.constant 0 : index
    %2 = vector.load %arg1[%c0_2, %c0_3] : memref<16x256xf32, #tpu.memory_space<vmem>>, vector<16x256xf32>
    %cst = arith.constant dense<0.000000e+00> : vector<16x256xf32>
    %3 = tpu.matmul %1, %2, %cst {dimension_numbers = #tpu.dot_dimension_numbers<[1], [0], [0], [1], [0, 0, 1, 1], [], []>} : vector<16x16xf32>, vector<16x256xf32>, vector<16x256xf32> -> vector<16x256xf32>
    %c0_4 = arith.constant 0 : index
    %c0_5 = arith.constant 0 : index
    %4 = vector.load %arg3[%c0_4, %c0_5] : memref<1x256xf32, #tpu.memory_space<vmem>>, vector<1x256xf32>
    %5 = vector.broadcast %4 : vector<1x256xf32> to vector<16x256xf32>
    %6 = arith.addf %3, %5 : vector<16x256xf32>
    %7 = vector.shape_cast %6 : vector<16x256xf32> to vector<8x2x256xf32>
    %c0_6 = arith.constant 0 : index
    %c0_7 = arith.constant 0 : index
    %c0_8 = arith.constant 0 : index
    %8 = vector.load %arg8[%c0_6, %c0_7, %c0_8] : memref<8x2x256xf32, #tpu.memory_space<vmem>>, vector<8x2x256xf32>
    tpu.vector_store %arg8[%c0_6, %c0_7, %c0_8], %7 {strides = array<i32>} : memref<8x2x256xf32, #tpu.memory_space<vmem>>, vector<8x2x256xf32>,
    %cst_9 = arith.constant 0.000000e+00 : f32
    %9 = vector.broadcast %cst_9 : f32 to vector<2x64xf32>
    %c0_10 = arith.constant 0 : index
    %c0_11 = arith.constant 0 : index
    %10 = vector.load %arg11[%c0_10, %c0_11] : memref<2x64xf32, #tpu.memory_space<vmem>>, vector<2x64xf32>
    tpu.vector_store %arg11[%c0_10, %c0_11], %9 {strides = array<i32>} : memref<2x64xf32, #tpu.memory_space<vmem>>, vector<2x64xf32>,
    %cst_12 = arith.constant 0.000000e+00 : f32
    %11 = vector.broadcast %cst_12 : f32 to vector<2x64xf32>
    %c0_13 = arith.constant 0 : index
    %c0_14 = arith.constant 0 : index
    %12 = vector.load %arg12[%c0_13, %c0_14] : memref<2x64xf32, #tpu.memory_space<vmem>>, vector<2x64xf32>
    tpu.vector_store %arg12[%c0_13, %c0_14], %11 {strides = array<i32>} : memref<2x64xf32, #tpu.memory_space<vmem>>, vector<2x64xf32>,
    %c0_15 = arith.constant 0 : index
    %c0_16 = arith.constant 0 : index
    %13 = vector.load %arg2[%c0_15, %c0_16] : memref<64x256xf32, #tpu.memory_space<vmem>>, vector<64x256xf32>
    %c0_i32 = arith.constant 0 : i32
    %c0_17 = arith.constant 0 : index
    %c0_18 = arith.constant 0 : index
    %14 = vector.load %arg11[%c0_17, %c0_18] : memref<2x64xf32, #tpu.memory_space<vmem>>, vector<2x64xf32>
    %cst_19 = arith.constant dense<0.000000e+00> : vector<2x256xf32>
    %15 = tpu.matmul %14, %13, %cst_19 {dimension_numbers = #tpu.dot_dimension_numbers<[1], [0], [0], [1], [0, 0, 1, 1], [], []>} : vector<2x64xf32>, vector<64x256xf32>, vector<2x256xf32> -> vector<2x256xf32>
    %16 = arith.index_cast %c0_i32 : i32 to index
    %c0_20 = arith.constant 0 : index
    %c0_21 = arith.constant 0 : index
    %17 = vector.load %arg8[%16, %c0_20, %c0_21] : memref<8x2x256xf32, #tpu.memory_space<vmem>>, vector<1x2x256xf32>
    %18 = vector.shape_cast %17 : vector<1x2x256xf32> to vector<2x256xf32>
    %c7_i32 = arith.constant 7 : i32
    %19 = arith.subi %c7_i32, %c0_i32 : i32
    %20 = arith.index_cast %19 : i32 to index
    %c0_22 = arith.constant 0 : index
    %c0_23 = arith.constant 0 : index
    %21 = vector.load %arg8[%20, %c0_22, %c0_23] : memref<8x2x256xf32, #tpu.memory_space<vmem>>, vector<1x2x256xf32>
    %22 = vector.shape_cast %21 : vector<1x2x256xf32> to vector<2x256xf32>
    %23 = vector.extract_strided_slice %18 {offsets = [0, 0], sizes = [2, 128], strides = [1, 1]} : vector<2x256xf32> to vector<2x128xf32>
    %24 = vector.extract_strided_slice %15 {offsets = [0, 0], sizes = [2, 128], strides = [1, 1]} : vector<2x256xf32> to vector<2x128xf32>
    %25 = arith.addf %23, %24 : vector<2x128xf32>
    %26 = vector.extract_strided_slice %22 {offsets = [0, 128], sizes = [2, 128], strides = [1, 1]} : vector<2x256xf32> to vector<2x128xf32>
    %27 = vector.extract_strided_slice %15 {offsets = [0, 128], sizes = [2, 128], strides = [1, 1]} : vector<2x256xf32> to vector<2x128xf32>
    %28 = arith.addf %26, %27 : vector<2x128xf32>
    %c0_24 = arith.constant 0 : index
    %c0_25 = arith.constant 0 : index
    %29 = vector.load %arg12[%c0_24, %c0_25] : memref<2x64xf32, #tpu.memory_space<vmem>>, vector<2x64xf32>
    %30 = vector.extract_strided_slice %29 {offsets = [0, 0], sizes = [2, 32], strides = [1, 1]} : vector<2x64xf32> to vector<2x32xf32>
    %31 = vector.extract_strided_slice %25 {offsets = [0, 0], sizes = [2, 32], strides = [1, 1]} : vector<2x128xf32> to vector<2x32xf32>
    %32 = arith.negf %31 : vector<2x32xf32>
    %33 = math.exp %32 : vector<2x32xf32>
    %cst_26 = arith.constant 1.000000e+00 : f32
    %34 = vector.broadcast %cst_26 : f32 to vector<2x32xf32>
    %35 = arith.addf %34, %33 : vector<2x32xf32>
    %36 = arith.divf %34, %35 : vector<2x32xf32>
    %37 = vector.extract_strided_slice %25 {offsets = [0, 32], sizes = [2, 32], strides = [1, 1]} : vector<2x128xf32> to vector<2x32xf32>
    %38 = arith.negf %37 : vector<2x32xf32>
    %39 = math.exp %38 : vector<2x32xf32>
    %cst_27 = arith.constant 1.000000e+00 : f32
    %40 = vector.broadcast %cst_27 : f32 to vector<2x32xf32>
    %41 = arith.addf %40, %39 : vector<2x32xf32>
    %42 = arith.divf %40, %41 : vector<2x32xf32>
    %43 = vector.extract_strided_slice %25 {offsets = [0, 64], sizes = [2, 32], strides = [1, 1]} : vector<2x128xf32> to vector<2x32xf32>
    %44 = math.tanh %43 : vector<2x32xf32>
    %45 = vector.extract_strided_slice %25 {offsets = [0, 96], sizes = [2, 32], strides = [1, 1]} : vector<2x128xf32> to vector<2x32xf32>
    %46 = arith.negf %45 : vector<2x32xf32>
    %47 = math.exp %46 : vector<2x32xf32>
    %cst_28 = arith.constant 1.000000e+00 : f32
    %48 = vector.broadcast %cst_28 : f32 to vector<2x32xf32>
    %49 = arith.addf %48, %47 : vector<2x32xf32>
    %50 = arith.divf %48, %49 : vector<2x32xf32>
    %51 = arith.mulf %42, %30 : vector<2x32xf32>
    %52 = arith.mulf %36, %44 : vector<2x32xf32>
    %53 = arith.addf %51, %52 : vector<2x32xf32>
    %54 = math.tanh %53 : vector<2x32xf32>
    %55 = arith.mulf %50, %54 : vector<2x32xf32>
    %56 = vector.extract_strided_slice %29 {offsets = [0, 32], sizes = [2, 32], strides = [1, 1]} : vector<2x64xf32> to vector<2x32xf32>
    %57 = vector.extract_strided_slice %28 {offsets = [0, 0], sizes = [2, 32], strides = [1, 1]} : vector<2x128xf32> to vector<2x32xf32>
    %58 = arith.negf %57 : vector<2x32xf32>
    %59 = math.exp %58 : vector<2x32xf32>
    %cst_29 = arith.constant 1.000000e+00 : f32
    %60 = vector.broadcast %cst_29 : f32 to vector<2x32xf32>
    %61 = arith.addf %60, %59 : vector<2x32xf32>
    %62 = arith.divf %60, %61 : vector<2x32xf32>
    %63 = vector.extract_strided_slice %28 {offsets = [0, 32], sizes = [2, 32], strides = [1, 1]} : vector<2x128xf32> to vector<2x32xf32>
    %64 = arith.negf %63 : vector<2x32xf32>
    %65 = math.exp %64 : vector<2x32xf32>
    %cst_30 = arith.constant 1.000000e+00 : f32
    %66 = vector.broadcast %cst_30 : f32 to vector<2x32xf32>
    %67 = arith.addf %66, %65 : vector<2x32xf32>
    %68 = arith.divf %66, %67 : vector<2x32xf32>
    %69 = vector.extract_strided_slice %28 {offsets = [0, 64], sizes = [2, 32], strides = [1, 1]} : vector<2x128xf32> to vector<2x32xf32>
    %70 = math.tanh %69 : vector<2x32xf32>
    %71 = vector.extract_strided_slice %28 {offsets = [0, 96], sizes = [2, 32], strides = [1, 1]} : vector<2x128xf32> to vector<2x32xf32>
    %72 = arith.negf %71 : vector<2x32xf32>
    %73 = math.exp %72 : vector<2x32xf32>
    %cst_31 = arith.constant 1.000000e+00 : f32
    %74 = vector.broadcast %cst_31 : f32 to vector<2x32xf32>
    %75 = arith.addf %74, %73 : vector<2x32xf32>
    %76 = arith.divf %74, %75 : vector<2x32xf32>
    %77 = arith.mulf %68, %56 : vector<2x32xf32>
    %78 = arith.mulf %62, %70 : vector<2x32xf32>
    %79 = arith.addf %77, %78 : vector<2x32xf32>
    %80 = math.tanh %79 : vector<2x32xf32>
    %81 = arith.mulf %76, %80 : vector<2x32xf32>
    %82 = tpu.concatenate %55, %81 in 1 : vector<2x32xf32>, vector<2x32xf32> -> vector<2x64xf32>
    %c0_32 = arith.constant 0 : index
    %c0_33 = arith.constant 0 : index
    %83 = vector.load %arg11[%c0_32, %c0_33] : memref<2x64xf32, #tpu.memory_space<vmem>>, vector<2x64xf32>
    tpu.vector_store %arg11[%c0_32, %c0_33], %82 {strides = array<i32>} : memref<2x64xf32, #tpu.memory_space<vmem>>, vector<2x64xf32>,
    %84 = tpu.concatenate %53, %79 in 1 : vector<2x32xf32>, vector<2x32xf32> -> vector<2x64xf32>
    %c0_34 = arith.constant 0 : index
    %c0_35 = arith.constant 0 : index
    %85 = vector.load %arg12[%c0_34, %c0_35] : memref<2x64xf32, #tpu.memory_space<vmem>>, vector<2x64xf32>
    tpu.vector_store %arg12[%c0_34, %c0_35], %84 {strides = array<i32>} : memref<2x64xf32, #tpu.memory_space<vmem>>, vector<2x64xf32>,
    %86 = arith.index_cast %c0_i32 : i32 to index
    %c0_36 = arith.constant 0 : index
    %c0_37 = arith.constant 0 : index
    %87 = vector.load %arg9[%86, %c0_36, %c0_37] : memref<8x2x32xf32, #tpu.memory_space<vmem>>, vector<1x2x32xf32>
    %88 = vector.shape_cast %87 : vector<1x2x32xf32> to vector<2x32xf32>
    %89 = vector.shape_cast %55 : vector<2x32xf32> to vector<1x2x32xf32>
    tpu.vector_store %arg9[%86, %c0_36, %c0_37], %89 {strides = array<i32>} : memref<8x2x32xf32, #tpu.memory_space<vmem>>, vector<1x2x32xf32>,
    %c7_i32_38 = arith.constant 7 : i32
    %90 = arith.subi %c7_i32_38, %c0_i32 : i32
    %91 = arith.index_cast %90 : i32 to index
    %c0_39 = arith.constant 0 : index
    %c0_40 = arith.constant 0 : index
    %92 = vector.load %arg10[%91, %c0_39, %c0_40] : memref<8x2x32xf32, #tpu.memory_space<vmem>>, vector<1x2x32xf32>
    %93 = vector.shape_cast %92 : vector<1x2x32xf32> to vector<2x32xf32>
    %94 = vector.shape_cast %81 : vector<2x32xf32> to vector<1x2x32xf32>
    tpu.vector_store %arg10[%91, %c0_39, %c0_40], %94 {strides = array<i32>} : memref<8x2x32xf32, #tpu.memory_space<vmem>>, vector<1x2x32xf32>,
    %c1_i32 = arith.constant 1 : i32
    %c0_41 = arith.constant 0 : index
    %c0_42 = arith.constant 0 : index
    %95 = vector.load %arg11[%c0_41, %c0_42] : memref<2x64xf32, #tpu.memory_space<vmem>>, vector<2x64xf32>
    %cst_43 = arith.constant dense<0.000000e+00> : vector<2x256xf32>
    %96 = tpu.matmul %95, %13, %cst_43 {dimension_numbers = #tpu.dot_dimension_numbers<[1], [0], [0], [1], [0, 0, 1, 1], [], []>} : vector<2x64xf32>, vector<64x256xf32>, vector<2x256xf32> -> vector<2x256xf32>
    %97 = arith.index_cast %c1_i32 : i32 to index
    %c0_44 = arith.constant 0 : index
    %c0_45 = arith.constant 0 : index
    %98 = vector.load %arg8[%97, %c0_44, %c0_45] : memref<8x2x256xf32, #tpu.memory_space<vmem>>, vector<1x2x256xf32>
    %99 = vector.shape_cast %98 : vector<1x2x256xf32> to vector<2x256xf32>
    %c7_i32_46 = arith.constant 7 : i32
    %100 = arith.subi %c7_i32_46, %c1_i32 : i32
    %101 = arith.index_cast %100 : i32 to index
    %c0_47 = arith.constant 0 : index
    %c0_48 = arith.constant 0 : index
    %102 = vector.load %arg8[%101, %c0_47, %c0_48] : memref<8x2x256xf32, #tpu.memory_space<vmem>>, vector<1x2x256xf32>
    %103 = vector.shape_cast %102 : vector<1x2x256xf32> to vector<2x256xf32>
    %104 = vector.extract_strided_slice %99 {offsets = [0, 0], sizes = [2, 128], strides = [1, 1]} : vector<2x256xf32> to vector<2x128xf32>
    %105 = vector.extract_strided_slice %96 {offsets = [0, 0], sizes = [2, 128], strides = [1, 1]} : vector<2x256xf32> to vector<2x128xf32>
    %106 = arith.addf %104, %105 : vector<2x128xf32>
    %107 = vector.extract_strided_slice %103 {offsets = [0, 128], sizes = [2, 128], strides = [1, 1]} : vector<2x256xf32> to vector<2x128xf32>
    %108 = vector.extract_strided_slice %96 {offsets = [0, 128], sizes = [2, 128], strides = [1, 1]} : vector<2x256xf32> to vector<2x128xf32>
    %109 = arith.addf %107, %108 : vector<2x128xf32>
    %c0_49 = arith.constant 0 : index
    %c0_50 = arith.constant 0 : index
    %110 = vector.load %arg12[%c0_49, %c0_50] : memref<2x64xf32, #tpu.memory_space<vmem>>, vector<2x64xf32>
    %111 = vector.extract_strided_slice %110 {offsets = [0, 0], sizes = [2, 32], strides = [1, 1]} : vector<2x64xf32> to vector<2x32xf32>
    %112 = vector.extract_strided_slice %106 {offsets = [0, 0], sizes = [2, 32], strides = [1, 1]} : vector<2x128xf32> to vector<2x32xf32>
    %113 = arith.negf %112 : vector<2x32xf32>
    %114 = math.exp %113 : vector<2x32xf32>
    %cst_51 = arith.constant 1.000000e+00 : f32
    %115 = vector.broadcast %cst_51 : f32 to vector<2x32xf32>
    %116 = arith.addf %115, %114 : vector<2x32xf32>
    %117 = arith.divf %115, %116 : vector<2x32xf32>
    %118 = vector.extract_strided_slice %106 {offsets = [0, 32], sizes = [2, 32], strides = [1, 1]} : vector<2x128xf32> to vector<2x32xf32>
    %119 = arith.negf %118 : vector<2x32xf32>
    %120 = math.exp %119 : vector<2x32xf32>
    %cst_52 = arith.constant 1.000000e+00 : f32
    %121 = vector.broadcast %cst_52 : f32 to vector<2x32xf32>
    %122 = arith.addf %121, %120 : vector<2x32xf32>
    %123 = arith.divf %121, %122 : vector<2x32xf32>
    %124 = vector.extract_strided_slice %106 {offsets = [0, 64], sizes = [2, 32], strides = [1, 1]} : vector<2x128xf32> to vector<2x32xf32>
    %125 = math.tanh %124 : vector<2x32xf32>
    %126 = vector.extract_strided_slice %106 {offsets = [0, 96], sizes = [2, 32], strides = [1, 1]} : vector<2x128xf32> to vector<2x32xf32>
    %127 = arith.negf %126 : vector<2x32xf32>
    %128 = math.exp %127 : vector<2x32xf32>
    %cst_53 = arith.constant 1.000000e+00 : f32
    %129 = vector.broadcast %cst_53 : f32 to vector<2x32xf32>
    %130 = arith.addf %129, %128 : vector<2x32xf32>
    %131 = arith.divf %129, %130 : vector<2x32xf32>
    %132 = arith.mulf %123, %111 : vector<2x32xf32>
    %133 = arith.mulf %117, %125 : vector<2x32xf32>
    %134 = arith.addf %132, %133 : vector<2x32xf32>
    %135 = math.tanh %134 : vector<2x32xf32>
    %136 = arith.mulf %131, %135 : vector<2x32xf32>
    %137 = vector.extract_strided_slice %110 {offsets = [0, 32], sizes = [2, 32], strides = [1, 1]} : vector<2x64xf32> to vector<2x32xf32>
    %138 = vector.extract_strided_slice %109 {offsets = [0, 0], sizes = [2, 32], strides = [1, 1]} : vector<2x128xf32> to vector<2x32xf32>
    %139 = arith.negf %138 : vector<2x32xf32>
    %140 = math.exp %139 : vector<2x32xf32>
    %cst_54 = arith.constant 1.000000e+00 : f32
    %141 = vector.broadcast %cst_54 : f32 to vector<2x32xf32>
    %142 = arith.addf %141, %140 : vector<2x32xf32>
    %143 = arith.divf %141, %142 : vector<2x32xf32>
    %144 = vector.extract_strided_slice %109 {offsets = [0, 32], sizes = [2, 32], strides = [1, 1]} : vector<2x128xf32> to vector<2x32xf32>
    %145 = arith.negf %144 : vector<2x32xf32>
    %146 = math.exp %145 : vector<2x32xf32>
    %cst_55 = arith.constant 1.000000e+00 : f32
    %147 = vector.broadcast %cst_55 : f32 to vector<2x32xf32>
    %148 = arith.addf %147, %146 : vector<2x32xf32>
    %149 = arith.divf %147, %148 : vector<2x32xf32>
    %150 = vector.extract_strided_slice %109 {offsets = [0, 64], sizes = [2, 32], strides = [1, 1]} : vector<2x128xf32> to vector<2x32xf32>
    %151 = math.tanh %150 : vector<2x32xf32>
    %152 = vector.extract_strided_slice %109 {offsets = [0, 96], sizes = [2, 32], strides = [1, 1]} : vector<2x128xf32> to vector<2x32xf32>
    %153 = arith.negf %152 : vector<2x32xf32>
    %154 = math.exp %153 : vector<2x32xf32>
    %cst_56 = arith.constant 1.000000e+00 : f32
    %155 = vector.broadcast %cst_56 : f32 to vector<2x32xf32>
    %156 = arith.addf %155, %154 : vector<2x32xf32>
    %157 = arith.divf %155, %156 : vector<2x32xf32>
    %158 = arith.mulf %149, %137 : vector<2x32xf32>
    %159 = arith.mulf %143, %151 : vector<2x32xf32>
    %160 = arith.addf %158, %159 : vector<2x32xf32>
    %161 = math.tanh %160 : vector<2x32xf32>
    %162 = arith.mulf %157, %161 : vector<2x32xf32>
    %163 = tpu.concatenate %136, %162 in 1 : vector<2x32xf32>, vector<2x32xf32> -> vector<2x64xf32>
    %c0_57 = arith.constant 0 : index
    %c0_58 = arith.constant 0 : index
    %164 = vector.load %arg11[%c0_57, %c0_58] : memref<2x64xf32, #tpu.memory_space<vmem>>, vector<2x64xf32>
    tpu.vector_store %arg11[%c0_57, %c0_58], %163 {strides = array<i32>} : memref<2x64xf32, #tpu.memory_space<vmem>>, vector<2x64xf32>,
    %165 = tpu.concatenate %134, %160 in 1 : vector<2x32xf32>, vector<2x32xf32> -> vector<2x64xf32>
    %c0_59 = arith.constant 0 : index
    %c0_60 = arith.constant 0 : index
    %166 = vector.load %arg12[%c0_59, %c0_60] : memref<2x64xf32, #tpu.memory_space<vmem>>, vector<2x64xf32>
    tpu.vector_store %arg12[%c0_59, %c0_60], %165 {strides = array<i32>} : memref<2x64xf32, #tpu.memory_space<vmem>>, vector<2x64xf32>,
    %167 = arith.index_cast %c1_i32 : i32 to index
    %c0_61 = arith.constant 0 : index
    %c0_62 = arith.constant 0 : index
    %168 = vector.load %arg9[%167, %c0_61, %c0_62] : memref<8x2x32xf32, #tpu.memory_space<vmem>>, vector<1x2x32xf32>
    %169 = vector.shape_cast %168 : vector<1x2x32xf32> to vector<2x32xf32>
    %170 = vector.shape_cast %136 : vector<2x32xf32> to vector<1x2x32xf32>
    tpu.vector_store %arg9[%167, %c0_61, %c0_62], %170 {strides = array<i32>} : memref<8x2x32xf32, #tpu.memory_space<vmem>>, vector<1x2x32xf32>,
    %c7_i32_63 = arith.constant 7 : i32
    %171 = arith.subi %c7_i32_63, %c1_i32 : i32
    %172 = arith.index_cast %171 : i32 to index
    %c0_64 = arith.constant 0 : index
    %c0_65 = arith.constant 0 : index
    %173 = vector.load %arg10[%172, %c0_64, %c0_65] : memref<8x2x32xf32, #tpu.memory_space<vmem>>, vector<1x2x32xf32>
    %174 = vector.shape_cast %173 : vector<1x2x32xf32> to vector<2x32xf32>
    %175 = vector.shape_cast %162 : vector<2x32xf32> to vector<1x2x32xf32>
    tpu.vector_store %arg10[%172, %c0_64, %c0_65], %175 {strides = array<i32>} : memref<8x2x32xf32, #tpu.memory_space<vmem>>, vector<1x2x32xf32>,
    %c2_i32 = arith.constant 2 : i32
    %c0_66 = arith.constant 0 : index
    %c0_67 = arith.constant 0 : index
    %176 = vector.load %arg11[%c0_66, %c0_67] : memref<2x64xf32, #tpu.memory_space<vmem>>, vector<2x64xf32>
    %cst_68 = arith.constant dense<0.000000e+00> : vector<2x256xf32>
    %177 = tpu.matmul %176, %13, %cst_68 {dimension_numbers = #tpu.dot_dimension_numbers<[1], [0], [0], [1], [0, 0, 1, 1], [], []>} : vector<2x64xf32>, vector<64x256xf32>, vector<2x256xf32> -> vector<2x256xf32>
    %178 = arith.index_cast %c2_i32 : i32 to index
    %c0_69 = arith.constant 0 : index
    %c0_70 = arith.constant 0 : index
    %179 = vector.load %arg8[%178, %c0_69, %c0_70] : memref<8x2x256xf32, #tpu.memory_space<vmem>>, vector<1x2x256xf32>
    %180 = vector.shape_cast %179 : vector<1x2x256xf32> to vector<2x256xf32>
    %c7_i32_71 = arith.constant 7 : i32
    %181 = arith.subi %c7_i32_71, %c2_i32 : i32
    %182 = arith.index_cast %181 : i32 to index
    %c0_72 = arith.constant 0 : index
    %c0_73 = arith.constant 0 : index
    %183 = vector.load %arg8[%182, %c0_72, %c0_73] : memref<8x2x256xf32, #tpu.memory_space<vmem>>, vector<1x2x256xf32>
    %184 = vector.shape_cast %183 : vector<1x2x256xf32> to vector<2x256xf32>
    %185 = vector.extract_strided_slice %180 {offsets = [0, 0], sizes = [2, 128], strides = [1, 1]} : vector<2x256xf32> to vector<2x128xf32>
    %186 = vector.extract_strided_slice %177 {offsets = [0, 0], sizes = [2, 128], strides = [1, 1]} : vector<2x256xf32> to vector<2x128xf32>
    %187 = arith.addf %185, %186 : vector<2x128xf32>
    %188 = vector.extract_strided_slice %184 {offsets = [0, 128], sizes = [2, 128], strides = [1, 1]} : vector<2x256xf32> to vector<2x128xf32>
    %189 = vector.extract_strided_slice %177 {offsets = [0, 128], sizes = [2, 128], strides = [1, 1]} : vector<2x256xf32> to vector<2x128xf32>
    %190 = arith.addf %188, %189 : vector<2x128xf32>
    %c0_74 = arith.constant 0 : index
    %c0_75 = arith.constant 0 : index
    %191 = vector.load %arg12[%c0_74, %c0_75] : memref<2x64xf32, #tpu.memory_space<vmem>>, vector<2x64xf32>
    %192 = vector.extract_strided_slice %191 {offsets = [0, 0], sizes = [2, 32], strides = [1, 1]} : vector<2x64xf32> to vector<2x32xf32>
    %193 = vector.extract_strided_slice %187 {offsets = [0, 0], sizes = [2, 32], strides = [1, 1]} : vector<2x128xf32> to vector<2x32xf32>
    %194 = arith.negf %193 : vector<2x32xf32>
    %195 = math.exp %194 : vector<2x32xf32>
    %cst_76 = arith.constant 1.000000e+00 : f32
    %196 = vector.broadcast %cst_76 : f32 to vector<2x32xf32>
    %197 = arith.addf %196, %195 : vector<2x32xf32>
    %198 = arith.divf %196, %197 : vector<2x32xf32>
    %199 = vector.extract_strided_slice %187 {offsets = [0, 32], sizes = [2, 32], strides = [1, 1]} : vector<2x128xf32> to vector<2x32xf32>
    %200 = arith.negf %199 : vector<2x32xf32>
    %201 = math.exp %200 : vector<2x32xf32>
    %cst_77 = arith.constant 1.000000e+00 : f32
    %202 = vector.broadcast %cst_77 : f32 to vector<2x32xf32>
    %203 = arith.addf %202, %201 : vector<2x32xf32>
    %204 = arith.divf %202, %203 : vector<2x32xf32>
    %205 = vector.extract_strided_slice %187 {offsets = [0, 64], sizes = [2, 32], strides = [1, 1]} : vector<2x128xf32> to vector<2x32xf32>
    %206 = math.tanh %205 : vector<2x32xf32>
    %207 = vector.extract_strided_slice %187 {offsets = [0, 96], sizes = [2, 32], strides = [1, 1]} : vector<2x128xf32> to vector<2x32xf32>
    %208 = arith.negf %207 : vector<2x32xf32>
    %209 = math.exp %208 : vector<2x32xf32>
    %cst_78 = arith.constant 1.000000e+00 : f32
    %210 = vector.broadcast %cst_78 : f32 to vector<2x32xf32>
    %211 = arith.addf %210, %209 : vector<2x32xf32>
    %212 = arith.divf %210, %211 : vector<2x32xf32>
    %213 = arith.mulf %204, %192 : vector<2x32xf32>
    %214 = arith.mulf %198, %206 : vector<2x32xf32>
    %215 = arith.addf %213, %214 : vector<2x32xf32>
    %216 = math.tanh %215 : vector<2x32xf32>
    %217 = arith.mulf %212, %216 : vector<2x32xf32>
    %218 = vector.extract_strided_slice %191 {offsets = [0, 32], sizes = [2, 32], strides = [1, 1]} : vector<2x64xf32> to vector<2x32xf32>
    %219 = vector.extract_strided_slice %190 {offsets = [0, 0], sizes = [2, 32], strides = [1, 1]} : vector<2x128xf32> to vector<2x32xf32>
    %220 = arith.negf %219 : vector<2x32xf32>
    %221 = math.exp %220 : vector<2x32xf32>
    %cst_79 = arith.constant 1.000000e+00 : f32
    %222 = vector.broadcast %cst_79 : f32 to vector<2x32xf32>
    %223 = arith.addf %222, %221 : vector<2x32xf32>
    %224 = arith.divf %222, %223 : vector<2x32xf32>
    %225 = vector.extract_strided_slice %190 {offsets = [0, 32], sizes = [2, 32], strides = [1, 1]} : vector<2x128xf32> to vector<2x32xf32>
    %226 = arith.negf %225 : vector<2x32xf32>
    %227 = math.exp %226 : vector<2x32xf32>
    %cst_80 = arith.constant 1.000000e+00 : f32
    %228 = vector.broadcast %cst_80 : f32 to vector<2x32xf32>
    %229 = arith.addf %228, %227 : vector<2x32xf32>
    %230 = arith.divf %228, %229 : vector<2x32xf32>
    %231 = vector.extract_strided_slice %190 {offsets = [0, 64], sizes = [2, 32], strides = [1, 1]} : vector<2x128xf32> to vector<2x32xf32>
    %232 = math.tanh %231 : vector<2x32xf32>
    %233 = vector.extract_strided_slice %190 {offsets = [0, 96], sizes = [2, 32], strides = [1, 1]} : vector<2x128xf32> to vector<2x32xf32>
    %234 = arith.negf %233 : vector<2x32xf32>
    %235 = math.exp %234 : vector<2x32xf32>
    %cst_81 = arith.constant 1.000000e+00 : f32
    %236 = vector.broadcast %cst_81 : f32 to vector<2x32xf32>
    %237 = arith.addf %236, %235 : vector<2x32xf32>
    %238 = arith.divf %236, %237 : vector<2x32xf32>
    %239 = arith.mulf %230, %218 : vector<2x32xf32>
    %240 = arith.mulf %224, %232 : vector<2x32xf32>
    %241 = arith.addf %239, %240 : vector<2x32xf32>
    %242 = math.tanh %241 : vector<2x32xf32>
    %243 = arith.mulf %238, %242 : vector<2x32xf32>
    %244 = tpu.concatenate %217, %243 in 1 : vector<2x32xf32>, vector<2x32xf32> -> vector<2x64xf32>
    %c0_82 = arith.constant 0 : index
    %c0_83 = arith.constant 0 : index
    %245 = vector.load %arg11[%c0_82, %c0_83] : memref<2x64xf32, #tpu.memory_space<vmem>>, vector<2x64xf32>
    tpu.vector_store %arg11[%c0_82, %c0_83], %244 {strides = array<i32>} : memref<2x64xf32, #tpu.memory_space<vmem>>, vector<2x64xf32>,
    %246 = tpu.concatenate %215, %241 in 1 : vector<2x32xf32>, vector<2x32xf32> -> vector<2x64xf32>
    %c0_84 = arith.constant 0 : index
    %c0_85 = arith.constant 0 : index
    %247 = vector.load %arg12[%c0_84, %c0_85] : memref<2x64xf32, #tpu.memory_space<vmem>>, vector<2x64xf32>
    tpu.vector_store %arg12[%c0_84, %c0_85], %246 {strides = array<i32>} : memref<2x64xf32, #tpu.memory_space<vmem>>, vector<2x64xf32>,
    %248 = arith.index_cast %c2_i32 : i32 to index
    %c0_86 = arith.constant 0 : index
    %c0_87 = arith.constant 0 : index
    %249 = vector.load %arg9[%248, %c0_86, %c0_87] : memref<8x2x32xf32, #tpu.memory_space<vmem>>, vector<1x2x32xf32>
    %250 = vector.shape_cast %249 : vector<1x2x32xf32> to vector<2x32xf32>
    %251 = vector.shape_cast %217 : vector<2x32xf32> to vector<1x2x32xf32>
    tpu.vector_store %arg9[%248, %c0_86, %c0_87], %251 {strides = array<i32>} : memref<8x2x32xf32, #tpu.memory_space<vmem>>, vector<1x2x32xf32>,
    %c7_i32_88 = arith.constant 7 : i32
    %252 = arith.subi %c7_i32_88, %c2_i32 : i32
    %253 = arith.index_cast %252 : i32 to index
    %c0_89 = arith.constant 0 : index
    %c0_90 = arith.constant 0 : index
    %254 = vector.load %arg10[%253, %c0_89, %c0_90] : memref<8x2x32xf32, #tpu.memory_space<vmem>>, vector<1x2x32xf32>
    %255 = vector.shape_cast %254 : vector<1x2x32xf32> to vector<2x32xf32>
    %256 = vector.shape_cast %243 : vector<2x32xf32> to vector<1x2x32xf32>
    tpu.vector_store %arg10[%253, %c0_89, %c0_90], %256 {strides = array<i32>} : memref<8x2x32xf32, #tpu.memory_space<vmem>>, vector<1x2x32xf32>,
    %c3_i32 = arith.constant 3 : i32
    %c0_91 = arith.constant 0 : index
    %c0_92 = arith.constant 0 : index
    %257 = vector.load %arg11[%c0_91, %c0_92] : memref<2x64xf32, #tpu.memory_space<vmem>>, vector<2x64xf32>
    %cst_93 = arith.constant dense<0.000000e+00> : vector<2x256xf32>
    %258 = tpu.matmul %257, %13, %cst_93 {dimension_numbers = #tpu.dot_dimension_numbers<[1], [0], [0], [1], [0, 0, 1, 1], [], []>} : vector<2x64xf32>, vector<64x256xf32>, vector<2x256xf32> -> vector<2x256xf32>
    %259 = arith.index_cast %c3_i32 : i32 to index
    %c0_94 = arith.constant 0 : index
    %c0_95 = arith.constant 0 : index
    %260 = vector.load %arg8[%259, %c0_94, %c0_95] : memref<8x2x256xf32, #tpu.memory_space<vmem>>, vector<1x2x256xf32>
    %261 = vector.shape_cast %260 : vector<1x2x256xf32> to vector<2x256xf32>
    %c7_i32_96 = arith.constant 7 : i32
    %262 = arith.subi %c7_i32_96, %c3_i32 : i32
    %263 = arith.index_cast %262 : i32 to index
    %c0_97 = arith.constant 0 : index
    %c0_98 = arith.constant 0 : index
    %264 = vector.load %arg8[%263, %c0_97, %c0_98] : memref<8x2x256xf32, #tpu.memory_space<vmem>>, vector<1x2x256xf32>
    %265 = vector.shape_cast %264 : vector<1x2x256xf32> to vector<2x256xf32>
    %266 = vector.extract_strided_slice %261 {offsets = [0, 0], sizes = [2, 128], strides = [1, 1]} : vector<2x256xf32> to vector<2x128xf32>
    %267 = vector.extract_strided_slice %258 {offsets = [0, 0], sizes = [2, 128], strides = [1, 1]} : vector<2x256xf32> to vector<2x128xf32>
    %268 = arith.addf %266, %267 : vector<2x128xf32>
    %269 = vector.extract_strided_slice %265 {offsets = [0, 128], sizes = [2, 128], strides = [1, 1]} : vector<2x256xf32> to vector<2x128xf32>
    %270 = vector.extract_strided_slice %258 {offsets = [0, 128], sizes = [2, 128], strides = [1, 1]} : vector<2x256xf32> to vector<2x128xf32>
    %271 = arith.addf %269, %270 : vector<2x128xf32>
    %c0_99 = arith.constant 0 : index
    %c0_100 = arith.constant 0 : index
    %272 = vector.load %arg12[%c0_99, %c0_100] : memref<2x64xf32, #tpu.memory_space<vmem>>, vector<2x64xf32>
    %273 = vector.extract_strided_slice %272 {offsets = [0, 0], sizes = [2, 32], strides = [1, 1]} : vector<2x64xf32> to vector<2x32xf32>
    %274 = vector.extract_strided_slice %268 {offsets = [0, 0], sizes = [2, 32], strides = [1, 1]} : vector<2x128xf32> to vector<2x32xf32>
    %275 = arith.negf %274 : vector<2x32xf32>
    %276 = math.exp %275 : vector<2x32xf32>
    %cst_101 = arith.constant 1.000000e+00 : f32
    %277 = vector.broadcast %cst_101 : f32 to vector<2x32xf32>
    %278 = arith.addf %277, %276 : vector<2x32xf32>
    %279 = arith.divf %277, %278 : vector<2x32xf32>
    %280 = vector.extract_strided_slice %268 {offsets = [0, 32], sizes = [2, 32], strides = [1, 1]} : vector<2x128xf32> to vector<2x32xf32>
    %281 = arith.negf %280 : vector<2x32xf32>
    %282 = math.exp %281 : vector<2x32xf32>
    %cst_102 = arith.constant 1.000000e+00 : f32
    %283 = vector.broadcast %cst_102 : f32 to vector<2x32xf32>
    %284 = arith.addf %283, %282 : vector<2x32xf32>
    %285 = arith.divf %283, %284 : vector<2x32xf32>
    %286 = vector.extract_strided_slice %268 {offsets = [0, 64], sizes = [2, 32], strides = [1, 1]} : vector<2x128xf32> to vector<2x32xf32>
    %287 = math.tanh %286 : vector<2x32xf32>
    %288 = vector.extract_strided_slice %268 {offsets = [0, 96], sizes = [2, 32], strides = [1, 1]} : vector<2x128xf32> to vector<2x32xf32>
    %289 = arith.negf %288 : vector<2x32xf32>
    %290 = math.exp %289 : vector<2x32xf32>
    %cst_103 = arith.constant 1.000000e+00 : f32
    %291 = vector.broadcast %cst_103 : f32 to vector<2x32xf32>
    %292 = arith.addf %291, %290 : vector<2x32xf32>
    %293 = arith.divf %291, %292 : vector<2x32xf32>
    %294 = arith.mulf %285, %273 : vector<2x32xf32>
    %295 = arith.mulf %279, %287 : vector<2x32xf32>
    %296 = arith.addf %294, %295 : vector<2x32xf32>
    %297 = math.tanh %296 : vector<2x32xf32>
    %298 = arith.mulf %293, %297 : vector<2x32xf32>
    %299 = vector.extract_strided_slice %272 {offsets = [0, 32], sizes = [2, 32], strides = [1, 1]} : vector<2x64xf32> to vector<2x32xf32>
    %300 = vector.extract_strided_slice %271 {offsets = [0, 0], sizes = [2, 32], strides = [1, 1]} : vector<2x128xf32> to vector<2x32xf32>
    %301 = arith.negf %300 : vector<2x32xf32>
    %302 = math.exp %301 : vector<2x32xf32>
    %cst_104 = arith.constant 1.000000e+00 : f32
    %303 = vector.broadcast %cst_104 : f32 to vector<2x32xf32>
    %304 = arith.addf %303, %302 : vector<2x32xf32>
    %305 = arith.divf %303, %304 : vector<2x32xf32>
    %306 = vector.extract_strided_slice %271 {offsets = [0, 32], sizes = [2, 32], strides = [1, 1]} : vector<2x128xf32> to vector<2x32xf32>
    %307 = arith.negf %306 : vector<2x32xf32>
    %308 = math.exp %307 : vector<2x32xf32>
    %cst_105 = arith.constant 1.000000e+00 : f32
    %309 = vector.broadcast %cst_105 : f32 to vector<2x32xf32>
    %310 = arith.addf %309, %308 : vector<2x32xf32>
    %311 = arith.divf %309, %310 : vector<2x32xf32>
    %312 = vector.extract_strided_slice %271 {offsets = [0, 64], sizes = [2, 32], strides = [1, 1]} : vector<2x128xf32> to vector<2x32xf32>
    %313 = math.tanh %312 : vector<2x32xf32>
    %314 = vector.extract_strided_slice %271 {offsets = [0, 96], sizes = [2, 32], strides = [1, 1]} : vector<2x128xf32> to vector<2x32xf32>
    %315 = arith.negf %314 : vector<2x32xf32>
    %316 = math.exp %315 : vector<2x32xf32>
    %cst_106 = arith.constant 1.000000e+00 : f32
    %317 = vector.broadcast %cst_106 : f32 to vector<2x32xf32>
    %318 = arith.addf %317, %316 : vector<2x32xf32>
    %319 = arith.divf %317, %318 : vector<2x32xf32>
    %320 = arith.mulf %311, %299 : vector<2x32xf32>
    %321 = arith.mulf %305, %313 : vector<2x32xf32>
    %322 = arith.addf %320, %321 : vector<2x32xf32>
    %323 = math.tanh %322 : vector<2x32xf32>
    %324 = arith.mulf %319, %323 : vector<2x32xf32>
    %325 = tpu.concatenate %298, %324 in 1 : vector<2x32xf32>, vector<2x32xf32> -> vector<2x64xf32>
    %c0_107 = arith.constant 0 : index
    %c0_108 = arith.constant 0 : index
    %326 = vector.load %arg11[%c0_107, %c0_108] : memref<2x64xf32, #tpu.memory_space<vmem>>, vector<2x64xf32>
    tpu.vector_store %arg11[%c0_107, %c0_108], %325 {strides = array<i32>} : memref<2x64xf32, #tpu.memory_space<vmem>>, vector<2x64xf32>,
    %327 = tpu.concatenate %296, %322 in 1 : vector<2x32xf32>, vector<2x32xf32> -> vector<2x64xf32>
    %c0_109 = arith.constant 0 : index
    %c0_110 = arith.constant 0 : index
    %328 = vector.load %arg12[%c0_109, %c0_110] : memref<2x64xf32, #tpu.memory_space<vmem>>, vector<2x64xf32>
    tpu.vector_store %arg12[%c0_109, %c0_110], %327 {strides = array<i32>} : memref<2x64xf32, #tpu.memory_space<vmem>>, vector<2x64xf32>,
    %329 = arith.index_cast %c3_i32 : i32 to index
    %c0_111 = arith.constant 0 : index
    %c0_112 = arith.constant 0 : index
    %330 = vector.load %arg9[%329, %c0_111, %c0_112] : memref<8x2x32xf32, #tpu.memory_space<vmem>>, vector<1x2x32xf32>
    %331 = vector.shape_cast %330 : vector<1x2x32xf32> to vector<2x32xf32>
    %332 = vector.shape_cast %298 : vector<2x32xf32> to vector<1x2x32xf32>
    tpu.vector_store %arg9[%329, %c0_111, %c0_112], %332 {strides = array<i32>} : memref<8x2x32xf32, #tpu.memory_space<vmem>>, vector<1x2x32xf32>,
    %c7_i32_113 = arith.constant 7 : i32
    %333 = arith.subi %c7_i32_113, %c3_i32 : i32
    %334 = arith.index_cast %333 : i32 to index
    %c0_114 = arith.constant 0 : index
    %c0_115 = arith.constant 0 : index
    %335 = vector.load %arg10[%334, %c0_114, %c0_115] : memref<8x2x32xf32, #tpu.memory_space<vmem>>, vector<1x2x32xf32>
    %336 = vector.shape_cast %335 : vector<1x2x32xf32> to vector<2x32xf32>
    %337 = vector.shape_cast %324 : vector<2x32xf32> to vector<1x2x32xf32>
    tpu.vector_store %arg10[%334, %c0_114, %c0_115], %337 {strides = array<i32>} : memref<8x2x32xf32, #tpu.memory_space<vmem>>, vector<1x2x32xf32>,
    %c4_i32 = arith.constant 4 : i32
    %c0_116 = arith.constant 0 : index
    %c0_117 = arith.constant 0 : index
    %338 = vector.load %arg11[%c0_116, %c0_117] : memref<2x64xf32, #tpu.memory_space<vmem>>, vector<2x64xf32>
    %cst_118 = arith.constant dense<0.000000e+00> : vector<2x256xf32>
    %339 = tpu.matmul %338, %13, %cst_118 {dimension_numbers = #tpu.dot_dimension_numbers<[1], [0], [0], [1], [0, 0, 1, 1], [], []>} : vector<2x64xf32>, vector<64x256xf32>, vector<2x256xf32> -> vector<2x256xf32>
    %340 = arith.index_cast %c4_i32 : i32 to index
    %c0_119 = arith.constant 0 : index
    %c0_120 = arith.constant 0 : index
    %341 = vector.load %arg8[%340, %c0_119, %c0_120] : memref<8x2x256xf32, #tpu.memory_space<vmem>>, vector<1x2x256xf32>
    %342 = vector.shape_cast %341 : vector<1x2x256xf32> to vector<2x256xf32>
    %c7_i32_121 = arith.constant 7 : i32
    %343 = arith.subi %c7_i32_121, %c4_i32 : i32
    %344 = arith.index_cast %343 : i32 to index
    %c0_122 = arith.constant 0 : index
    %c0_123 = arith.constant 0 : index
    %345 = vector.load %arg8[%344, %c0_122, %c0_123] : memref<8x2x256xf32, #tpu.memory_space<vmem>>, vector<1x2x256xf32>
    %346 = vector.shape_cast %345 : vector<1x2x256xf32> to vector<2x256xf32>
    %347 = vector.extract_strided_slice %342 {offsets = [0, 0], sizes = [2, 128], strides = [1, 1]} : vector<2x256xf32> to vector<2x128xf32>
    %348 = vector.extract_strided_slice %339 {offsets = [0, 0], sizes = [2, 128], strides = [1, 1]} : vector<2x256xf32> to vector<2x128xf32>
    %349 = arith.addf %347, %348 : vector<2x128xf32>
    %350 = vector.extract_strided_slice %346 {offsets = [0, 128], sizes = [2, 128], strides = [1, 1]} : vector<2x256xf32> to vector<2x128xf32>
    %351 = vector.extract_strided_slice %339 {offsets = [0, 128], sizes = [2, 128], strides = [1, 1]} : vector<2x256xf32> to vector<2x128xf32>
    %352 = arith.addf %350, %351 : vector<2x128xf32>
    %c0_124 = arith.constant 0 : index
    %c0_125 = arith.constant 0 : index
    %353 = vector.load %arg12[%c0_124, %c0_125] : memref<2x64xf32, #tpu.memory_space<vmem>>, vector<2x64xf32>
    %354 = vector.extract_strided_slice %353 {offsets = [0, 0], sizes = [2, 32], strides = [1, 1]} : vector<2x64xf32> to vector<2x32xf32>
    %355 = vector.extract_strided_slice %349 {offsets = [0, 0], sizes = [2, 32], strides = [1, 1]} : vector<2x128xf32> to vector<2x32xf32>
    %356 = arith.negf %355 : vector<2x32xf32>
    %357 = math.exp %356 : vector<2x32xf32>
    %cst_126 = arith.constant 1.000000e+00 : f32
    %358 = vector.broadcast %cst_126 : f32 to vector<2x32xf32>
    %359 = arith.addf %358, %357 : vector<2x32xf32>
    %360 = arith.divf %358, %359 : vector<2x32xf32>
    %361 = vector.extract_strided_slice %349 {offsets = [0, 32], sizes = [2, 32], strides = [1, 1]} : vector<2x128xf32> to vector<2x32xf32>
    %362 = arith.negf %361 : vector<2x32xf32>
    %363 = math.exp %362 : vector<2x32xf32>
    %cst_127 = arith.constant 1.000000e+00 : f32
    %364 = vector.broadcast %cst_127 : f32 to vector<2x32xf32>
    %365 = arith.addf %364, %363 : vector<2x32xf32>
    %366 = arith.divf %364, %365 : vector<2x32xf32>
    %367 = vector.extract_strided_slice %349 {offsets = [0, 64], sizes = [2, 32], strides = [1, 1]} : vector<2x128xf32> to vector<2x32xf32>
    %368 = math.tanh %367 : vector<2x32xf32>
    %369 = vector.extract_strided_slice %349 {offsets = [0, 96], sizes = [2, 32], strides = [1, 1]} : vector<2x128xf32> to vector<2x32xf32>
    %370 = arith.negf %369 : vector<2x32xf32>
    %371 = math.exp %370 : vector<2x32xf32>
    %cst_128 = arith.constant 1.000000e+00 : f32
    %372 = vector.broadcast %cst_128 : f32 to vector<2x32xf32>
    %373 = arith.addf %372, %371 : vector<2x32xf32>
    %374 = arith.divf %372, %373 : vector<2x32xf32>
    %375 = arith.mulf %366, %354 : vector<2x32xf32>
    %376 = arith.mulf %360, %368 : vector<2x32xf32>
    %377 = arith.addf %375, %376 : vector<2x32xf32>
    %378 = math.tanh %377 : vector<2x32xf32>
    %379 = arith.mulf %374, %378 : vector<2x32xf32>
    %380 = vector.extract_strided_slice %353 {offsets = [0, 32], sizes = [2, 32], strides = [1, 1]} : vector<2x64xf32> to vector<2x32xf32>
    %381 = vector.extract_strided_slice %352 {offsets = [0, 0], sizes = [2, 32], strides = [1, 1]} : vector<2x128xf32> to vector<2x32xf32>
    %382 = arith.negf %381 : vector<2x32xf32>
    %383 = math.exp %382 : vector<2x32xf32>
    %cst_129 = arith.constant 1.000000e+00 : f32
    %384 = vector.broadcast %cst_129 : f32 to vector<2x32xf32>
    %385 = arith.addf %384, %383 : vector<2x32xf32>
    %386 = arith.divf %384, %385 : vector<2x32xf32>
    %387 = vector.extract_strided_slice %352 {offsets = [0, 32], sizes = [2, 32], strides = [1, 1]} : vector<2x128xf32> to vector<2x32xf32>
    %388 = arith.negf %387 : vector<2x32xf32>
    %389 = math.exp %388 : vector<2x32xf32>
    %cst_130 = arith.constant 1.000000e+00 : f32
    %390 = vector.broadcast %cst_130 : f32 to vector<2x32xf32>
    %391 = arith.addf %390, %389 : vector<2x32xf32>
    %392 = arith.divf %390, %391 : vector<2x32xf32>
    %393 = vector.extract_strided_slice %352 {offsets = [0, 64], sizes = [2, 32], strides = [1, 1]} : vector<2x128xf32> to vector<2x32xf32>
    %394 = math.tanh %393 : vector<2x32xf32>
    %395 = vector.extract_strided_slice %352 {offsets = [0, 96], sizes = [2, 32], strides = [1, 1]} : vector<2x128xf32> to vector<2x32xf32>
    %396 = arith.negf %395 : vector<2x32xf32>
    %397 = math.exp %396 : vector<2x32xf32>
    %cst_131 = arith.constant 1.000000e+00 : f32
    %398 = vector.broadcast %cst_131 : f32 to vector<2x32xf32>
    %399 = arith.addf %398, %397 : vector<2x32xf32>
    %400 = arith.divf %398, %399 : vector<2x32xf32>
    %401 = arith.mulf %392, %380 : vector<2x32xf32>
    %402 = arith.mulf %386, %394 : vector<2x32xf32>
    %403 = arith.addf %401, %402 : vector<2x32xf32>
    %404 = math.tanh %403 : vector<2x32xf32>
    %405 = arith.mulf %400, %404 : vector<2x32xf32>
    %406 = tpu.concatenate %379, %405 in 1 : vector<2x32xf32>, vector<2x32xf32> -> vector<2x64xf32>
    %c0_132 = arith.constant 0 : index
    %c0_133 = arith.constant 0 : index
    %407 = vector.load %arg11[%c0_132, %c0_133] : memref<2x64xf32, #tpu.memory_space<vmem>>, vector<2x64xf32>
    tpu.vector_store %arg11[%c0_132, %c0_133], %406 {strides = array<i32>} : memref<2x64xf32, #tpu.memory_space<vmem>>, vector<2x64xf32>,
    %408 = tpu.concatenate %377, %403 in 1 : vector<2x32xf32>, vector<2x32xf32> -> vector<2x64xf32>
    %c0_134 = arith.constant 0 : index
    %c0_135 = arith.constant 0 : index
    %409 = vector.load %arg12[%c0_134, %c0_135] : memref<2x64xf32, #tpu.memory_space<vmem>>, vector<2x64xf32>
    tpu.vector_store %arg12[%c0_134, %c0_135], %408 {strides = array<i32>} : memref<2x64xf32, #tpu.memory_space<vmem>>, vector<2x64xf32>,
    %410 = arith.index_cast %c4_i32 : i32 to index
    %c0_136 = arith.constant 0 : index
    %c0_137 = arith.constant 0 : index
    %411 = vector.load %arg9[%410, %c0_136, %c0_137] : memref<8x2x32xf32, #tpu.memory_space<vmem>>, vector<1x2x32xf32>
    %412 = vector.shape_cast %411 : vector<1x2x32xf32> to vector<2x32xf32>
    %413 = vector.shape_cast %379 : vector<2x32xf32> to vector<1x2x32xf32>
    tpu.vector_store %arg9[%410, %c0_136, %c0_137], %413 {strides = array<i32>} : memref<8x2x32xf32, #tpu.memory_space<vmem>>, vector<1x2x32xf32>,
    %c7_i32_138 = arith.constant 7 : i32
    %414 = arith.subi %c7_i32_138, %c4_i32 : i32
    %415 = arith.index_cast %414 : i32 to index
    %c0_139 = arith.constant 0 : index
    %c0_140 = arith.constant 0 : index
    %416 = vector.load %arg10[%415, %c0_139, %c0_140] : memref<8x2x32xf32, #tpu.memory_space<vmem>>, vector<1x2x32xf32>
    %417 = vector.shape_cast %416 : vector<1x2x32xf32> to vector<2x32xf32>
    %418 = vector.shape_cast %405 : vector<2x32xf32> to vector<1x2x32xf32>
    tpu.vector_store %arg10[%415, %c0_139, %c0_140], %418 {strides = array<i32>} : memref<8x2x32xf32, #tpu.memory_space<vmem>>, vector<1x2x32xf32>,
    %c5_i32 = arith.constant 5 : i32
    %c0_141 = arith.constant 0 : index
    %c0_142 = arith.constant 0 : index
    %419 = vector.load %arg11[%c0_141, %c0_142] : memref<2x64xf32, #tpu.memory_space<vmem>>, vector<2x64xf32>
    %cst_143 = arith.constant dense<0.000000e+00> : vector<2x256xf32>
    %420 = tpu.matmul %419, %13, %cst_143 {dimension_numbers = #tpu.dot_dimension_numbers<[1], [0], [0], [1], [0, 0, 1, 1], [], []>} : vector<2x64xf32>, vector<64x256xf32>, vector<2x256xf32> -> vector<2x256xf32>
    %421 = arith.index_cast %c5_i32 : i32 to index
    %c0_144 = arith.constant 0 : index
    %c0_145 = arith.constant 0 : index
    %422 = vector.load %arg8[%421, %c0_144, %c0_145] : memref<8x2x256xf32, #tpu.memory_space<vmem>>, vector<1x2x256xf32>
    %423 = vector.shape_cast %422 : vector<1x2x256xf32> to vector<2x256xf32>
    %c7_i32_146 = arith.constant 7 : i32
    %424 = arith.subi %c7_i32_146, %c5_i32 : i32
    %425 = arith.index_cast %424 : i32 to index
    %c0_147 = arith.constant 0 : index
    %c0_148 = arith.constant 0 : index
    %426 = vector.load %arg8[%425, %c0_147, %c0_148] : memref<8x2x256xf32, #tpu.memory_space<vmem>>, vector<1x2x256xf32>
    %427 = vector.shape_cast %426 : vector<1x2x256xf32> to vector<2x256xf32>
    %428 = vector.extract_strided_slice %423 {offsets = [0, 0], sizes = [2, 128], strides = [1, 1]} : vector<2x256xf32> to vector<2x128xf32>
    %429 = vector.extract_strided_slice %420 {offsets = [0, 0], sizes = [2, 128], strides = [1, 1]} : vector<2x256xf32> to vector<2x128xf32>
    %430 = arith.addf %428, %429 : vector<2x128xf32>
    %431 = vector.extract_strided_slice %427 {offsets = [0, 128], sizes = [2, 128], strides = [1, 1]} : vector<2x256xf32> to vector<2x128xf32>
    %432 = vector.extract_strided_slice %420 {offsets = [0, 128], sizes = [2, 128], strides = [1, 1]} : vector<2x256xf32> to vector<2x128xf32>
    %433 = arith.addf %431, %432 : vector<2x128xf32>
    %c0_149 = arith.constant 0 : index
    %c0_150 = arith.constant 0 : index
    %434 = vector.load %arg12[%c0_149, %c0_150] : memref<2x64xf32, #tpu.memory_space<vmem>>, vector<2x64xf32>
    %435 = vector.extract_strided_slice %434 {offsets = [0, 0], sizes = [2, 32], strides = [1, 1]} : vector<2x64xf32> to vector<2x32xf32>
    %436 = vector.extract_strided_slice %430 {offsets = [0, 0], sizes = [2, 32], strides = [1, 1]} : vector<2x128xf32> to vector<2x32xf32>
    %437 = arith.negf %436 : vector<2x32xf32>
    %438 = math.exp %437 : vector<2x32xf32>
    %cst_151 = arith.constant 1.000000e+00 : f32
    %439 = vector.broadcast %cst_151 : f32 to vector<2x32xf32>
    %440 = arith.addf %439, %438 : vector<2x32xf32>
    %441 = arith.divf %439, %440 : vector<2x32xf32>
    %442 = vector.extract_strided_slice %430 {offsets = [0, 32], sizes = [2, 32], strides = [1, 1]} : vector<2x128xf32> to vector<2x32xf32>
    %443 = arith.negf %442 : vector<2x32xf32>
    %444 = math.exp %443 : vector<2x32xf32>
    %cst_152 = arith.constant 1.000000e+00 : f32
    %445 = vector.broadcast %cst_152 : f32 to vector<2x32xf32>
    %446 = arith.addf %445, %444 : vector<2x32xf32>
    %447 = arith.divf %445, %446 : vector<2x32xf32>
    %448 = vector.extract_strided_slice %430 {offsets = [0, 64], sizes = [2, 32], strides = [1, 1]} : vector<2x128xf32> to vector<2x32xf32>
    %449 = math.tanh %448 : vector<2x32xf32>
    %450 = vector.extract_strided_slice %430 {offsets = [0, 96], sizes = [2, 32], strides = [1, 1]} : vector<2x128xf32> to vector<2x32xf32>
    %451 = arith.negf %450 : vector<2x32xf32>
    %452 = math.exp %451 : vector<2x32xf32>
    %cst_153 = arith.constant 1.000000e+00 : f32
    %453 = vector.broadcast %cst_153 : f32 to vector<2x32xf32>
    %454 = arith.addf %453, %452 : vector<2x32xf32>
    %455 = arith.divf %453, %454 : vector<2x32xf32>
    %456 = arith.mulf %447, %435 : vector<2x32xf32>
    %457 = arith.mulf %441, %449 : vector<2x32xf32>
    %458 = arith.addf %456, %457 : vector<2x32xf32>
    %459 = math.tanh %458 : vector<2x32xf32>
    %460 = arith.mulf %455, %459 : vector<2x32xf32>
    %461 = vector.extract_strided_slice %434 {offsets = [0, 32], sizes = [2, 32], strides = [1, 1]} : vector<2x64xf32> to vector<2x32xf32>
    %462 = vector.extract_strided_slice %433 {offsets = [0, 0], sizes = [2, 32], strides = [1, 1]} : vector<2x128xf32> to vector<2x32xf32>
    %463 = arith.negf %462 : vector<2x32xf32>
    %464 = math.exp %463 : vector<2x32xf32>
    %cst_154 = arith.constant 1.000000e+00 : f32
    %465 = vector.broadcast %cst_154 : f32 to vector<2x32xf32>
    %466 = arith.addf %465, %464 : vector<2x32xf32>
    %467 = arith.divf %465, %466 : vector<2x32xf32>
    %468 = vector.extract_strided_slice %433 {offsets = [0, 32], sizes = [2, 32], strides = [1, 1]} : vector<2x128xf32> to vector<2x32xf32>
    %469 = arith.negf %468 : vector<2x32xf32>
    %470 = math.exp %469 : vector<2x32xf32>
    %cst_155 = arith.constant 1.000000e+00 : f32
    %471 = vector.broadcast %cst_155 : f32 to vector<2x32xf32>
    %472 = arith.addf %471, %470 : vector<2x32xf32>
    %473 = arith.divf %471, %472 : vector<2x32xf32>
    %474 = vector.extract_strided_slice %433 {offsets = [0, 64], sizes = [2, 32], strides = [1, 1]} : vector<2x128xf32> to vector<2x32xf32>
    %475 = math.tanh %474 : vector<2x32xf32>
    %476 = vector.extract_strided_slice %433 {offsets = [0, 96], sizes = [2, 32], strides = [1, 1]} : vector<2x128xf32> to vector<2x32xf32>
    %477 = arith.negf %476 : vector<2x32xf32>
    %478 = math.exp %477 : vector<2x32xf32>
    %cst_156 = arith.constant 1.000000e+00 : f32
    %479 = vector.broadcast %cst_156 : f32 to vector<2x32xf32>
    %480 = arith.addf %479, %478 : vector<2x32xf32>
    %481 = arith.divf %479, %480 : vector<2x32xf32>
    %482 = arith.mulf %473, %461 : vector<2x32xf32>
    %483 = arith.mulf %467, %475 : vector<2x32xf32>
    %484 = arith.addf %482, %483 : vector<2x32xf32>
    %485 = math.tanh %484 : vector<2x32xf32>
    %486 = arith.mulf %481, %485 : vector<2x32xf32>
    %487 = tpu.concatenate %460, %486 in 1 : vector<2x32xf32>, vector<2x32xf32> -> vector<2x64xf32>
    %c0_157 = arith.constant 0 : index
    %c0_158 = arith.constant 0 : index
    %488 = vector.load %arg11[%c0_157, %c0_158] : memref<2x64xf32, #tpu.memory_space<vmem>>, vector<2x64xf32>
    tpu.vector_store %arg11[%c0_157, %c0_158], %487 {strides = array<i32>} : memref<2x64xf32, #tpu.memory_space<vmem>>, vector<2x64xf32>,
    %489 = tpu.concatenate %458, %484 in 1 : vector<2x32xf32>, vector<2x32xf32> -> vector<2x64xf32>
    %c0_159 = arith.constant 0 : index
    %c0_160 = arith.constant 0 : index
    %490 = vector.load %arg12[%c0_159, %c0_160] : memref<2x64xf32, #tpu.memory_space<vmem>>, vector<2x64xf32>
    tpu.vector_store %arg12[%c0_159, %c0_160], %489 {strides = array<i32>} : memref<2x64xf32, #tpu.memory_space<vmem>>, vector<2x64xf32>,
    %491 = arith.index_cast %c5_i32 : i32 to index
    %c0_161 = arith.constant 0 : index
    %c0_162 = arith.constant 0 : index
    %492 = vector.load %arg9[%491, %c0_161, %c0_162] : memref<8x2x32xf32, #tpu.memory_space<vmem>>, vector<1x2x32xf32>
    %493 = vector.shape_cast %492 : vector<1x2x32xf32> to vector<2x32xf32>
    %494 = vector.shape_cast %460 : vector<2x32xf32> to vector<1x2x32xf32>
    tpu.vector_store %arg9[%491, %c0_161, %c0_162], %494 {strides = array<i32>} : memref<8x2x32xf32, #tpu.memory_space<vmem>>, vector<1x2x32xf32>,
    %c7_i32_163 = arith.constant 7 : i32
    %495 = arith.subi %c7_i32_163, %c5_i32 : i32
    %496 = arith.index_cast %495 : i32 to index
    %c0_164 = arith.constant 0 : index
    %c0_165 = arith.constant 0 : index
    %497 = vector.load %arg10[%496, %c0_164, %c0_165] : memref<8x2x32xf32, #tpu.memory_space<vmem>>, vector<1x2x32xf32>
    %498 = vector.shape_cast %497 : vector<1x2x32xf32> to vector<2x32xf32>
    %499 = vector.shape_cast %486 : vector<2x32xf32> to vector<1x2x32xf32>
    tpu.vector_store %arg10[%496, %c0_164, %c0_165], %499 {strides = array<i32>} : memref<8x2x32xf32, #tpu.memory_space<vmem>>, vector<1x2x32xf32>,
    %c6_i32 = arith.constant 6 : i32
    %c0_166 = arith.constant 0 : index
    %c0_167 = arith.constant 0 : index
    %500 = vector.load %arg11[%c0_166, %c0_167] : memref<2x64xf32, #tpu.memory_space<vmem>>, vector<2x64xf32>
    %cst_168 = arith.constant dense<0.000000e+00> : vector<2x256xf32>
    %501 = tpu.matmul %500, %13, %cst_168 {dimension_numbers = #tpu.dot_dimension_numbers<[1], [0], [0], [1], [0, 0, 1, 1], [], []>} : vector<2x64xf32>, vector<64x256xf32>, vector<2x256xf32> -> vector<2x256xf32>
    %502 = arith.index_cast %c6_i32 : i32 to index
    %c0_169 = arith.constant 0 : index
    %c0_170 = arith.constant 0 : index
    %503 = vector.load %arg8[%502, %c0_169, %c0_170] : memref<8x2x256xf32, #tpu.memory_space<vmem>>, vector<1x2x256xf32>
    %504 = vector.shape_cast %503 : vector<1x2x256xf32> to vector<2x256xf32>
    %c7_i32_171 = arith.constant 7 : i32
    %505 = arith.subi %c7_i32_171, %c6_i32 : i32
    %506 = arith.index_cast %505 : i32 to index
    %c0_172 = arith.constant 0 : index
    %c0_173 = arith.constant 0 : index
    %507 = vector.load %arg8[%506, %c0_172, %c0_173] : memref<8x2x256xf32, #tpu.memory_space<vmem>>, vector<1x2x256xf32>
    %508 = vector.shape_cast %507 : vector<1x2x256xf32> to vector<2x256xf32>
    %509 = vector.extract_strided_slice %504 {offsets = [0, 0], sizes = [2, 128], strides = [1, 1]} : vector<2x256xf32> to vector<2x128xf32>
    %510 = vector.extract_strided_slice %501 {offsets = [0, 0], sizes = [2, 128], strides = [1, 1]} : vector<2x256xf32> to vector<2x128xf32>
    %511 = arith.addf %509, %510 : vector<2x128xf32>
    %512 = vector.extract_strided_slice %508 {offsets = [0, 128], sizes = [2, 128], strides = [1, 1]} : vector<2x256xf32> to vector<2x128xf32>
    %513 = vector.extract_strided_slice %501 {offsets = [0, 128], sizes = [2, 128], strides = [1, 1]} : vector<2x256xf32> to vector<2x128xf32>
    %514 = arith.addf %512, %513 : vector<2x128xf32>
    %c0_174 = arith.constant 0 : index
    %c0_175 = arith.constant 0 : index
    %515 = vector.load %arg12[%c0_174, %c0_175] : memref<2x64xf32, #tpu.memory_space<vmem>>, vector<2x64xf32>
    %516 = vector.extract_strided_slice %515 {offsets = [0, 0], sizes = [2, 32], strides = [1, 1]} : vector<2x64xf32> to vector<2x32xf32>
    %517 = vector.extract_strided_slice %511 {offsets = [0, 0], sizes = [2, 32], strides = [1, 1]} : vector<2x128xf32> to vector<2x32xf32>
    %518 = arith.negf %517 : vector<2x32xf32>
    %519 = math.exp %518 : vector<2x32xf32>
    %cst_176 = arith.constant 1.000000e+00 : f32
    %520 = vector.broadcast %cst_176 : f32 to vector<2x32xf32>
    %521 = arith.addf %520, %519 : vector<2x32xf32>
    %522 = arith.divf %520, %521 : vector<2x32xf32>
    %523 = vector.extract_strided_slice %511 {offsets = [0, 32], sizes = [2, 32], strides = [1, 1]} : vector<2x128xf32> to vector<2x32xf32>
    %524 = arith.negf %523 : vector<2x32xf32>
    %525 = math.exp %524 : vector<2x32xf32>
    %cst_177 = arith.constant 1.000000e+00 : f32
    %526 = vector.broadcast %cst_177 : f32 to vector<2x32xf32>
    %527 = arith.addf %526, %525 : vector<2x32xf32>
    %528 = arith.divf %526, %527 : vector<2x32xf32>
    %529 = vector.extract_strided_slice %511 {offsets = [0, 64], sizes = [2, 32], strides = [1, 1]} : vector<2x128xf32> to vector<2x32xf32>
    %530 = math.tanh %529 : vector<2x32xf32>
    %531 = vector.extract_strided_slice %511 {offsets = [0, 96], sizes = [2, 32], strides = [1, 1]} : vector<2x128xf32> to vector<2x32xf32>
    %532 = arith.negf %531 : vector<2x32xf32>
    %533 = math.exp %532 : vector<2x32xf32>
    %cst_178 = arith.constant 1.000000e+00 : f32
    %534 = vector.broadcast %cst_178 : f32 to vector<2x32xf32>
    %535 = arith.addf %534, %533 : vector<2x32xf32>
    %536 = arith.divf %534, %535 : vector<2x32xf32>
    %537 = arith.mulf %528, %516 : vector<2x32xf32>
    %538 = arith.mulf %522, %530 : vector<2x32xf32>
    %539 = arith.addf %537, %538 : vector<2x32xf32>
    %540 = math.tanh %539 : vector<2x32xf32>
    %541 = arith.mulf %536, %540 : vector<2x32xf32>
    %542 = vector.extract_strided_slice %515 {offsets = [0, 32], sizes = [2, 32], strides = [1, 1]} : vector<2x64xf32> to vector<2x32xf32>
    %543 = vector.extract_strided_slice %514 {offsets = [0, 0], sizes = [2, 32], strides = [1, 1]} : vector<2x128xf32> to vector<2x32xf32>
    %544 = arith.negf %543 : vector<2x32xf32>
    %545 = math.exp %544 : vector<2x32xf32>
    %cst_179 = arith.constant 1.000000e+00 : f32
    %546 = vector.broadcast %cst_179 : f32 to vector<2x32xf32>
    %547 = arith.addf %546, %545 : vector<2x32xf32>
    %548 = arith.divf %546, %547 : vector<2x32xf32>
    %549 = vector.extract_strided_slice %514 {offsets = [0, 32], sizes = [2, 32], strides = [1, 1]} : vector<2x128xf32> to vector<2x32xf32>
    %550 = arith.negf %549 : vector<2x32xf32>
    %551 = math.exp %550 : vector<2x32xf32>
    %cst_180 = arith.constant 1.000000e+00 : f32
    %552 = vector.broadcast %cst_180 : f32 to vector<2x32xf32>
    %553 = arith.addf %552, %551 : vector<2x32xf32>
    %554 = arith.divf %552, %553 : vector<2x32xf32>
    %555 = vector.extract_strided_slice %514 {offsets = [0, 64], sizes = [2, 32], strides = [1, 1]} : vector<2x128xf32> to vector<2x32xf32>
    %556 = math.tanh %555 : vector<2x32xf32>
    %557 = vector.extract_strided_slice %514 {offsets = [0, 96], sizes = [2, 32], strides = [1, 1]} : vector<2x128xf32> to vector<2x32xf32>
    %558 = arith.negf %557 : vector<2x32xf32>
    %559 = math.exp %558 : vector<2x32xf32>
    %cst_181 = arith.constant 1.000000e+00 : f32
    %560 = vector.broadcast %cst_181 : f32 to vector<2x32xf32>
    %561 = arith.addf %560, %559 : vector<2x32xf32>
    %562 = arith.divf %560, %561 : vector<2x32xf32>
    %563 = arith.mulf %554, %542 : vector<2x32xf32>
    %564 = arith.mulf %548, %556 : vector<2x32xf32>
    %565 = arith.addf %563, %564 : vector<2x32xf32>
    %566 = math.tanh %565 : vector<2x32xf32>
    %567 = arith.mulf %562, %566 : vector<2x32xf32>
    %568 = tpu.concatenate %541, %567 in 1 : vector<2x32xf32>, vector<2x32xf32> -> vector<2x64xf32>
    %c0_182 = arith.constant 0 : index
    %c0_183 = arith.constant 0 : index
    %569 = vector.load %arg11[%c0_182, %c0_183] : memref<2x64xf32, #tpu.memory_space<vmem>>, vector<2x64xf32>
    tpu.vector_store %arg11[%c0_182, %c0_183], %568 {strides = array<i32>} : memref<2x64xf32, #tpu.memory_space<vmem>>, vector<2x64xf32>,
    %570 = tpu.concatenate %539, %565 in 1 : vector<2x32xf32>, vector<2x32xf32> -> vector<2x64xf32>
    %c0_184 = arith.constant 0 : index
    %c0_185 = arith.constant 0 : index
    %571 = vector.load %arg12[%c0_184, %c0_185] : memref<2x64xf32, #tpu.memory_space<vmem>>, vector<2x64xf32>
    tpu.vector_store %arg12[%c0_184, %c0_185], %570 {strides = array<i32>} : memref<2x64xf32, #tpu.memory_space<vmem>>, vector<2x64xf32>,
    %572 = arith.index_cast %c6_i32 : i32 to index
    %c0_186 = arith.constant 0 : index
    %c0_187 = arith.constant 0 : index
    %573 = vector.load %arg9[%572, %c0_186, %c0_187] : memref<8x2x32xf32, #tpu.memory_space<vmem>>, vector<1x2x32xf32>
    %574 = vector.shape_cast %573 : vector<1x2x32xf32> to vector<2x32xf32>
    %575 = vector.shape_cast %541 : vector<2x32xf32> to vector<1x2x32xf32>
    tpu.vector_store %arg9[%572, %c0_186, %c0_187], %575 {strides = array<i32>} : memref<8x2x32xf32, #tpu.memory_space<vmem>>, vector<1x2x32xf32>,
    %c7_i32_188 = arith.constant 7 : i32
    %576 = arith.subi %c7_i32_188, %c6_i32 : i32
    %577 = arith.index_cast %576 : i32 to index
    %c0_189 = arith.constant 0 : index
    %c0_190 = arith.constant 0 : index
    %578 = vector.load %arg10[%577, %c0_189, %c0_190] : memref<8x2x32xf32, #tpu.memory_space<vmem>>, vector<1x2x32xf32>
    %579 = vector.shape_cast %578 : vector<1x2x32xf32> to vector<2x32xf32>
    %580 = vector.shape_cast %567 : vector<2x32xf32> to vector<1x2x32xf32>
    tpu.vector_store %arg10[%577, %c0_189, %c0_190], %580 {strides = array<i32>} : memref<8x2x32xf32, #tpu.memory_space<vmem>>, vector<1x2x32xf32>,
    %c7_i32_191 = arith.constant 7 : i32
    %c0_192 = arith.constant 0 : index
    %c0_193 = arith.constant 0 : index
    %581 = vector.load %arg11[%c0_192, %c0_193] : memref<2x64xf32, #tpu.memory_space<vmem>>, vector<2x64xf32>
    %cst_194 = arith.constant dense<0.000000e+00> : vector<2x256xf32>
    %582 = tpu.matmul %581, %13, %cst_194 {dimension_numbers = #tpu.dot_dimension_numbers<[1], [0], [0], [1], [0, 0, 1, 1], [], []>} : vector<2x64xf32>, vector<64x256xf32>, vector<2x256xf32> -> vector<2x256xf32>
    %583 = arith.index_cast %c7_i32_191 : i32 to index
    %c0_195 = arith.constant 0 : index
    %c0_196 = arith.constant 0 : index
    %584 = vector.load %arg8[%583, %c0_195, %c0_196] : memref<8x2x256xf32, #tpu.memory_space<vmem>>, vector<1x2x256xf32>
    %585 = vector.shape_cast %584 : vector<1x2x256xf32> to vector<2x256xf32>
    %c7_i32_197 = arith.constant 7 : i32
    %586 = arith.subi %c7_i32_197, %c7_i32_191 : i32
    %587 = arith.index_cast %586 : i32 to index
    %c0_198 = arith.constant 0 : index
    %c0_199 = arith.constant 0 : index
    %588 = vector.load %arg8[%587, %c0_198, %c0_199] : memref<8x2x256xf32, #tpu.memory_space<vmem>>, vector<1x2x256xf32>
    %589 = vector.shape_cast %588 : vector<1x2x256xf32> to vector<2x256xf32>
    %590 = vector.extract_strided_slice %585 {offsets = [0, 0], sizes = [2, 128], strides = [1, 1]} : vector<2x256xf32> to vector<2x128xf32>
    %591 = vector.extract_strided_slice %582 {offsets = [0, 0], sizes = [2, 128], strides = [1, 1]} : vector<2x256xf32> to vector<2x128xf32>
    %592 = arith.addf %590, %591 : vector<2x128xf32>
    %593 = vector.extract_strided_slice %589 {offsets = [0, 128], sizes = [2, 128], strides = [1, 1]} : vector<2x256xf32> to vector<2x128xf32>
    %594 = vector.extract_strided_slice %582 {offsets = [0, 128], sizes = [2, 128], strides = [1, 1]} : vector<2x256xf32> to vector<2x128xf32>
    %595 = arith.addf %593, %594 : vector<2x128xf32>
    %c0_200 = arith.constant 0 : index
    %c0_201 = arith.constant 0 : index
    %596 = vector.load %arg12[%c0_200, %c0_201] : memref<2x64xf32, #tpu.memory_space<vmem>>, vector<2x64xf32>
    %597 = vector.extract_strided_slice %596 {offsets = [0, 0], sizes = [2, 32], strides = [1, 1]} : vector<2x64xf32> to vector<2x32xf32>
    %598 = vector.extract_strided_slice %592 {offsets = [0, 0], sizes = [2, 32], strides = [1, 1]} : vector<2x128xf32> to vector<2x32xf32>
    %599 = arith.negf %598 : vector<2x32xf32>
    %600 = math.exp %599 : vector<2x32xf32>
    %cst_202 = arith.constant 1.000000e+00 : f32
    %601 = vector.broadcast %cst_202 : f32 to vector<2x32xf32>
    %602 = arith.addf %601, %600 : vector<2x32xf32>
    %603 = arith.divf %601, %602 : vector<2x32xf32>
    %604 = vector.extract_strided_slice %592 {offsets = [0, 32], sizes = [2, 32], strides = [1, 1]} : vector<2x128xf32> to vector<2x32xf32>
    %605 = arith.negf %604 : vector<2x32xf32>
    %606 = math.exp %605 : vector<2x32xf32>
    %cst_203 = arith.constant 1.000000e+00 : f32
    %607 = vector.broadcast %cst_203 : f32 to vector<2x32xf32>
    %608 = arith.addf %607, %606 : vector<2x32xf32>
    %609 = arith.divf %607, %608 : vector<2x32xf32>
    %610 = vector.extract_strided_slice %592 {offsets = [0, 64], sizes = [2, 32], strides = [1, 1]} : vector<2x128xf32> to vector<2x32xf32>
    %611 = math.tanh %610 : vector<2x32xf32>
    %612 = vector.extract_strided_slice %592 {offsets = [0, 96], sizes = [2, 32], strides = [1, 1]} : vector<2x128xf32> to vector<2x32xf32>
    %613 = arith.negf %612 : vector<2x32xf32>
    %614 = math.exp %613 : vector<2x32xf32>
    %cst_204 = arith.constant 1.000000e+00 : f32
    %615 = vector.broadcast %cst_204 : f32 to vector<2x32xf32>
    %616 = arith.addf %615, %614 : vector<2x32xf32>
    %617 = arith.divf %615, %616 : vector<2x32xf32>
    %618 = arith.mulf %609, %597 : vector<2x32xf32>
    %619 = arith.mulf %603, %611 : vector<2x32xf32>
    %620 = arith.addf %618, %619 : vector<2x32xf32>
    %621 = math.tanh %620 : vector<2x32xf32>
    %622 = arith.mulf %617, %621 : vector<2x32xf32>
    %623 = vector.extract_strided_slice %596 {offsets = [0, 32], sizes = [2, 32], strides = [1, 1]} : vector<2x64xf32> to vector<2x32xf32>
    %624 = vector.extract_strided_slice %595 {offsets = [0, 0], sizes = [2, 32], strides = [1, 1]} : vector<2x128xf32> to vector<2x32xf32>
    %625 = arith.negf %624 : vector<2x32xf32>
    %626 = math.exp %625 : vector<2x32xf32>
    %cst_205 = arith.constant 1.000000e+00 : f32
    %627 = vector.broadcast %cst_205 : f32 to vector<2x32xf32>
    %628 = arith.addf %627, %626 : vector<2x32xf32>
    %629 = arith.divf %627, %628 : vector<2x32xf32>
    %630 = vector.extract_strided_slice %595 {offsets = [0, 32], sizes = [2, 32], strides = [1, 1]} : vector<2x128xf32> to vector<2x32xf32>
    %631 = arith.negf %630 : vector<2x32xf32>
    %632 = math.exp %631 : vector<2x32xf32>
    %cst_206 = arith.constant 1.000000e+00 : f32
    %633 = vector.broadcast %cst_206 : f32 to vector<2x32xf32>
    %634 = arith.addf %633, %632 : vector<2x32xf32>
    %635 = arith.divf %633, %634 : vector<2x32xf32>
    %636 = vector.extract_strided_slice %595 {offsets = [0, 64], sizes = [2, 32], strides = [1, 1]} : vector<2x128xf32> to vector<2x32xf32>
    %637 = math.tanh %636 : vector<2x32xf32>
    %638 = vector.extract_strided_slice %595 {offsets = [0, 96], sizes = [2, 32], strides = [1, 1]} : vector<2x128xf32> to vector<2x32xf32>
    %639 = arith.negf %638 : vector<2x32xf32>
    %640 = math.exp %639 : vector<2x32xf32>
    %cst_207 = arith.constant 1.000000e+00 : f32
    %641 = vector.broadcast %cst_207 : f32 to vector<2x32xf32>
    %642 = arith.addf %641, %640 : vector<2x32xf32>
    %643 = arith.divf %641, %642 : vector<2x32xf32>
    %644 = arith.mulf %635, %623 : vector<2x32xf32>
    %645 = arith.mulf %629, %637 : vector<2x32xf32>
    %646 = arith.addf %644, %645 : vector<2x32xf32>
    %647 = math.tanh %646 : vector<2x32xf32>
    %648 = arith.mulf %643, %647 : vector<2x32xf32>
    %649 = tpu.concatenate %622, %648 in 1 : vector<2x32xf32>, vector<2x32xf32> -> vector<2x64xf32>
    %c0_208 = arith.constant 0 : index
    %c0_209 = arith.constant 0 : index
    %650 = vector.load %arg11[%c0_208, %c0_209] : memref<2x64xf32, #tpu.memory_space<vmem>>, vector<2x64xf32>
    tpu.vector_store %arg11[%c0_208, %c0_209], %649 {strides = array<i32>} : memref<2x64xf32, #tpu.memory_space<vmem>>, vector<2x64xf32>,
    %651 = tpu.concatenate %620, %646 in 1 : vector<2x32xf32>, vector<2x32xf32> -> vector<2x64xf32>
    %c0_210 = arith.constant 0 : index
    %c0_211 = arith.constant 0 : index
    %652 = vector.load %arg12[%c0_210, %c0_211] : memref<2x64xf32, #tpu.memory_space<vmem>>, vector<2x64xf32>
    tpu.vector_store %arg12[%c0_210, %c0_211], %651 {strides = array<i32>} : memref<2x64xf32, #tpu.memory_space<vmem>>, vector<2x64xf32>,
    %653 = arith.index_cast %c7_i32_191 : i32 to index
    %c0_212 = arith.constant 0 : index
    %c0_213 = arith.constant 0 : index
    %654 = vector.load %arg9[%653, %c0_212, %c0_213] : memref<8x2x32xf32, #tpu.memory_space<vmem>>, vector<1x2x32xf32>
    %655 = vector.shape_cast %654 : vector<1x2x32xf32> to vector<2x32xf32>
    %656 = vector.shape_cast %622 : vector<2x32xf32> to vector<1x2x32xf32>
    tpu.vector_store %arg9[%653, %c0_212, %c0_213], %656 {strides = array<i32>} : memref<8x2x32xf32, #tpu.memory_space<vmem>>, vector<1x2x32xf32>,
    %c7_i32_214 = arith.constant 7 : i32
    %657 = arith.subi %c7_i32_214, %c7_i32_191 : i32
    %658 = arith.index_cast %657 : i32 to index
    %c0_215 = arith.constant 0 : index
    %c0_216 = arith.constant 0 : index
    %659 = vector.load %arg10[%658, %c0_215, %c0_216] : memref<8x2x32xf32, #tpu.memory_space<vmem>>, vector<1x2x32xf32>
    %660 = vector.shape_cast %659 : vector<1x2x32xf32> to vector<2x32xf32>
    %661 = vector.shape_cast %648 : vector<2x32xf32> to vector<1x2x32xf32>
    tpu.vector_store %arg10[%658, %c0_215, %c0_216], %661 {strides = array<i32>} : memref<8x2x32xf32, #tpu.memory_space<vmem>>, vector<1x2x32xf32>,
    %c8_i32 = arith.constant 8 : i32
    %c0_217 = arith.constant 0 : index
    %c0_218 = arith.constant 0 : index
    %662 = vector.load %arg4[%c0_217, %c0_218] : memref<64x256xf32, #tpu.memory_space<vmem>>, vector<64x256xf32>
    %c0_219 = arith.constant 0 : index
    %c0_220 = arith.constant 0 : index
    %c0_221 = arith.constant 0 : index
    %663 = vector.load %arg9[%c0_219, %c0_220, %c0_221] : memref<8x2x32xf32, #tpu.memory_space<vmem>>, vector<8x2x32xf32>
    %664 = vector.shape_cast %663 : vector<8x2x32xf32> to vector<16x32xf32>
    %c0_222 = arith.constant 0 : index
    %c0_223 = arith.constant 0 : index
    %c0_224 = arith.constant 0 : index
    %665 = vector.load %arg10[%c0_222, %c0_223, %c0_224] : memref<8x2x32xf32, #tpu.memory_space<vmem>>, vector<8x2x32xf32>
    %666 = vector.shape_cast %665 : vector<8x2x32xf32> to vector<16x32xf32>
    %667 = vector.extract_strided_slice %662 {offsets = [0, 0], sizes = [32, 256], strides = [1, 1]} : vector<64x256xf32> to vector<32x256xf32>
    %cst_225 = arith.constant dense<0.000000e+00> : vector<16x256xf32>
    %668 = tpu.matmul %664, %667, %cst_225 {dimension_numbers = #tpu.dot_dimension_numbers<[1], [0], [0], [1], [0, 0, 1, 1], [], []>} : vector<16x32xf32>, vector<32x256xf32>, vector<16x256xf32> -> vector<16x256xf32>
    %669 = vector.extract_strided_slice %662 {offsets = [32, 0], sizes = [32, 256], strides = [1, 1]} : vector<64x256xf32> to vector<32x256xf32>
    %cst_226 = arith.constant dense<0.000000e+00> : vector<16x256xf32>
    %670 = tpu.matmul %666, %669, %cst_226 {dimension_numbers = #tpu.dot_dimension_numbers<[1], [0], [0], [1], [0, 0, 1, 1], [], []>} : vector<16x32xf32>, vector<32x256xf32>, vector<16x256xf32> -> vector<16x256xf32>
    %671 = arith.addf %668, %670 : vector<16x256xf32>
    %c0_227 = arith.constant 0 : index
    %c0_228 = arith.constant 0 : index
    %672 = vector.load %arg6[%c0_227, %c0_228] : memref<1x256xf32, #tpu.memory_space<vmem>>, vector<1x256xf32>
    %673 = vector.broadcast %672 : vector<1x256xf32> to vector<16x256xf32>
    %674 = arith.addf %671, %673 : vector<16x256xf32>
    %675 = vector.shape_cast %674 : vector<16x256xf32> to vector<8x2x256xf32>
    %c0_229 = arith.constant 0 : index
    %c0_230 = arith.constant 0 : index
    %c0_231 = arith.constant 0 : index
    %676 = vector.load %arg8[%c0_229, %c0_230, %c0_231] : memref<8x2x256xf32, #tpu.memory_space<vmem>>, vector<8x2x256xf32>
    tpu.vector_store %arg8[%c0_229, %c0_230, %c0_231], %675 {strides = array<i32>} : memref<8x2x256xf32, #tpu.memory_space<vmem>>, vector<8x2x256xf32>,
    %cst_232 = arith.constant 0.000000e+00 : f32
    %677 = vector.broadcast %cst_232 : f32 to vector<2x64xf32>
    %c0_233 = arith.constant 0 : index
    %c0_234 = arith.constant 0 : index
    %678 = vector.load %arg11[%c0_233, %c0_234] : memref<2x64xf32, #tpu.memory_space<vmem>>, vector<2x64xf32>
    tpu.vector_store %arg11[%c0_233, %c0_234], %677 {strides = array<i32>} : memref<2x64xf32, #tpu.memory_space<vmem>>, vector<2x64xf32>,
    %cst_235 = arith.constant 0.000000e+00 : f32
    %679 = vector.broadcast %cst_235 : f32 to vector<2x64xf32>
    %c0_236 = arith.constant 0 : index
    %c0_237 = arith.constant 0 : index
    %680 = vector.load %arg12[%c0_236, %c0_237] : memref<2x64xf32, #tpu.memory_space<vmem>>, vector<2x64xf32>
    tpu.vector_store %arg12[%c0_236, %c0_237], %679 {strides = array<i32>} : memref<2x64xf32, #tpu.memory_space<vmem>>, vector<2x64xf32>,
    %c0_238 = arith.constant 0 : index
    %c0_239 = arith.constant 0 : index
    %681 = vector.load %arg5[%c0_238, %c0_239] : memref<64x256xf32, #tpu.memory_space<vmem>>, vector<64x256xf32>
    %c0_i32_240 = arith.constant 0 : i32
    %c0_241 = arith.constant 0 : index
    %c0_242 = arith.constant 0 : index
    %682 = vector.load %arg11[%c0_241, %c0_242] : memref<2x64xf32, #tpu.memory_space<vmem>>, vector<2x64xf32>
    %cst_243 = arith.constant dense<0.000000e+00> : vector<2x256xf32>
    %683 = tpu.matmul %682, %681, %cst_243 {dimension_numbers = #tpu.dot_dimension_numbers<[1], [0], [0], [1], [0, 0, 1, 1], [], []>} : vector<2x64xf32>, vector<64x256xf32>, vector<2x256xf32> -> vector<2x256xf32>
    %684 = arith.index_cast %c0_i32_240 : i32 to index
    %c0_244 = arith.constant 0 : index
    %c0_245 = arith.constant 0 : index
    %685 = vector.load %arg8[%684, %c0_244, %c0_245] : memref<8x2x256xf32, #tpu.memory_space<vmem>>, vector<1x2x256xf32>
    %686 = vector.shape_cast %685 : vector<1x2x256xf32> to vector<2x256xf32>
    %c7_i32_246 = arith.constant 7 : i32
    %687 = arith.subi %c7_i32_246, %c0_i32_240 : i32
    %688 = arith.index_cast %687 : i32 to index
    %c0_247 = arith.constant 0 : index
    %c0_248 = arith.constant 0 : index
    %689 = vector.load %arg8[%688, %c0_247, %c0_248] : memref<8x2x256xf32, #tpu.memory_space<vmem>>, vector<1x2x256xf32>
    %690 = vector.shape_cast %689 : vector<1x2x256xf32> to vector<2x256xf32>
    %691 = vector.extract_strided_slice %686 {offsets = [0, 0], sizes = [2, 128], strides = [1, 1]} : vector<2x256xf32> to vector<2x128xf32>
    %692 = vector.extract_strided_slice %683 {offsets = [0, 0], sizes = [2, 128], strides = [1, 1]} : vector<2x256xf32> to vector<2x128xf32>
    %693 = arith.addf %691, %692 : vector<2x128xf32>
    %694 = vector.extract_strided_slice %690 {offsets = [0, 128], sizes = [2, 128], strides = [1, 1]} : vector<2x256xf32> to vector<2x128xf32>
    %695 = vector.extract_strided_slice %683 {offsets = [0, 128], sizes = [2, 128], strides = [1, 1]} : vector<2x256xf32> to vector<2x128xf32>
    %696 = arith.addf %694, %695 : vector<2x128xf32>
    %c0_249 = arith.constant 0 : index
    %c0_250 = arith.constant 0 : index
    %697 = vector.load %arg12[%c0_249, %c0_250] : memref<2x64xf32, #tpu.memory_space<vmem>>, vector<2x64xf32>
    %698 = vector.extract_strided_slice %697 {offsets = [0, 0], sizes = [2, 32], strides = [1, 1]} : vector<2x64xf32> to vector<2x32xf32>
    %699 = vector.extract_strided_slice %693 {offsets = [0, 0], sizes = [2, 32], strides = [1, 1]} : vector<2x128xf32> to vector<2x32xf32>
    %700 = arith.negf %699 : vector<2x32xf32>
    %701 = math.exp %700 : vector<2x32xf32>
    %cst_251 = arith.constant 1.000000e+00 : f32
    %702 = vector.broadcast %cst_251 : f32 to vector<2x32xf32>
    %703 = arith.addf %702, %701 : vector<2x32xf32>
    %704 = arith.divf %702, %703 : vector<2x32xf32>
    %705 = vector.extract_strided_slice %693 {offsets = [0, 32], sizes = [2, 32], strides = [1, 1]} : vector<2x128xf32> to vector<2x32xf32>
    %706 = arith.negf %705 : vector<2x32xf32>
    %707 = math.exp %706 : vector<2x32xf32>
    %cst_252 = arith.constant 1.000000e+00 : f32
    %708 = vector.broadcast %cst_252 : f32 to vector<2x32xf32>
    %709 = arith.addf %708, %707 : vector<2x32xf32>
    %710 = arith.divf %708, %709 : vector<2x32xf32>
    %711 = vector.extract_strided_slice %693 {offsets = [0, 64], sizes = [2, 32], strides = [1, 1]} : vector<2x128xf32> to vector<2x32xf32>
    %712 = math.tanh %711 : vector<2x32xf32>
    %713 = vector.extract_strided_slice %693 {offsets = [0, 96], sizes = [2, 32], strides = [1, 1]} : vector<2x128xf32> to vector<2x32xf32>
    %714 = arith.negf %713 : vector<2x32xf32>
    %715 = math.exp %714 : vector<2x32xf32>
    %cst_253 = arith.constant 1.000000e+00 : f32
    %716 = vector.broadcast %cst_253 : f32 to vector<2x32xf32>
    %717 = arith.addf %716, %715 : vector<2x32xf32>
    %718 = arith.divf %716, %717 : vector<2x32xf32>
    %719 = arith.mulf %710, %698 : vector<2x32xf32>
    %720 = arith.mulf %704, %712 : vector<2x32xf32>
    %721 = arith.addf %719, %720 : vector<2x32xf32>
    %722 = math.tanh %721 : vector<2x32xf32>
    %723 = arith.mulf %718, %722 : vector<2x32xf32>
    %724 = vector.extract_strided_slice %697 {offsets = [0, 32], sizes = [2, 32], strides = [1, 1]} : vector<2x64xf32> to vector<2x32xf32>
    %725 = vector.extract_strided_slice %696 {offsets = [0, 0], sizes = [2, 32], strides = [1, 1]} : vector<2x128xf32> to vector<2x32xf32>
    %726 = arith.negf %725 : vector<2x32xf32>
    %727 = math.exp %726 : vector<2x32xf32>
    %cst_254 = arith.constant 1.000000e+00 : f32
    %728 = vector.broadcast %cst_254 : f32 to vector<2x32xf32>
    %729 = arith.addf %728, %727 : vector<2x32xf32>
    %730 = arith.divf %728, %729 : vector<2x32xf32>
    %731 = vector.extract_strided_slice %696 {offsets = [0, 32], sizes = [2, 32], strides = [1, 1]} : vector<2x128xf32> to vector<2x32xf32>
    %732 = arith.negf %731 : vector<2x32xf32>
    %733 = math.exp %732 : vector<2x32xf32>
    %cst_255 = arith.constant 1.000000e+00 : f32
    %734 = vector.broadcast %cst_255 : f32 to vector<2x32xf32>
    %735 = arith.addf %734, %733 : vector<2x32xf32>
    %736 = arith.divf %734, %735 : vector<2x32xf32>
    %737 = vector.extract_strided_slice %696 {offsets = [0, 64], sizes = [2, 32], strides = [1, 1]} : vector<2x128xf32> to vector<2x32xf32>
    %738 = math.tanh %737 : vector<2x32xf32>
    %739 = vector.extract_strided_slice %696 {offsets = [0, 96], sizes = [2, 32], strides = [1, 1]} : vector<2x128xf32> to vector<2x32xf32>
    %740 = arith.negf %739 : vector<2x32xf32>
    %741 = math.exp %740 : vector<2x32xf32>
    %cst_256 = arith.constant 1.000000e+00 : f32
    %742 = vector.broadcast %cst_256 : f32 to vector<2x32xf32>
    %743 = arith.addf %742, %741 : vector<2x32xf32>
    %744 = arith.divf %742, %743 : vector<2x32xf32>
    %745 = arith.mulf %736, %724 : vector<2x32xf32>
    %746 = arith.mulf %730, %738 : vector<2x32xf32>
    %747 = arith.addf %745, %746 : vector<2x32xf32>
    %748 = math.tanh %747 : vector<2x32xf32>
    %749 = arith.mulf %744, %748 : vector<2x32xf32>
    %750 = tpu.concatenate %723, %749 in 1 : vector<2x32xf32>, vector<2x32xf32> -> vector<2x64xf32>
    %c0_257 = arith.constant 0 : index
    %c0_258 = arith.constant 0 : index
    %751 = vector.load %arg11[%c0_257, %c0_258] : memref<2x64xf32, #tpu.memory_space<vmem>>, vector<2x64xf32>
    tpu.vector_store %arg11[%c0_257, %c0_258], %750 {strides = array<i32>} : memref<2x64xf32, #tpu.memory_space<vmem>>, vector<2x64xf32>,
    %752 = tpu.concatenate %721, %747 in 1 : vector<2x32xf32>, vector<2x32xf32> -> vector<2x64xf32>
    %c0_259 = arith.constant 0 : index
    %c0_260 = arith.constant 0 : index
    %753 = vector.load %arg12[%c0_259, %c0_260] : memref<2x64xf32, #tpu.memory_space<vmem>>, vector<2x64xf32>
    tpu.vector_store %arg12[%c0_259, %c0_260], %752 {strides = array<i32>} : memref<2x64xf32, #tpu.memory_space<vmem>>, vector<2x64xf32>,
    %754 = arith.index_cast %c0_i32_240 : i32 to index
    %c0_261 = arith.constant 0 : index
    %c0_262 = arith.constant 0 : index
    %755 = vector.load %arg9[%754, %c0_261, %c0_262] : memref<8x2x32xf32, #tpu.memory_space<vmem>>, vector<1x2x32xf32>
    %756 = vector.shape_cast %755 : vector<1x2x32xf32> to vector<2x32xf32>
    %757 = vector.shape_cast %723 : vector<2x32xf32> to vector<1x2x32xf32>
    tpu.vector_store %arg9[%754, %c0_261, %c0_262], %757 {strides = array<i32>} : memref<8x2x32xf32, #tpu.memory_space<vmem>>, vector<1x2x32xf32>,
    %c7_i32_263 = arith.constant 7 : i32
    %758 = arith.subi %c7_i32_263, %c0_i32_240 : i32
    %759 = arith.index_cast %758 : i32 to index
    %c0_264 = arith.constant 0 : index
    %c0_265 = arith.constant 0 : index
    %760 = vector.load %arg10[%759, %c0_264, %c0_265] : memref<8x2x32xf32, #tpu.memory_space<vmem>>, vector<1x2x32xf32>
    %761 = vector.shape_cast %760 : vector<1x2x32xf32> to vector<2x32xf32>
    %762 = vector.shape_cast %749 : vector<2x32xf32> to vector<1x2x32xf32>
    tpu.vector_store %arg10[%759, %c0_264, %c0_265], %762 {strides = array<i32>} : memref<8x2x32xf32, #tpu.memory_space<vmem>>, vector<1x2x32xf32>,
    %c1_i32_266 = arith.constant 1 : i32
    %c0_267 = arith.constant 0 : index
    %c0_268 = arith.constant 0 : index
    %763 = vector.load %arg11[%c0_267, %c0_268] : memref<2x64xf32, #tpu.memory_space<vmem>>, vector<2x64xf32>
    %cst_269 = arith.constant dense<0.000000e+00> : vector<2x256xf32>
    %764 = tpu.matmul %763, %681, %cst_269 {dimension_numbers = #tpu.dot_dimension_numbers<[1], [0], [0], [1], [0, 0, 1, 1], [], []>} : vector<2x64xf32>, vector<64x256xf32>, vector<2x256xf32> -> vector<2x256xf32>
    %765 = arith.index_cast %c1_i32_266 : i32 to index
    %c0_270 = arith.constant 0 : index
    %c0_271 = arith.constant 0 : index
    %766 = vector.load %arg8[%765, %c0_270, %c0_271] : memref<8x2x256xf32, #tpu.memory_space<vmem>>, vector<1x2x256xf32>
    %767 = vector.shape_cast %766 : vector<1x2x256xf32> to vector<2x256xf32>
    %c7_i32_272 = arith.constant 7 : i32
    %768 = arith.subi %c7_i32_272, %c1_i32_266 : i32
    %769 = arith.index_cast %768 : i32 to index
    %c0_273 = arith.constant 0 : index
    %c0_274 = arith.constant 0 : index
    %770 = vector.load %arg8[%769, %c0_273, %c0_274] : memref<8x2x256xf32, #tpu.memory_space<vmem>>, vector<1x2x256xf32>
    %771 = vector.shape_cast %770 : vector<1x2x256xf32> to vector<2x256xf32>
    %772 = vector.extract_strided_slice %767 {offsets = [0, 0], sizes = [2, 128], strides = [1, 1]} : vector<2x256xf32> to vector<2x128xf32>
    %773 = vector.extract_strided_slice %764 {offsets = [0, 0], sizes = [2, 128], strides = [1, 1]} : vector<2x256xf32> to vector<2x128xf32>
    %774 = arith.addf %772, %773 : vector<2x128xf32>
    %775 = vector.extract_strided_slice %771 {offsets = [0, 128], sizes = [2, 128], strides = [1, 1]} : vector<2x256xf32> to vector<2x128xf32>
    %776 = vector.extract_strided_slice %764 {offsets = [0, 128], sizes = [2, 128], strides = [1, 1]} : vector<2x256xf32> to vector<2x128xf32>
    %777 = arith.addf %775, %776 : vector<2x128xf32>
    %c0_275 = arith.constant 0 : index
    %c0_276 = arith.constant 0 : index
    %778 = vector.load %arg12[%c0_275, %c0_276] : memref<2x64xf32, #tpu.memory_space<vmem>>, vector<2x64xf32>
    %779 = vector.extract_strided_slice %778 {offsets = [0, 0], sizes = [2, 32], strides = [1, 1]} : vector<2x64xf32> to vector<2x32xf32>
    %780 = vector.extract_strided_slice %774 {offsets = [0, 0], sizes = [2, 32], strides = [1, 1]} : vector<2x128xf32> to vector<2x32xf32>
    %781 = arith.negf %780 : vector<2x32xf32>
    %782 = math.exp %781 : vector<2x32xf32>
    %cst_277 = arith.constant 1.000000e+00 : f32
    %783 = vector.broadcast %cst_277 : f32 to vector<2x32xf32>
    %784 = arith.addf %783, %782 : vector<2x32xf32>
    %785 = arith.divf %783, %784 : vector<2x32xf32>
    %786 = vector.extract_strided_slice %774 {offsets = [0, 32], sizes = [2, 32], strides = [1, 1]} : vector<2x128xf32> to vector<2x32xf32>
    %787 = arith.negf %786 : vector<2x32xf32>
    %788 = math.exp %787 : vector<2x32xf32>
    %cst_278 = arith.constant 1.000000e+00 : f32
    %789 = vector.broadcast %cst_278 : f32 to vector<2x32xf32>
    %790 = arith.addf %789, %788 : vector<2x32xf32>
    %791 = arith.divf %789, %790 : vector<2x32xf32>
    %792 = vector.extract_strided_slice %774 {offsets = [0, 64], sizes = [2, 32], strides = [1, 1]} : vector<2x128xf32> to vector<2x32xf32>
    %793 = math.tanh %792 : vector<2x32xf32>
    %794 = vector.extract_strided_slice %774 {offsets = [0, 96], sizes = [2, 32], strides = [1, 1]} : vector<2x128xf32> to vector<2x32xf32>
    %795 = arith.negf %794 : vector<2x32xf32>
    %796 = math.exp %795 : vector<2x32xf32>
    %cst_279 = arith.constant 1.000000e+00 : f32
    %797 = vector.broadcast %cst_279 : f32 to vector<2x32xf32>
    %798 = arith.addf %797, %796 : vector<2x32xf32>
    %799 = arith.divf %797, %798 : vector<2x32xf32>
    %800 = arith.mulf %791, %779 : vector<2x32xf32>
    %801 = arith.mulf %785, %793 : vector<2x32xf32>
    %802 = arith.addf %800, %801 : vector<2x32xf32>
    %803 = math.tanh %802 : vector<2x32xf32>
    %804 = arith.mulf %799, %803 : vector<2x32xf32>
    %805 = vector.extract_strided_slice %778 {offsets = [0, 32], sizes = [2, 32], strides = [1, 1]} : vector<2x64xf32> to vector<2x32xf32>
    %806 = vector.extract_strided_slice %777 {offsets = [0, 0], sizes = [2, 32], strides = [1, 1]} : vector<2x128xf32> to vector<2x32xf32>
    %807 = arith.negf %806 : vector<2x32xf32>
    %808 = math.exp %807 : vector<2x32xf32>
    %cst_280 = arith.constant 1.000000e+00 : f32
    %809 = vector.broadcast %cst_280 : f32 to vector<2x32xf32>
    %810 = arith.addf %809, %808 : vector<2x32xf32>
    %811 = arith.divf %809, %810 : vector<2x32xf32>
    %812 = vector.extract_strided_slice %777 {offsets = [0, 32], sizes = [2, 32], strides = [1, 1]} : vector<2x128xf32> to vector<2x32xf32>
    %813 = arith.negf %812 : vector<2x32xf32>
    %814 = math.exp %813 : vector<2x32xf32>
    %cst_281 = arith.constant 1.000000e+00 : f32
    %815 = vector.broadcast %cst_281 : f32 to vector<2x32xf32>
    %816 = arith.addf %815, %814 : vector<2x32xf32>
    %817 = arith.divf %815, %816 : vector<2x32xf32>
    %818 = vector.extract_strided_slice %777 {offsets = [0, 64], sizes = [2, 32], strides = [1, 1]} : vector<2x128xf32> to vector<2x32xf32>
    %819 = math.tanh %818 : vector<2x32xf32>
    %820 = vector.extract_strided_slice %777 {offsets = [0, 96], sizes = [2, 32], strides = [1, 1]} : vector<2x128xf32> to vector<2x32xf32>
    %821 = arith.negf %820 : vector<2x32xf32>
    %822 = math.exp %821 : vector<2x32xf32>
    %cst_282 = arith.constant 1.000000e+00 : f32
    %823 = vector.broadcast %cst_282 : f32 to vector<2x32xf32>
    %824 = arith.addf %823, %822 : vector<2x32xf32>
    %825 = arith.divf %823, %824 : vector<2x32xf32>
    %826 = arith.mulf %817, %805 : vector<2x32xf32>
    %827 = arith.mulf %811, %819 : vector<2x32xf32>
    %828 = arith.addf %826, %827 : vector<2x32xf32>
    %829 = math.tanh %828 : vector<2x32xf32>
    %830 = arith.mulf %825, %829 : vector<2x32xf32>
    %831 = tpu.concatenate %804, %830 in 1 : vector<2x32xf32>, vector<2x32xf32> -> vector<2x64xf32>
    %c0_283 = arith.constant 0 : index
    %c0_284 = arith.constant 0 : index
    %832 = vector.load %arg11[%c0_283, %c0_284] : memref<2x64xf32, #tpu.memory_space<vmem>>, vector<2x64xf32>
    tpu.vector_store %arg11[%c0_283, %c0_284], %831 {strides = array<i32>} : memref<2x64xf32, #tpu.memory_space<vmem>>, vector<2x64xf32>,
    %833 = tpu.concatenate %802, %828 in 1 : vector<2x32xf32>, vector<2x32xf32> -> vector<2x64xf32>
    %c0_285 = arith.constant 0 : index
    %c0_286 = arith.constant 0 : index
    %834 = vector.load %arg12[%c0_285, %c0_286] : memref<2x64xf32, #tpu.memory_space<vmem>>, vector<2x64xf32>
    tpu.vector_store %arg12[%c0_285, %c0_286], %833 {strides = array<i32>} : memref<2x64xf32, #tpu.memory_space<vmem>>, vector<2x64xf32>,
    %835 = arith.index_cast %c1_i32_266 : i32 to index
    %c0_287 = arith.constant 0 : index
    %c0_288 = arith.constant 0 : index
    %836 = vector.load %arg9[%835, %c0_287, %c0_288] : memref<8x2x32xf32, #tpu.memory_space<vmem>>, vector<1x2x32xf32>
    %837 = vector.shape_cast %836 : vector<1x2x32xf32> to vector<2x32xf32>
    %838 = vector.shape_cast %804 : vector<2x32xf32> to vector<1x2x32xf32>
    tpu.vector_store %arg9[%835, %c0_287, %c0_288], %838 {strides = array<i32>} : memref<8x2x32xf32, #tpu.memory_space<vmem>>, vector<1x2x32xf32>,
    %c7_i32_289 = arith.constant 7 : i32
    %839 = arith.subi %c7_i32_289, %c1_i32_266 : i32
    %840 = arith.index_cast %839 : i32 to index
    %c0_290 = arith.constant 0 : index
    %c0_291 = arith.constant 0 : index
    %841 = vector.load %arg10[%840, %c0_290, %c0_291] : memref<8x2x32xf32, #tpu.memory_space<vmem>>, vector<1x2x32xf32>
    %842 = vector.shape_cast %841 : vector<1x2x32xf32> to vector<2x32xf32>
    %843 = vector.shape_cast %830 : vector<2x32xf32> to vector<1x2x32xf32>
    tpu.vector_store %arg10[%840, %c0_290, %c0_291], %843 {strides = array<i32>} : memref<8x2x32xf32, #tpu.memory_space<vmem>>, vector<1x2x32xf32>,
    %c2_i32_292 = arith.constant 2 : i32
    %c0_293 = arith.constant 0 : index
    %c0_294 = arith.constant 0 : index
    %844 = vector.load %arg11[%c0_293, %c0_294] : memref<2x64xf32, #tpu.memory_space<vmem>>, vector<2x64xf32>
    %cst_295 = arith.constant dense<0.000000e+00> : vector<2x256xf32>
    %845 = tpu.matmul %844, %681, %cst_295 {dimension_numbers = #tpu.dot_dimension_numbers<[1], [0], [0], [1], [0, 0, 1, 1], [], []>} : vector<2x64xf32>, vector<64x256xf32>, vector<2x256xf32> -> vector<2x256xf32>
    %846 = arith.index_cast %c2_i32_292 : i32 to index
    %c0_296 = arith.constant 0 : index
    %c0_297 = arith.constant 0 : index
    %847 = vector.load %arg8[%846, %c0_296, %c0_297] : memref<8x2x256xf32, #tpu.memory_space<vmem>>, vector<1x2x256xf32>
    %848 = vector.shape_cast %847 : vector<1x2x256xf32> to vector<2x256xf32>
    %c7_i32_298 = arith.constant 7 : i32
    %849 = arith.subi %c7_i32_298, %c2_i32_292 : i32
    %850 = arith.index_cast %849 : i32 to index
    %c0_299 = arith.constant 0 : index
    %c0_300 = arith.constant 0 : index
    %851 = vector.load %arg8[%850, %c0_299, %c0_300] : memref<8x2x256xf32, #tpu.memory_space<vmem>>, vector<1x2x256xf32>
    %852 = vector.shape_cast %851 : vector<1x2x256xf32> to vector<2x256xf32>
    %853 = vector.extract_strided_slice %848 {offsets = [0, 0], sizes = [2, 128], strides = [1, 1]} : vector<2x256xf32> to vector<2x128xf32>
    %854 = vector.extract_strided_slice %845 {offsets = [0, 0], sizes = [2, 128], strides = [1, 1]} : vector<2x256xf32> to vector<2x128xf32>
    %855 = arith.addf %853, %854 : vector<2x128xf32>
    %856 = vector.extract_strided_slice %852 {offsets = [0, 128], sizes = [2, 128], strides = [1, 1]} : vector<2x256xf32> to vector<2x128xf32>
    %857 = vector.extract_strided_slice %845 {offsets = [0, 128], sizes = [2, 128], strides = [1, 1]} : vector<2x256xf32> to vector<2x128xf32>
    %858 = arith.addf %856, %857 : vector<2x128xf32>
    %c0_301 = arith.constant 0 : index
    %c0_302 = arith.constant 0 : index
    %859 = vector.load %arg12[%c0_301, %c0_302] : memref<2x64xf32, #tpu.memory_space<vmem>>, vector<2x64xf32>
    %860 = vector.extract_strided_slice %859 {offsets = [0, 0], sizes = [2, 32], strides = [1, 1]} : vector<2x64xf32> to vector<2x32xf32>
    %861 = vector.extract_strided_slice %855 {offsets = [0, 0], sizes = [2, 32], strides = [1, 1]} : vector<2x128xf32> to vector<2x32xf32>
    %862 = arith.negf %861 : vector<2x32xf32>
    %863 = math.exp %862 : vector<2x32xf32>
    %cst_303 = arith.constant 1.000000e+00 : f32
    %864 = vector.broadcast %cst_303 : f32 to vector<2x32xf32>
    %865 = arith.addf %864, %863 : vector<2x32xf32>
    %866 = arith.divf %864, %865 : vector<2x32xf32>
    %867 = vector.extract_strided_slice %855 {offsets = [0, 32], sizes = [2, 32], strides = [1, 1]} : vector<2x128xf32> to vector<2x32xf32>
    %868 = arith.negf %867 : vector<2x32xf32>
    %869 = math.exp %868 : vector<2x32xf32>
    %cst_304 = arith.constant 1.000000e+00 : f32
    %870 = vector.broadcast %cst_304 : f32 to vector<2x32xf32>
    %871 = arith.addf %870, %869 : vector<2x32xf32>
    %872 = arith.divf %870, %871 : vector<2x32xf32>
    %873 = vector.extract_strided_slice %855 {offsets = [0, 64], sizes = [2, 32], strides = [1, 1]} : vector<2x128xf32> to vector<2x32xf32>
    %874 = math.tanh %873 : vector<2x32xf32>
    %875 = vector.extract_strided_slice %855 {offsets = [0, 96], sizes = [2, 32], strides = [1, 1]} : vector<2x128xf32> to vector<2x32xf32>
    %876 = arith.negf %875 : vector<2x32xf32>
    %877 = math.exp %876 : vector<2x32xf32>
    %cst_305 = arith.constant 1.000000e+00 : f32
    %878 = vector.broadcast %cst_305 : f32 to vector<2x32xf32>
    %879 = arith.addf %878, %877 : vector<2x32xf32>
    %880 = arith.divf %878, %879 : vector<2x32xf32>
    %881 = arith.mulf %872, %860 : vector<2x32xf32>
    %882 = arith.mulf %866, %874 : vector<2x32xf32>
    %883 = arith.addf %881, %882 : vector<2x32xf32>
    %884 = math.tanh %883 : vector<2x32xf32>
    %885 = arith.mulf %880, %884 : vector<2x32xf32>
    %886 = vector.extract_strided_slice %859 {offsets = [0, 32], sizes = [2, 32], strides = [1, 1]} : vector<2x64xf32> to vector<2x32xf32>
    %887 = vector.extract_strided_slice %858 {offsets = [0, 0], sizes = [2, 32], strides = [1, 1]} : vector<2x128xf32> to vector<2x32xf32>
    %888 = arith.negf %887 : vector<2x32xf32>
    %889 = math.exp %888 : vector<2x32xf32>
    %cst_306 = arith.constant 1.000000e+00 : f32
    %890 = vector.broadcast %cst_306 : f32 to vector<2x32xf32>
    %891 = arith.addf %890, %889 : vector<2x32xf32>
    %892 = arith.divf %890, %891 : vector<2x32xf32>
    %893 = vector.extract_strided_slice %858 {offsets = [0, 32], sizes = [2, 32], strides = [1, 1]} : vector<2x128xf32> to vector<2x32xf32>
    %894 = arith.negf %893 : vector<2x32xf32>
    %895 = math.exp %894 : vector<2x32xf32>
    %cst_307 = arith.constant 1.000000e+00 : f32
    %896 = vector.broadcast %cst_307 : f32 to vector<2x32xf32>
    %897 = arith.addf %896, %895 : vector<2x32xf32>
    %898 = arith.divf %896, %897 : vector<2x32xf32>
    %899 = vector.extract_strided_slice %858 {offsets = [0, 64], sizes = [2, 32], strides = [1, 1]} : vector<2x128xf32> to vector<2x32xf32>
    %900 = math.tanh %899 : vector<2x32xf32>
    %901 = vector.extract_strided_slice %858 {offsets = [0, 96], sizes = [2, 32], strides = [1, 1]} : vector<2x128xf32> to vector<2x32xf32>
    %902 = arith.negf %901 : vector<2x32xf32>
    %903 = math.exp %902 : vector<2x32xf32>
    %cst_308 = arith.constant 1.000000e+00 : f32
    %904 = vector.broadcast %cst_308 : f32 to vector<2x32xf32>
    %905 = arith.addf %904, %903 : vector<2x32xf32>
    %906 = arith.divf %904, %905 : vector<2x32xf32>
    %907 = arith.mulf %898, %886 : vector<2x32xf32>
    %908 = arith.mulf %892, %900 : vector<2x32xf32>
    %909 = arith.addf %907, %908 : vector<2x32xf32>
    %910 = math.tanh %909 : vector<2x32xf32>
    %911 = arith.mulf %906, %910 : vector<2x32xf32>
    %912 = tpu.concatenate %885, %911 in 1 : vector<2x32xf32>, vector<2x32xf32> -> vector<2x64xf32>
    %c0_309 = arith.constant 0 : index
    %c0_310 = arith.constant 0 : index
    %913 = vector.load %arg11[%c0_309, %c0_310] : memref<2x64xf32, #tpu.memory_space<vmem>>, vector<2x64xf32>
    tpu.vector_store %arg11[%c0_309, %c0_310], %912 {strides = array<i32>} : memref<2x64xf32, #tpu.memory_space<vmem>>, vector<2x64xf32>,
    %914 = tpu.concatenate %883, %909 in 1 : vector<2x32xf32>, vector<2x32xf32> -> vector<2x64xf32>
    %c0_311 = arith.constant 0 : index
    %c0_312 = arith.constant 0 : index
    %915 = vector.load %arg12[%c0_311, %c0_312] : memref<2x64xf32, #tpu.memory_space<vmem>>, vector<2x64xf32>
    tpu.vector_store %arg12[%c0_311, %c0_312], %914 {strides = array<i32>} : memref<2x64xf32, #tpu.memory_space<vmem>>, vector<2x64xf32>,
    %916 = arith.index_cast %c2_i32_292 : i32 to index
    %c0_313 = arith.constant 0 : index
    %c0_314 = arith.constant 0 : index
    %917 = vector.load %arg9[%916, %c0_313, %c0_314] : memref<8x2x32xf32, #tpu.memory_space<vmem>>, vector<1x2x32xf32>
    %918 = vector.shape_cast %917 : vector<1x2x32xf32> to vector<2x32xf32>
    %919 = vector.shape_cast %885 : vector<2x32xf32> to vector<1x2x32xf32>
    tpu.vector_store %arg9[%916, %c0_313, %c0_314], %919 {strides = array<i32>} : memref<8x2x32xf32, #tpu.memory_space<vmem>>, vector<1x2x32xf32>,
    %c7_i32_315 = arith.constant 7 : i32
    %920 = arith.subi %c7_i32_315, %c2_i32_292 : i32
    %921 = arith.index_cast %920 : i32 to index
    %c0_316 = arith.constant 0 : index
    %c0_317 = arith.constant 0 : index
    %922 = vector.load %arg10[%921, %c0_316, %c0_317] : memref<8x2x32xf32, #tpu.memory_space<vmem>>, vector<1x2x32xf32>
    %923 = vector.shape_cast %922 : vector<1x2x32xf32> to vector<2x32xf32>
    %924 = vector.shape_cast %911 : vector<2x32xf32> to vector<1x2x32xf32>
    tpu.vector_store %arg10[%921, %c0_316, %c0_317], %924 {strides = array<i32>} : memref<8x2x32xf32, #tpu.memory_space<vmem>>, vector<1x2x32xf32>,
    %c3_i32_318 = arith.constant 3 : i32
    %c0_319 = arith.constant 0 : index
    %c0_320 = arith.constant 0 : index
    %925 = vector.load %arg11[%c0_319, %c0_320] : memref<2x64xf32, #tpu.memory_space<vmem>>, vector<2x64xf32>
    %cst_321 = arith.constant dense<0.000000e+00> : vector<2x256xf32>
    %926 = tpu.matmul %925, %681, %cst_321 {dimension_numbers = #tpu.dot_dimension_numbers<[1], [0], [0], [1], [0, 0, 1, 1], [], []>} : vector<2x64xf32>, vector<64x256xf32>, vector<2x256xf32> -> vector<2x256xf32>
    %927 = arith.index_cast %c3_i32_318 : i32 to index
    %c0_322 = arith.constant 0 : index
    %c0_323 = arith.constant 0 : index
    %928 = vector.load %arg8[%927, %c0_322, %c0_323] : memref<8x2x256xf32, #tpu.memory_space<vmem>>, vector<1x2x256xf32>
    %929 = vector.shape_cast %928 : vector<1x2x256xf32> to vector<2x256xf32>
    %c7_i32_324 = arith.constant 7 : i32
    %930 = arith.subi %c7_i32_324, %c3_i32_318 : i32
    %931 = arith.index_cast %930 : i32 to index
    %c0_325 = arith.constant 0 : index
    %c0_326 = arith.constant 0 : index
    %932 = vector.load %arg8[%931, %c0_325, %c0_326] : memref<8x2x256xf32, #tpu.memory_space<vmem>>, vector<1x2x256xf32>
    %933 = vector.shape_cast %932 : vector<1x2x256xf32> to vector<2x256xf32>
    %934 = vector.extract_strided_slice %929 {offsets = [0, 0], sizes = [2, 128], strides = [1, 1]} : vector<2x256xf32> to vector<2x128xf32>
    %935 = vector.extract_strided_slice %926 {offsets = [0, 0], sizes = [2, 128], strides = [1, 1]} : vector<2x256xf32> to vector<2x128xf32>
    %936 = arith.addf %934, %935 : vector<2x128xf32>
    %937 = vector.extract_strided_slice %933 {offsets = [0, 128], sizes = [2, 128], strides = [1, 1]} : vector<2x256xf32> to vector<2x128xf32>
    %938 = vector.extract_strided_slice %926 {offsets = [0, 128], sizes = [2, 128], strides = [1, 1]} : vector<2x256xf32> to vector<2x128xf32>
    %939 = arith.addf %937, %938 : vector<2x128xf32>
    %c0_327 = arith.constant 0 : index
    %c0_328 = arith.constant 0 : index
    %940 = vector.load %arg12[%c0_327, %c0_328] : memref<2x64xf32, #tpu.memory_space<vmem>>, vector<2x64xf32>
    %941 = vector.extract_strided_slice %940 {offsets = [0, 0], sizes = [2, 32], strides = [1, 1]} : vector<2x64xf32> to vector<2x32xf32>
    %942 = vector.extract_strided_slice %936 {offsets = [0, 0], sizes = [2, 32], strides = [1, 1]} : vector<2x128xf32> to vector<2x32xf32>
    %943 = arith.negf %942 : vector<2x32xf32>
    %944 = math.exp %943 : vector<2x32xf32>
    %cst_329 = arith.constant 1.000000e+00 : f32
    %945 = vector.broadcast %cst_329 : f32 to vector<2x32xf32>
    %946 = arith.addf %945, %944 : vector<2x32xf32>
    %947 = arith.divf %945, %946 : vector<2x32xf32>
    %948 = vector.extract_strided_slice %936 {offsets = [0, 32], sizes = [2, 32], strides = [1, 1]} : vector<2x128xf32> to vector<2x32xf32>
    %949 = arith.negf %948 : vector<2x32xf32>
    %950 = math.exp %949 : vector<2x32xf32>
    %cst_330 = arith.constant 1.000000e+00 : f32
    %951 = vector.broadcast %cst_330 : f32 to vector<2x32xf32>
    %952 = arith.addf %951, %950 : vector<2x32xf32>
    %953 = arith.divf %951, %952 : vector<2x32xf32>
    %954 = vector.extract_strided_slice %936 {offsets = [0, 64], sizes = [2, 32], strides = [1, 1]} : vector<2x128xf32> to vector<2x32xf32>
    %955 = math.tanh %954 : vector<2x32xf32>
    %956 = vector.extract_strided_slice %936 {offsets = [0, 96], sizes = [2, 32], strides = [1, 1]} : vector<2x128xf32> to vector<2x32xf32>
    %957 = arith.negf %956 : vector<2x32xf32>
    %958 = math.exp %957 : vector<2x32xf32>
    %cst_331 = arith.constant 1.000000e+00 : f32
    %959 = vector.broadcast %cst_331 : f32 to vector<2x32xf32>
    %960 = arith.addf %959, %958 : vector<2x32xf32>
    %961 = arith.divf %959, %960 : vector<2x32xf32>
    %962 = arith.mulf %953, %941 : vector<2x32xf32>
    %963 = arith.mulf %947, %955 : vector<2x32xf32>
    %964 = arith.addf %962, %963 : vector<2x32xf32>
    %965 = math.tanh %964 : vector<2x32xf32>
    %966 = arith.mulf %961, %965 : vector<2x32xf32>
    %967 = vector.extract_strided_slice %940 {offsets = [0, 32], sizes = [2, 32], strides = [1, 1]} : vector<2x64xf32> to vector<2x32xf32>
    %968 = vector.extract_strided_slice %939 {offsets = [0, 0], sizes = [2, 32], strides = [1, 1]} : vector<2x128xf32> to vector<2x32xf32>
    %969 = arith.negf %968 : vector<2x32xf32>
    %970 = math.exp %969 : vector<2x32xf32>
    %cst_332 = arith.constant 1.000000e+00 : f32
    %971 = vector.broadcast %cst_332 : f32 to vector<2x32xf32>
    %972 = arith.addf %971, %970 : vector<2x32xf32>
    %973 = arith.divf %971, %972 : vector<2x32xf32>
    %974 = vector.extract_strided_slice %939 {offsets = [0, 32], sizes = [2, 32], strides = [1, 1]} : vector<2x128xf32> to vector<2x32xf32>
    %975 = arith.negf %974 : vector<2x32xf32>
    %976 = math.exp %975 : vector<2x32xf32>
    %cst_333 = arith.constant 1.000000e+00 : f32
    %977 = vector.broadcast %cst_333 : f32 to vector<2x32xf32>
    %978 = arith.addf %977, %976 : vector<2x32xf32>
    %979 = arith.divf %977, %978 : vector<2x32xf32>
    %980 = vector.extract_strided_slice %939 {offsets = [0, 64], sizes = [2, 32], strides = [1, 1]} : vector<2x128xf32> to vector<2x32xf32>
    %981 = math.tanh %980 : vector<2x32xf32>
    %982 = vector.extract_strided_slice %939 {offsets = [0, 96], sizes = [2, 32], strides = [1, 1]} : vector<2x128xf32> to vector<2x32xf32>
    %983 = arith.negf %982 : vector<2x32xf32>
    %984 = math.exp %983 : vector<2x32xf32>
    %cst_334 = arith.constant 1.000000e+00 : f32
    %985 = vector.broadcast %cst_334 : f32 to vector<2x32xf32>
    %986 = arith.addf %985, %984 : vector<2x32xf32>
    %987 = arith.divf %985, %986 : vector<2x32xf32>
    %988 = arith.mulf %979, %967 : vector<2x32xf32>
    %989 = arith.mulf %973, %981 : vector<2x32xf32>
    %990 = arith.addf %988, %989 : vector<2x32xf32>
    %991 = math.tanh %990 : vector<2x32xf32>
    %992 = arith.mulf %987, %991 : vector<2x32xf32>
    %993 = tpu.concatenate %966, %992 in 1 : vector<2x32xf32>, vector<2x32xf32> -> vector<2x64xf32>
    %c0_335 = arith.constant 0 : index
    %c0_336 = arith.constant 0 : index
    %994 = vector.load %arg11[%c0_335, %c0_336] : memref<2x64xf32, #tpu.memory_space<vmem>>, vector<2x64xf32>
    tpu.vector_store %arg11[%c0_335, %c0_336], %993 {strides = array<i32>} : memref<2x64xf32, #tpu.memory_space<vmem>>, vector<2x64xf32>,
    %995 = tpu.concatenate %964, %990 in 1 : vector<2x32xf32>, vector<2x32xf32> -> vector<2x64xf32>
    %c0_337 = arith.constant 0 : index
    %c0_338 = arith.constant 0 : index
    %996 = vector.load %arg12[%c0_337, %c0_338] : memref<2x64xf32, #tpu.memory_space<vmem>>, vector<2x64xf32>
    tpu.vector_store %arg12[%c0_337, %c0_338], %995 {strides = array<i32>} : memref<2x64xf32, #tpu.memory_space<vmem>>, vector<2x64xf32>,
    %997 = arith.index_cast %c3_i32_318 : i32 to index
    %c0_339 = arith.constant 0 : index
    %c0_340 = arith.constant 0 : index
    %998 = vector.load %arg9[%997, %c0_339, %c0_340] : memref<8x2x32xf32, #tpu.memory_space<vmem>>, vector<1x2x32xf32>
    %999 = vector.shape_cast %998 : vector<1x2x32xf32> to vector<2x32xf32>
    %1000 = vector.shape_cast %966 : vector<2x32xf32> to vector<1x2x32xf32>
    tpu.vector_store %arg9[%997, %c0_339, %c0_340], %1000 {strides = array<i32>} : memref<8x2x32xf32, #tpu.memory_space<vmem>>, vector<1x2x32xf32>,
    %c7_i32_341 = arith.constant 7 : i32
    %1001 = arith.subi %c7_i32_341, %c3_i32_318 : i32
    %1002 = arith.index_cast %1001 : i32 to index
    %c0_342 = arith.constant 0 : index
    %c0_343 = arith.constant 0 : index
    %1003 = vector.load %arg10[%1002, %c0_342, %c0_343] : memref<8x2x32xf32, #tpu.memory_space<vmem>>, vector<1x2x32xf32>
    %1004 = vector.shape_cast %1003 : vector<1x2x32xf32> to vector<2x32xf32>
    %1005 = vector.shape_cast %992 : vector<2x32xf32> to vector<1x2x32xf32>
    tpu.vector_store %arg10[%1002, %c0_342, %c0_343], %1005 {strides = array<i32>} : memref<8x2x32xf32, #tpu.memory_space<vmem>>, vector<1x2x32xf32>,
    %c4_i32_344 = arith.constant 4 : i32
    %c0_345 = arith.constant 0 : index
    %c0_346 = arith.constant 0 : index
    %1006 = vector.load %arg11[%c0_345, %c0_346] : memref<2x64xf32, #tpu.memory_space<vmem>>, vector<2x64xf32>
    %cst_347 = arith.constant dense<0.000000e+00> : vector<2x256xf32>
    %1007 = tpu.matmul %1006, %681, %cst_347 {dimension_numbers = #tpu.dot_dimension_numbers<[1], [0], [0], [1], [0, 0, 1, 1], [], []>} : vector<2x64xf32>, vector<64x256xf32>, vector<2x256xf32> -> vector<2x256xf32>
    %1008 = arith.index_cast %c4_i32_344 : i32 to index
    %c0_348 = arith.constant 0 : index
    %c0_349 = arith.constant 0 : index
    %1009 = vector.load %arg8[%1008, %c0_348, %c0_349] : memref<8x2x256xf32, #tpu.memory_space<vmem>>, vector<1x2x256xf32>
    %1010 = vector.shape_cast %1009 : vector<1x2x256xf32> to vector<2x256xf32>
    %c7_i32_350 = arith.constant 7 : i32
    %1011 = arith.subi %c7_i32_350, %c4_i32_344 : i32
    %1012 = arith.index_cast %1011 : i32 to index
    %c0_351 = arith.constant 0 : index
    %c0_352 = arith.constant 0 : index
    %1013 = vector.load %arg8[%1012, %c0_351, %c0_352] : memref<8x2x256xf32, #tpu.memory_space<vmem>>, vector<1x2x256xf32>
    %1014 = vector.shape_cast %1013 : vector<1x2x256xf32> to vector<2x256xf32>
    %1015 = vector.extract_strided_slice %1010 {offsets = [0, 0], sizes = [2, 128], strides = [1, 1]} : vector<2x256xf32> to vector<2x128xf32>
    %1016 = vector.extract_strided_slice %1007 {offsets = [0, 0], sizes = [2, 128], strides = [1, 1]} : vector<2x256xf32> to vector<2x128xf32>
    %1017 = arith.addf %1015, %1016 : vector<2x128xf32>
    %1018 = vector.extract_strided_slice %1014 {offsets = [0, 128], sizes = [2, 128], strides = [1, 1]} : vector<2x256xf32> to vector<2x128xf32>
    %1019 = vector.extract_strided_slice %1007 {offsets = [0, 128], sizes = [2, 128], strides = [1, 1]} : vector<2x256xf32> to vector<2x128xf32>
    %1020 = arith.addf %1018, %1019 : vector<2x128xf32>
    %c0_353 = arith.constant 0 : index
    %c0_354 = arith.constant 0 : index
    %1021 = vector.load %arg12[%c0_353, %c0_354] : memref<2x64xf32, #tpu.memory_space<vmem>>, vector<2x64xf32>
    %1022 = vector.extract_strided_slice %1021 {offsets = [0, 0], sizes = [2, 32], strides = [1, 1]} : vector<2x64xf32> to vector<2x32xf32>
    %1023 = vector.extract_strided_slice %1017 {offsets = [0, 0], sizes = [2, 32], strides = [1, 1]} : vector<2x128xf32> to vector<2x32xf32>
    %1024 = arith.negf %1023 : vector<2x32xf32>
    %1025 = math.exp %1024 : vector<2x32xf32>
    %cst_355 = arith.constant 1.000000e+00 : f32
    %1026 = vector.broadcast %cst_355 : f32 to vector<2x32xf32>
    %1027 = arith.addf %1026, %1025 : vector<2x32xf32>
    %1028 = arith.divf %1026, %1027 : vector<2x32xf32>
    %1029 = vector.extract_strided_slice %1017 {offsets = [0, 32], sizes = [2, 32], strides = [1, 1]} : vector<2x128xf32> to vector<2x32xf32>
    %1030 = arith.negf %1029 : vector<2x32xf32>
    %1031 = math.exp %1030 : vector<2x32xf32>
    %cst_356 = arith.constant 1.000000e+00 : f32
    %1032 = vector.broadcast %cst_356 : f32 to vector<2x32xf32>
    %1033 = arith.addf %1032, %1031 : vector<2x32xf32>
    %1034 = arith.divf %1032, %1033 : vector<2x32xf32>
    %1035 = vector.extract_strided_slice %1017 {offsets = [0, 64], sizes = [2, 32], strides = [1, 1]} : vector<2x128xf32> to vector<2x32xf32>
    %1036 = math.tanh %1035 : vector<2x32xf32>
    %1037 = vector.extract_strided_slice %1017 {offsets = [0, 96], sizes = [2, 32], strides = [1, 1]} : vector<2x128xf32> to vector<2x32xf32>
    %1038 = arith.negf %1037 : vector<2x32xf32>
    %1039 = math.exp %1038 : vector<2x32xf32>
    %cst_357 = arith.constant 1.000000e+00 : f32
    %1040 = vector.broadcast %cst_357 : f32 to vector<2x32xf32>
    %1041 = arith.addf %1040, %1039 : vector<2x32xf32>
    %1042 = arith.divf %1040, %1041 : vector<2x32xf32>
    %1043 = arith.mulf %1034, %1022 : vector<2x32xf32>
    %1044 = arith.mulf %1028, %1036 : vector<2x32xf32>
    %1045 = arith.addf %1043, %1044 : vector<2x32xf32>
    %1046 = math.tanh %1045 : vector<2x32xf32>
    %1047 = arith.mulf %1042, %1046 : vector<2x32xf32>
    %1048 = vector.extract_strided_slice %1021 {offsets = [0, 32], sizes = [2, 32], strides = [1, 1]} : vector<2x64xf32> to vector<2x32xf32>
    %1049 = vector.extract_strided_slice %1020 {offsets = [0, 0], sizes = [2, 32], strides = [1, 1]} : vector<2x128xf32> to vector<2x32xf32>
    %1050 = arith.negf %1049 : vector<2x32xf32>
    %1051 = math.exp %1050 : vector<2x32xf32>
    %cst_358 = arith.constant 1.000000e+00 : f32
    %1052 = vector.broadcast %cst_358 : f32 to vector<2x32xf32>
    %1053 = arith.addf %1052, %1051 : vector<2x32xf32>
    %1054 = arith.divf %1052, %1053 : vector<2x32xf32>
    %1055 = vector.extract_strided_slice %1020 {offsets = [0, 32], sizes = [2, 32], strides = [1, 1]} : vector<2x128xf32> to vector<2x32xf32>
    %1056 = arith.negf %1055 : vector<2x32xf32>
    %1057 = math.exp %1056 : vector<2x32xf32>
    %cst_359 = arith.constant 1.000000e+00 : f32
    %1058 = vector.broadcast %cst_359 : f32 to vector<2x32xf32>
    %1059 = arith.addf %1058, %1057 : vector<2x32xf32>
    %1060 = arith.divf %1058, %1059 : vector<2x32xf32>
    %1061 = vector.extract_strided_slice %1020 {offsets = [0, 64], sizes = [2, 32], strides = [1, 1]} : vector<2x128xf32> to vector<2x32xf32>
    %1062 = math.tanh %1061 : vector<2x32xf32>
    %1063 = vector.extract_strided_slice %1020 {offsets = [0, 96], sizes = [2, 32], strides = [1, 1]} : vector<2x128xf32> to vector<2x32xf32>
    %1064 = arith.negf %1063 : vector<2x32xf32>
    %1065 = math.exp %1064 : vector<2x32xf32>
    %cst_360 = arith.constant 1.000000e+00 : f32
    %1066 = vector.broadcast %cst_360 : f32 to vector<2x32xf32>
    %1067 = arith.addf %1066, %1065 : vector<2x32xf32>
    %1068 = arith.divf %1066, %1067 : vector<2x32xf32>
    %1069 = arith.mulf %1060, %1048 : vector<2x32xf32>
    %1070 = arith.mulf %1054, %1062 : vector<2x32xf32>
    %1071 = arith.addf %1069, %1070 : vector<2x32xf32>
    %1072 = math.tanh %1071 : vector<2x32xf32>
    %1073 = arith.mulf %1068, %1072 : vector<2x32xf32>
    %1074 = tpu.concatenate %1047, %1073 in 1 : vector<2x32xf32>, vector<2x32xf32> -> vector<2x64xf32>
    %c0_361 = arith.constant 0 : index
    %c0_362 = arith.constant 0 : index
    %1075 = vector.load %arg11[%c0_361, %c0_362] : memref<2x64xf32, #tpu.memory_space<vmem>>, vector<2x64xf32>
    tpu.vector_store %arg11[%c0_361, %c0_362], %1074 {strides = array<i32>} : memref<2x64xf32, #tpu.memory_space<vmem>>, vector<2x64xf32>,
    %1076 = tpu.concatenate %1045, %1071 in 1 : vector<2x32xf32>, vector<2x32xf32> -> vector<2x64xf32>
    %c0_363 = arith.constant 0 : index
    %c0_364 = arith.constant 0 : index
    %1077 = vector.load %arg12[%c0_363, %c0_364] : memref<2x64xf32, #tpu.memory_space<vmem>>, vector<2x64xf32>
    tpu.vector_store %arg12[%c0_363, %c0_364], %1076 {strides = array<i32>} : memref<2x64xf32, #tpu.memory_space<vmem>>, vector<2x64xf32>,
    %1078 = arith.index_cast %c4_i32_344 : i32 to index
    %c0_365 = arith.constant 0 : index
    %c0_366 = arith.constant 0 : index
    %1079 = vector.load %arg9[%1078, %c0_365, %c0_366] : memref<8x2x32xf32, #tpu.memory_space<vmem>>, vector<1x2x32xf32>
    %1080 = vector.shape_cast %1079 : vector<1x2x32xf32> to vector<2x32xf32>
    %1081 = vector.shape_cast %1047 : vector<2x32xf32> to vector<1x2x32xf32>
    tpu.vector_store %arg9[%1078, %c0_365, %c0_366], %1081 {strides = array<i32>} : memref<8x2x32xf32, #tpu.memory_space<vmem>>, vector<1x2x32xf32>,
    %c7_i32_367 = arith.constant 7 : i32
    %1082 = arith.subi %c7_i32_367, %c4_i32_344 : i32
    %1083 = arith.index_cast %1082 : i32 to index
    %c0_368 = arith.constant 0 : index
    %c0_369 = arith.constant 0 : index
    %1084 = vector.load %arg10[%1083, %c0_368, %c0_369] : memref<8x2x32xf32, #tpu.memory_space<vmem>>, vector<1x2x32xf32>
    %1085 = vector.shape_cast %1084 : vector<1x2x32xf32> to vector<2x32xf32>
    %1086 = vector.shape_cast %1073 : vector<2x32xf32> to vector<1x2x32xf32>
    tpu.vector_store %arg10[%1083, %c0_368, %c0_369], %1086 {strides = array<i32>} : memref<8x2x32xf32, #tpu.memory_space<vmem>>, vector<1x2x32xf32>,
    %c5_i32_370 = arith.constant 5 : i32
    %c0_371 = arith.constant 0 : index
    %c0_372 = arith.constant 0 : index
    %1087 = vector.load %arg11[%c0_371, %c0_372] : memref<2x64xf32, #tpu.memory_space<vmem>>, vector<2x64xf32>
    %cst_373 = arith.constant dense<0.000000e+00> : vector<2x256xf32>
    %1088 = tpu.matmul %1087, %681, %cst_373 {dimension_numbers = #tpu.dot_dimension_numbers<[1], [0], [0], [1], [0, 0, 1, 1], [], []>} : vector<2x64xf32>, vector<64x256xf32>, vector<2x256xf32> -> vector<2x256xf32>
    %1089 = arith.index_cast %c5_i32_370 : i32 to index
    %c0_374 = arith.constant 0 : index
    %c0_375 = arith.constant 0 : index
    %1090 = vector.load %arg8[%1089, %c0_374, %c0_375] : memref<8x2x256xf32, #tpu.memory_space<vmem>>, vector<1x2x256xf32>
    %1091 = vector.shape_cast %1090 : vector<1x2x256xf32> to vector<2x256xf32>
    %c7_i32_376 = arith.constant 7 : i32
    %1092 = arith.subi %c7_i32_376, %c5_i32_370 : i32
    %1093 = arith.index_cast %1092 : i32 to index
    %c0_377 = arith.constant 0 : index
    %c0_378 = arith.constant 0 : index
    %1094 = vector.load %arg8[%1093, %c0_377, %c0_378] : memref<8x2x256xf32, #tpu.memory_space<vmem>>, vector<1x2x256xf32>
    %1095 = vector.shape_cast %1094 : vector<1x2x256xf32> to vector<2x256xf32>
    %1096 = vector.extract_strided_slice %1091 {offsets = [0, 0], sizes = [2, 128], strides = [1, 1]} : vector<2x256xf32> to vector<2x128xf32>
    %1097 = vector.extract_strided_slice %1088 {offsets = [0, 0], sizes = [2, 128], strides = [1, 1]} : vector<2x256xf32> to vector<2x128xf32>
    %1098 = arith.addf %1096, %1097 : vector<2x128xf32>
    %1099 = vector.extract_strided_slice %1095 {offsets = [0, 128], sizes = [2, 128], strides = [1, 1]} : vector<2x256xf32> to vector<2x128xf32>
    %1100 = vector.extract_strided_slice %1088 {offsets = [0, 128], sizes = [2, 128], strides = [1, 1]} : vector<2x256xf32> to vector<2x128xf32>
    %1101 = arith.addf %1099, %1100 : vector<2x128xf32>
    %c0_379 = arith.constant 0 : index
    %c0_380 = arith.constant 0 : index
    %1102 = vector.load %arg12[%c0_379, %c0_380] : memref<2x64xf32, #tpu.memory_space<vmem>>, vector<2x64xf32>
    %1103 = vector.extract_strided_slice %1102 {offsets = [0, 0], sizes = [2, 32], strides = [1, 1]} : vector<2x64xf32> to vector<2x32xf32>
    %1104 = vector.extract_strided_slice %1098 {offsets = [0, 0], sizes = [2, 32], strides = [1, 1]} : vector<2x128xf32> to vector<2x32xf32>
    %1105 = arith.negf %1104 : vector<2x32xf32>
    %1106 = math.exp %1105 : vector<2x32xf32>
    %cst_381 = arith.constant 1.000000e+00 : f32
    %1107 = vector.broadcast %cst_381 : f32 to vector<2x32xf32>
    %1108 = arith.addf %1107, %1106 : vector<2x32xf32>
    %1109 = arith.divf %1107, %1108 : vector<2x32xf32>
    %1110 = vector.extract_strided_slice %1098 {offsets = [0, 32], sizes = [2, 32], strides = [1, 1]} : vector<2x128xf32> to vector<2x32xf32>
    %1111 = arith.negf %1110 : vector<2x32xf32>
    %1112 = math.exp %1111 : vector<2x32xf32>
    %cst_382 = arith.constant 1.000000e+00 : f32
    %1113 = vector.broadcast %cst_382 : f32 to vector<2x32xf32>
    %1114 = arith.addf %1113, %1112 : vector<2x32xf32>
    %1115 = arith.divf %1113, %1114 : vector<2x32xf32>
    %1116 = vector.extract_strided_slice %1098 {offsets = [0, 64], sizes = [2, 32], strides = [1, 1]} : vector<2x128xf32> to vector<2x32xf32>
    %1117 = math.tanh %1116 : vector<2x32xf32>
    %1118 = vector.extract_strided_slice %1098 {offsets = [0, 96], sizes = [2, 32], strides = [1, 1]} : vector<2x128xf32> to vector<2x32xf32>
    %1119 = arith.negf %1118 : vector<2x32xf32>
    %1120 = math.exp %1119 : vector<2x32xf32>
    %cst_383 = arith.constant 1.000000e+00 : f32
    %1121 = vector.broadcast %cst_383 : f32 to vector<2x32xf32>
    %1122 = arith.addf %1121, %1120 : vector<2x32xf32>
    %1123 = arith.divf %1121, %1122 : vector<2x32xf32>
    %1124 = arith.mulf %1115, %1103 : vector<2x32xf32>
    %1125 = arith.mulf %1109, %1117 : vector<2x32xf32>
    %1126 = arith.addf %1124, %1125 : vector<2x32xf32>
    %1127 = math.tanh %1126 : vector<2x32xf32>
    %1128 = arith.mulf %1123, %1127 : vector<2x32xf32>
    %1129 = vector.extract_strided_slice %1102 {offsets = [0, 32], sizes = [2, 32], strides = [1, 1]} : vector<2x64xf32> to vector<2x32xf32>
    %1130 = vector.extract_strided_slice %1101 {offsets = [0, 0], sizes = [2, 32], strides = [1, 1]} : vector<2x128xf32> to vector<2x32xf32>
    %1131 = arith.negf %1130 : vector<2x32xf32>
    %1132 = math.exp %1131 : vector<2x32xf32>
    %cst_384 = arith.constant 1.000000e+00 : f32
    %1133 = vector.broadcast %cst_384 : f32 to vector<2x32xf32>
    %1134 = arith.addf %1133, %1132 : vector<2x32xf32>
    %1135 = arith.divf %1133, %1134 : vector<2x32xf32>
    %1136 = vector.extract_strided_slice %1101 {offsets = [0, 32], sizes = [2, 32], strides = [1, 1]} : vector<2x128xf32> to vector<2x32xf32>
    %1137 = arith.negf %1136 : vector<2x32xf32>
    %1138 = math.exp %1137 : vector<2x32xf32>
    %cst_385 = arith.constant 1.000000e+00 : f32
    %1139 = vector.broadcast %cst_385 : f32 to vector<2x32xf32>
    %1140 = arith.addf %1139, %1138 : vector<2x32xf32>
    %1141 = arith.divf %1139, %1140 : vector<2x32xf32>
    %1142 = vector.extract_strided_slice %1101 {offsets = [0, 64], sizes = [2, 32], strides = [1, 1]} : vector<2x128xf32> to vector<2x32xf32>
    %1143 = math.tanh %1142 : vector<2x32xf32>
    %1144 = vector.extract_strided_slice %1101 {offsets = [0, 96], sizes = [2, 32], strides = [1, 1]} : vector<2x128xf32> to vector<2x32xf32>
    %1145 = arith.negf %1144 : vector<2x32xf32>
    %1146 = math.exp %1145 : vector<2x32xf32>
    %cst_386 = arith.constant 1.000000e+00 : f32
    %1147 = vector.broadcast %cst_386 : f32 to vector<2x32xf32>
    %1148 = arith.addf %1147, %1146 : vector<2x32xf32>
    %1149 = arith.divf %1147, %1148 : vector<2x32xf32>
    %1150 = arith.mulf %1141, %1129 : vector<2x32xf32>
    %1151 = arith.mulf %1135, %1143 : vector<2x32xf32>
    %1152 = arith.addf %1150, %1151 : vector<2x32xf32>
    %1153 = math.tanh %1152 : vector<2x32xf32>
    %1154 = arith.mulf %1149, %1153 : vector<2x32xf32>
    %1155 = tpu.concatenate %1128, %1154 in 1 : vector<2x32xf32>, vector<2x32xf32> -> vector<2x64xf32>
    %c0_387 = arith.constant 0 : index
    %c0_388 = arith.constant 0 : index
    %1156 = vector.load %arg11[%c0_387, %c0_388] : memref<2x64xf32, #tpu.memory_space<vmem>>, vector<2x64xf32>
    tpu.vector_store %arg11[%c0_387, %c0_388], %1155 {strides = array<i32>} : memref<2x64xf32, #tpu.memory_space<vmem>>, vector<2x64xf32>,
    %1157 = tpu.concatenate %1126, %1152 in 1 : vector<2x32xf32>, vector<2x32xf32> -> vector<2x64xf32>
    %c0_389 = arith.constant 0 : index
    %c0_390 = arith.constant 0 : index
    %1158 = vector.load %arg12[%c0_389, %c0_390] : memref<2x64xf32, #tpu.memory_space<vmem>>, vector<2x64xf32>
    tpu.vector_store %arg12[%c0_389, %c0_390], %1157 {strides = array<i32>} : memref<2x64xf32, #tpu.memory_space<vmem>>, vector<2x64xf32>,
    %1159 = arith.index_cast %c5_i32_370 : i32 to index
    %c0_391 = arith.constant 0 : index
    %c0_392 = arith.constant 0 : index
    %1160 = vector.load %arg9[%1159, %c0_391, %c0_392] : memref<8x2x32xf32, #tpu.memory_space<vmem>>, vector<1x2x32xf32>
    %1161 = vector.shape_cast %1160 : vector<1x2x32xf32> to vector<2x32xf32>
    %1162 = vector.shape_cast %1128 : vector<2x32xf32> to vector<1x2x32xf32>
    tpu.vector_store %arg9[%1159, %c0_391, %c0_392], %1162 {strides = array<i32>} : memref<8x2x32xf32, #tpu.memory_space<vmem>>, vector<1x2x32xf32>,
    %c7_i32_393 = arith.constant 7 : i32
    %1163 = arith.subi %c7_i32_393, %c5_i32_370 : i32
    %1164 = arith.index_cast %1163 : i32 to index
    %c0_394 = arith.constant 0 : index
    %c0_395 = arith.constant 0 : index
    %1165 = vector.load %arg10[%1164, %c0_394, %c0_395] : memref<8x2x32xf32, #tpu.memory_space<vmem>>, vector<1x2x32xf32>
    %1166 = vector.shape_cast %1165 : vector<1x2x32xf32> to vector<2x32xf32>
    %1167 = vector.shape_cast %1154 : vector<2x32xf32> to vector<1x2x32xf32>
    tpu.vector_store %arg10[%1164, %c0_394, %c0_395], %1167 {strides = array<i32>} : memref<8x2x32xf32, #tpu.memory_space<vmem>>, vector<1x2x32xf32>,
    %c6_i32_396 = arith.constant 6 : i32
    %c0_397 = arith.constant 0 : index
    %c0_398 = arith.constant 0 : index
    %1168 = vector.load %arg11[%c0_397, %c0_398] : memref<2x64xf32, #tpu.memory_space<vmem>>, vector<2x64xf32>
    %cst_399 = arith.constant dense<0.000000e+00> : vector<2x256xf32>
    %1169 = tpu.matmul %1168, %681, %cst_399 {dimension_numbers = #tpu.dot_dimension_numbers<[1], [0], [0], [1], [0, 0, 1, 1], [], []>} : vector<2x64xf32>, vector<64x256xf32>, vector<2x256xf32> -> vector<2x256xf32>
    %1170 = arith.index_cast %c6_i32_396 : i32 to index
    %c0_400 = arith.constant 0 : index
    %c0_401 = arith.constant 0 : index
    %1171 = vector.load %arg8[%1170, %c0_400, %c0_401] : memref<8x2x256xf32, #tpu.memory_space<vmem>>, vector<1x2x256xf32>
    %1172 = vector.shape_cast %1171 : vector<1x2x256xf32> to vector<2x256xf32>
    %c7_i32_402 = arith.constant 7 : i32
    %1173 = arith.subi %c7_i32_402, %c6_i32_396 : i32
    %1174 = arith.index_cast %1173 : i32 to index
    %c0_403 = arith.constant 0 : index
    %c0_404 = arith.constant 0 : index
    %1175 = vector.load %arg8[%1174, %c0_403, %c0_404] : memref<8x2x256xf32, #tpu.memory_space<vmem>>, vector<1x2x256xf32>
    %1176 = vector.shape_cast %1175 : vector<1x2x256xf32> to vector<2x256xf32>
    %1177 = vector.extract_strided_slice %1172 {offsets = [0, 0], sizes = [2, 128], strides = [1, 1]} : vector<2x256xf32> to vector<2x128xf32>
    %1178 = vector.extract_strided_slice %1169 {offsets = [0, 0], sizes = [2, 128], strides = [1, 1]} : vector<2x256xf32> to vector<2x128xf32>
    %1179 = arith.addf %1177, %1178 : vector<2x128xf32>
    %1180 = vector.extract_strided_slice %1176 {offsets = [0, 128], sizes = [2, 128], strides = [1, 1]} : vector<2x256xf32> to vector<2x128xf32>
    %1181 = vector.extract_strided_slice %1169 {offsets = [0, 128], sizes = [2, 128], strides = [1, 1]} : vector<2x256xf32> to vector<2x128xf32>
    %1182 = arith.addf %1180, %1181 : vector<2x128xf32>
    %c0_405 = arith.constant 0 : index
    %c0_406 = arith.constant 0 : index
    %1183 = vector.load %arg12[%c0_405, %c0_406] : memref<2x64xf32, #tpu.memory_space<vmem>>, vector<2x64xf32>
    %1184 = vector.extract_strided_slice %1183 {offsets = [0, 0], sizes = [2, 32], strides = [1, 1]} : vector<2x64xf32> to vector<2x32xf32>
    %1185 = vector.extract_strided_slice %1179 {offsets = [0, 0], sizes = [2, 32], strides = [1, 1]} : vector<2x128xf32> to vector<2x32xf32>
    %1186 = arith.negf %1185 : vector<2x32xf32>
    %1187 = math.exp %1186 : vector<2x32xf32>
    %cst_407 = arith.constant 1.000000e+00 : f32
    %1188 = vector.broadcast %cst_407 : f32 to vector<2x32xf32>
    %1189 = arith.addf %1188, %1187 : vector<2x32xf32>
    %1190 = arith.divf %1188, %1189 : vector<2x32xf32>
    %1191 = vector.extract_strided_slice %1179 {offsets = [0, 32], sizes = [2, 32], strides = [1, 1]} : vector<2x128xf32> to vector<2x32xf32>
    %1192 = arith.negf %1191 : vector<2x32xf32>
    %1193 = math.exp %1192 : vector<2x32xf32>
    %cst_408 = arith.constant 1.000000e+00 : f32
    %1194 = vector.broadcast %cst_408 : f32 to vector<2x32xf32>
    %1195 = arith.addf %1194, %1193 : vector<2x32xf32>
    %1196 = arith.divf %1194, %1195 : vector<2x32xf32>
    %1197 = vector.extract_strided_slice %1179 {offsets = [0, 64], sizes = [2, 32], strides = [1, 1]} : vector<2x128xf32> to vector<2x32xf32>
    %1198 = math.tanh %1197 : vector<2x32xf32>
    %1199 = vector.extract_strided_slice %1179 {offsets = [0, 96], sizes = [2, 32], strides = [1, 1]} : vector<2x128xf32> to vector<2x32xf32>
    %1200 = arith.negf %1199 : vector<2x32xf32>
    %1201 = math.exp %1200 : vector<2x32xf32>
    %cst_409 = arith.constant 1.000000e+00 : f32
    %1202 = vector.broadcast %cst_409 : f32 to vector<2x32xf32>
    %1203 = arith.addf %1202, %1201 : vector<2x32xf32>
    %1204 = arith.divf %1202, %1203 : vector<2x32xf32>
    %1205 = arith.mulf %1196, %1184 : vector<2x32xf32>
    %1206 = arith.mulf %1190, %1198 : vector<2x32xf32>
    %1207 = arith.addf %1205, %1206 : vector<2x32xf32>
    %1208 = math.tanh %1207 : vector<2x32xf32>
    %1209 = arith.mulf %1204, %1208 : vector<2x32xf32>
    %1210 = vector.extract_strided_slice %1183 {offsets = [0, 32], sizes = [2, 32], strides = [1, 1]} : vector<2x64xf32> to vector<2x32xf32>
    %1211 = vector.extract_strided_slice %1182 {offsets = [0, 0], sizes = [2, 32], strides = [1, 1]} : vector<2x128xf32> to vector<2x32xf32>
    %1212 = arith.negf %1211 : vector<2x32xf32>
    %1213 = math.exp %1212 : vector<2x32xf32>
    %cst_410 = arith.constant 1.000000e+00 : f32
    %1214 = vector.broadcast %cst_410 : f32 to vector<2x32xf32>
    %1215 = arith.addf %1214, %1213 : vector<2x32xf32>
    %1216 = arith.divf %1214, %1215 : vector<2x32xf32>
    %1217 = vector.extract_strided_slice %1182 {offsets = [0, 32], sizes = [2, 32], strides = [1, 1]} : vector<2x128xf32> to vector<2x32xf32>
    %1218 = arith.negf %1217 : vector<2x32xf32>
    %1219 = math.exp %1218 : vector<2x32xf32>
    %cst_411 = arith.constant 1.000000e+00 : f32
    %1220 = vector.broadcast %cst_411 : f32 to vector<2x32xf32>
    %1221 = arith.addf %1220, %1219 : vector<2x32xf32>
    %1222 = arith.divf %1220, %1221 : vector<2x32xf32>
    %1223 = vector.extract_strided_slice %1182 {offsets = [0, 64], sizes = [2, 32], strides = [1, 1]} : vector<2x128xf32> to vector<2x32xf32>
    %1224 = math.tanh %1223 : vector<2x32xf32>
    %1225 = vector.extract_strided_slice %1182 {offsets = [0, 96], sizes = [2, 32], strides = [1, 1]} : vector<2x128xf32> to vector<2x32xf32>
    %1226 = arith.negf %1225 : vector<2x32xf32>
    %1227 = math.exp %1226 : vector<2x32xf32>
    %cst_412 = arith.constant 1.000000e+00 : f32
    %1228 = vector.broadcast %cst_412 : f32 to vector<2x32xf32>
    %1229 = arith.addf %1228, %1227 : vector<2x32xf32>
    %1230 = arith.divf %1228, %1229 : vector<2x32xf32>
    %1231 = arith.mulf %1222, %1210 : vector<2x32xf32>
    %1232 = arith.mulf %1216, %1224 : vector<2x32xf32>
    %1233 = arith.addf %1231, %1232 : vector<2x32xf32>
    %1234 = math.tanh %1233 : vector<2x32xf32>
    %1235 = arith.mulf %1230, %1234 : vector<2x32xf32>
    %1236 = tpu.concatenate %1209, %1235 in 1 : vector<2x32xf32>, vector<2x32xf32> -> vector<2x64xf32>
    %c0_413 = arith.constant 0 : index
    %c0_414 = arith.constant 0 : index
    %1237 = vector.load %arg11[%c0_413, %c0_414] : memref<2x64xf32, #tpu.memory_space<vmem>>, vector<2x64xf32>
    tpu.vector_store %arg11[%c0_413, %c0_414], %1236 {strides = array<i32>} : memref<2x64xf32, #tpu.memory_space<vmem>>, vector<2x64xf32>,
    %1238 = tpu.concatenate %1207, %1233 in 1 : vector<2x32xf32>, vector<2x32xf32> -> vector<2x64xf32>
    %c0_415 = arith.constant 0 : index
    %c0_416 = arith.constant 0 : index
    %1239 = vector.load %arg12[%c0_415, %c0_416] : memref<2x64xf32, #tpu.memory_space<vmem>>, vector<2x64xf32>
    tpu.vector_store %arg12[%c0_415, %c0_416], %1238 {strides = array<i32>} : memref<2x64xf32, #tpu.memory_space<vmem>>, vector<2x64xf32>,
    %1240 = arith.index_cast %c6_i32_396 : i32 to index
    %c0_417 = arith.constant 0 : index
    %c0_418 = arith.constant 0 : index
    %1241 = vector.load %arg9[%1240, %c0_417, %c0_418] : memref<8x2x32xf32, #tpu.memory_space<vmem>>, vector<1x2x32xf32>
    %1242 = vector.shape_cast %1241 : vector<1x2x32xf32> to vector<2x32xf32>
    %1243 = vector.shape_cast %1209 : vector<2x32xf32> to vector<1x2x32xf32>
    tpu.vector_store %arg9[%1240, %c0_417, %c0_418], %1243 {strides = array<i32>} : memref<8x2x32xf32, #tpu.memory_space<vmem>>, vector<1x2x32xf32>,
    %c7_i32_419 = arith.constant 7 : i32
    %1244 = arith.subi %c7_i32_419, %c6_i32_396 : i32
    %1245 = arith.index_cast %1244 : i32 to index
    %c0_420 = arith.constant 0 : index
    %c0_421 = arith.constant 0 : index
    %1246 = vector.load %arg10[%1245, %c0_420, %c0_421] : memref<8x2x32xf32, #tpu.memory_space<vmem>>, vector<1x2x32xf32>
    %1247 = vector.shape_cast %1246 : vector<1x2x32xf32> to vector<2x32xf32>
    %1248 = vector.shape_cast %1235 : vector<2x32xf32> to vector<1x2x32xf32>
    tpu.vector_store %arg10[%1245, %c0_420, %c0_421], %1248 {strides = array<i32>} : memref<8x2x32xf32, #tpu.memory_space<vmem>>, vector<1x2x32xf32>,
    %c7_i32_422 = arith.constant 7 : i32
    %c0_423 = arith.constant 0 : index
    %c0_424 = arith.constant 0 : index
    %1249 = vector.load %arg11[%c0_423, %c0_424] : memref<2x64xf32, #tpu.memory_space<vmem>>, vector<2x64xf32>
    %cst_425 = arith.constant dense<0.000000e+00> : vector<2x256xf32>
    %1250 = tpu.matmul %1249, %681, %cst_425 {dimension_numbers = #tpu.dot_dimension_numbers<[1], [0], [0], [1], [0, 0, 1, 1], [], []>} : vector<2x64xf32>, vector<64x256xf32>, vector<2x256xf32> -> vector<2x256xf32>
    %1251 = arith.index_cast %c7_i32_422 : i32 to index
    %c0_426 = arith.constant 0 : index
    %c0_427 = arith.constant 0 : index
    %1252 = vector.load %arg8[%1251, %c0_426, %c0_427] : memref<8x2x256xf32, #tpu.memory_space<vmem>>, vector<1x2x256xf32>
    %1253 = vector.shape_cast %1252 : vector<1x2x256xf32> to vector<2x256xf32>
    %c7_i32_428 = arith.constant 7 : i32
    %1254 = arith.subi %c7_i32_428, %c7_i32_422 : i32
    %1255 = arith.index_cast %1254 : i32 to index
    %c0_429 = arith.constant 0 : index
    %c0_430 = arith.constant 0 : index
    %1256 = vector.load %arg8[%1255, %c0_429, %c0_430] : memref<8x2x256xf32, #tpu.memory_space<vmem>>, vector<1x2x256xf32>
    %1257 = vector.shape_cast %1256 : vector<1x2x256xf32> to vector<2x256xf32>
    %1258 = vector.extract_strided_slice %1253 {offsets = [0, 0], sizes = [2, 128], strides = [1, 1]} : vector<2x256xf32> to vector<2x128xf32>
    %1259 = vector.extract_strided_slice %1250 {offsets = [0, 0], sizes = [2, 128], strides = [1, 1]} : vector<2x256xf32> to vector<2x128xf32>
    %1260 = arith.addf %1258, %1259 : vector<2x128xf32>
    %1261 = vector.extract_strided_slice %1257 {offsets = [0, 128], sizes = [2, 128], strides = [1, 1]} : vector<2x256xf32> to vector<2x128xf32>
    %1262 = vector.extract_strided_slice %1250 {offsets = [0, 128], sizes = [2, 128], strides = [1, 1]} : vector<2x256xf32> to vector<2x128xf32>
    %1263 = arith.addf %1261, %1262 : vector<2x128xf32>
    %c0_431 = arith.constant 0 : index
    %c0_432 = arith.constant 0 : index
    %1264 = vector.load %arg12[%c0_431, %c0_432] : memref<2x64xf32, #tpu.memory_space<vmem>>, vector<2x64xf32>
    %1265 = vector.extract_strided_slice %1264 {offsets = [0, 0], sizes = [2, 32], strides = [1, 1]} : vector<2x64xf32> to vector<2x32xf32>
    %1266 = vector.extract_strided_slice %1260 {offsets = [0, 0], sizes = [2, 32], strides = [1, 1]} : vector<2x128xf32> to vector<2x32xf32>
    %1267 = arith.negf %1266 : vector<2x32xf32>
    %1268 = math.exp %1267 : vector<2x32xf32>
    %cst_433 = arith.constant 1.000000e+00 : f32
    %1269 = vector.broadcast %cst_433 : f32 to vector<2x32xf32>
    %1270 = arith.addf %1269, %1268 : vector<2x32xf32>
    %1271 = arith.divf %1269, %1270 : vector<2x32xf32>
    %1272 = vector.extract_strided_slice %1260 {offsets = [0, 32], sizes = [2, 32], strides = [1, 1]} : vector<2x128xf32> to vector<2x32xf32>
    %1273 = arith.negf %1272 : vector<2x32xf32>
    %1274 = math.exp %1273 : vector<2x32xf32>
    %cst_434 = arith.constant 1.000000e+00 : f32
    %1275 = vector.broadcast %cst_434 : f32 to vector<2x32xf32>
    %1276 = arith.addf %1275, %1274 : vector<2x32xf32>
    %1277 = arith.divf %1275, %1276 : vector<2x32xf32>
    %1278 = vector.extract_strided_slice %1260 {offsets = [0, 64], sizes = [2, 32], strides = [1, 1]} : vector<2x128xf32> to vector<2x32xf32>
    %1279 = math.tanh %1278 : vector<2x32xf32>
    %1280 = vector.extract_strided_slice %1260 {offsets = [0, 96], sizes = [2, 32], strides = [1, 1]} : vector<2x128xf32> to vector<2x32xf32>
    %1281 = arith.negf %1280 : vector<2x32xf32>
    %1282 = math.exp %1281 : vector<2x32xf32>
    %cst_435 = arith.constant 1.000000e+00 : f32
    %1283 = vector.broadcast %cst_435 : f32 to vector<2x32xf32>
    %1284 = arith.addf %1283, %1282 : vector<2x32xf32>
    %1285 = arith.divf %1283, %1284 : vector<2x32xf32>
    %1286 = arith.mulf %1277, %1265 : vector<2x32xf32>
    %1287 = arith.mulf %1271, %1279 : vector<2x32xf32>
    %1288 = arith.addf %1286, %1287 : vector<2x32xf32>
    %1289 = math.tanh %1288 : vector<2x32xf32>
    %1290 = arith.mulf %1285, %1289 : vector<2x32xf32>
    %1291 = vector.extract_strided_slice %1264 {offsets = [0, 32], sizes = [2, 32], strides = [1, 1]} : vector<2x64xf32> to vector<2x32xf32>
    %1292 = vector.extract_strided_slice %1263 {offsets = [0, 0], sizes = [2, 32], strides = [1, 1]} : vector<2x128xf32> to vector<2x32xf32>
    %1293 = arith.negf %1292 : vector<2x32xf32>
    %1294 = math.exp %1293 : vector<2x32xf32>
    %cst_436 = arith.constant 1.000000e+00 : f32
    %1295 = vector.broadcast %cst_436 : f32 to vector<2x32xf32>
    %1296 = arith.addf %1295, %1294 : vector<2x32xf32>
    %1297 = arith.divf %1295, %1296 : vector<2x32xf32>
    %1298 = vector.extract_strided_slice %1263 {offsets = [0, 32], sizes = [2, 32], strides = [1, 1]} : vector<2x128xf32> to vector<2x32xf32>
    %1299 = arith.negf %1298 : vector<2x32xf32>
    %1300 = math.exp %1299 : vector<2x32xf32>
    %cst_437 = arith.constant 1.000000e+00 : f32
    %1301 = vector.broadcast %cst_437 : f32 to vector<2x32xf32>
    %1302 = arith.addf %1301, %1300 : vector<2x32xf32>
    %1303 = arith.divf %1301, %1302 : vector<2x32xf32>
    %1304 = vector.extract_strided_slice %1263 {offsets = [0, 64], sizes = [2, 32], strides = [1, 1]} : vector<2x128xf32> to vector<2x32xf32>
    %1305 = math.tanh %1304 : vector<2x32xf32>
    %1306 = vector.extract_strided_slice %1263 {offsets = [0, 96], sizes = [2, 32], strides = [1, 1]} : vector<2x128xf32> to vector<2x32xf32>
    %1307 = arith.negf %1306 : vector<2x32xf32>
    %1308 = math.exp %1307 : vector<2x32xf32>
    %cst_438 = arith.constant 1.000000e+00 : f32
    %1309 = vector.broadcast %cst_438 : f32 to vector<2x32xf32>
    %1310 = arith.addf %1309, %1308 : vector<2x32xf32>
    %1311 = arith.divf %1309, %1310 : vector<2x32xf32>
    %1312 = arith.mulf %1303, %1291 : vector<2x32xf32>
    %1313 = arith.mulf %1297, %1305 : vector<2x32xf32>
    %1314 = arith.addf %1312, %1313 : vector<2x32xf32>
    %1315 = math.tanh %1314 : vector<2x32xf32>
    %1316 = arith.mulf %1311, %1315 : vector<2x32xf32>
    %1317 = tpu.concatenate %1290, %1316 in 1 : vector<2x32xf32>, vector<2x32xf32> -> vector<2x64xf32>
    %c0_439 = arith.constant 0 : index
    %c0_440 = arith.constant 0 : index
    %1318 = vector.load %arg11[%c0_439, %c0_440] : memref<2x64xf32, #tpu.memory_space<vmem>>, vector<2x64xf32>
    tpu.vector_store %arg11[%c0_439, %c0_440], %1317 {strides = array<i32>} : memref<2x64xf32, #tpu.memory_space<vmem>>, vector<2x64xf32>,
    %1319 = tpu.concatenate %1288, %1314 in 1 : vector<2x32xf32>, vector<2x32xf32> -> vector<2x64xf32>
    %c0_441 = arith.constant 0 : index
    %c0_442 = arith.constant 0 : index
    %1320 = vector.load %arg12[%c0_441, %c0_442] : memref<2x64xf32, #tpu.memory_space<vmem>>, vector<2x64xf32>
    tpu.vector_store %arg12[%c0_441, %c0_442], %1319 {strides = array<i32>} : memref<2x64xf32, #tpu.memory_space<vmem>>, vector<2x64xf32>,
    %1321 = arith.index_cast %c7_i32_422 : i32 to index
    %c0_443 = arith.constant 0 : index
    %c0_444 = arith.constant 0 : index
    %1322 = vector.load %arg9[%1321, %c0_443, %c0_444] : memref<8x2x32xf32, #tpu.memory_space<vmem>>, vector<1x2x32xf32>
    %1323 = vector.shape_cast %1322 : vector<1x2x32xf32> to vector<2x32xf32>
    %1324 = vector.shape_cast %1290 : vector<2x32xf32> to vector<1x2x32xf32>
    tpu.vector_store %arg9[%1321, %c0_443, %c0_444], %1324 {strides = array<i32>} : memref<8x2x32xf32, #tpu.memory_space<vmem>>, vector<1x2x32xf32>,
    %c7_i32_445 = arith.constant 7 : i32
    %1325 = arith.subi %c7_i32_445, %c7_i32_422 : i32
    %1326 = arith.index_cast %1325 : i32 to index
    %c0_446 = arith.constant 0 : index
    %c0_447 = arith.constant 0 : index
    %1327 = vector.load %arg10[%1326, %c0_446, %c0_447] : memref<8x2x32xf32, #tpu.memory_space<vmem>>, vector<1x2x32xf32>
    %1328 = vector.shape_cast %1327 : vector<1x2x32xf32> to vector<2x32xf32>
    %1329 = vector.shape_cast %1316 : vector<2x32xf32> to vector<1x2x32xf32>
    tpu.vector_store %arg10[%1326, %c0_446, %c0_447], %1329 {strides = array<i32>} : memref<8x2x32xf32, #tpu.memory_space<vmem>>, vector<1x2x32xf32>,
    %c8_i32_448 = arith.constant 8 : i32
    %c0_449 = arith.constant 0 : index
    %c0_450 = arith.constant 0 : index
    %c0_451 = arith.constant 0 : index
    %1330 = vector.load %arg9[%c0_449, %c0_450, %c0_451] : memref<8x2x32xf32, #tpu.memory_space<vmem>>, vector<8x2x32xf32>
    %c0_452 = arith.constant 0 : index
    %c0_453 = arith.constant 0 : index
    %c0_454 = arith.constant 0 : index
    %1331 = vector.load %arg10[%c0_452, %c0_453, %c0_454] : memref<8x2x32xf32, #tpu.memory_space<vmem>>, vector<8x2x32xf32>
    %1332 = tpu.concatenate %1330, %1331 in 2 : vector<8x2x32xf32>, vector<8x2x32xf32> -> vector<8x2x64xf32>
    %c0_455 = arith.constant 0 : index
    %c0_456 = arith.constant 0 : index
    %c0_457 = arith.constant 0 : index
    %1333 = vector.load %arg7[%c0_455, %c0_456, %c0_457] : memref<8x2x64xf32, #tpu.memory_space<vmem>>, vector<8x2x64xf32>
    tpu.vector_store %arg7[%c0_455, %c0_456, %c0_457], %1332 {strides = array<i32>} : memref<8x2x64xf32, #tpu.memory_space<vmem>>, vector<8x2x64xf32>,
    return
  }
}

</mosaic_0001>

<bundles_post_ra>
// kernel: tpu_custom_call.1
= control target key start
LH: loop header
LB: loop body
LE: loop exit
PB: predicated region body
PF: predicated region fallthrough
CT: control target
= control target key end

     0   :  { %12 = vsyncpa [#allocation8], 0  ;;  %s5324_s0 = inlined_call_operand.hbm [shape: f32[8,2,16], index: 0, kind: input, shape index: {}]   ;;  %s5325_s1 = inlined_call_operand.hbm [shape: f32[16,256], index: 1, kind: input, shape index: {}]   ;;  %s5326_s2 = inlined_call_operand.hbm [shape: f32[64,256], index: 2, kind: input, shape index: {}]   ;;  %s5327_s3 = inlined_call_operand.vmem [shape: f32[1,256], index: 3, kind: input, shape index: {}]   ;;  %s5328_s4 = inlined_call_operand.hbm [shape: f32[64,256], index: 4, kind: input, shape index: {}]   ;;  %s5329_s5 = inlined_call_operand.hbm [shape: f32[64,256], index: 5, kind: input, shape index: {}]   ;;  %s5330_s6 = inlined_call_operand.vmem [shape: f32[1,256], index: 6, kind: input, shape index: {}]   ;;  %s5331_s7 = inlined_call_operand.hbm [shape: f32[8,2,64], index: 7, kind: output, shape index: {}]  }
   0x1   :  { %13 = vsyncpa [#allocation11], 0 }
   0x2   :  { %14 = vsyncpa [#allocation14], 0 }
   0x3   :  { %15 = vsyncpa [#allocation9], 0  ;;  %s4489_s24 = smov [#allocation10]   ;;  %s4349_s28 = scalar_lea.hbm %s5325_s1, 512 }
   0x4   :  { %s33_s25 = sshll.u32 %s4489_s24, 4  ;;  %p4350_p0 = scmp.ne.s32.totalorder %s5325_s1, %s4349_s28  ;;  %s34_s25 = int_to_ptr.vmem [resolvable:$true] %s33_s25 }
   0x5   :  { %p4353_p1 = scmp.lt.u32.totalorder %s4349_s28, %s5325_s1 }
   0x7   :  { %p4355_p2 = pnand %p4353_p1, %p4350_p0 }
   0x9   :  { %4358 = shalt.err (!%p4355_p2)
}
   0xa   :  { %s4359_s10 = scalar_lea.vmem %s34_s25, 512  ;;  %p4364_p4 = scmp.lt.s32.totalorder %s34_s25, %s34_s25 }
   0xb   :  { %p4360_p3 = scmp.ne.s32.totalorder %s34_s25, %s4359_s10  ;;  %p4365_p5 = scmp.lt.s32.totalorder %s4359_s10, %s4359_s10 }
   0xd   :  { %p4366_p6 = por %p4365_p5, %p4364_p4 }
   0xf   :  { %p4367_p7 = pnand %p4366_p6, %p4360_p3 }
  0x11   :  { %4370 = shalt.err (!%p4367_p7)
}
  0x12   :  { %s4490_s11 = smov 256   ;;  %s4491_s12 = smov 16  }
  0x13   :  { %39 = dma.hbm_to_vmem [thread:$0]  %s5325_s1, 512, %s34_s25, [#allocation11], %s4490_s11, %s4490_s11, %s4491_s12  }
  0x14   :  { %s4492_s15 = smov [#allocation13]   ;;  %s4493_s17 = smov [#allocation7]  }
  0x15   :  { %s59_s16 = sshll.u32 %s4492_s15, 4  ;;  %s21_s18 = sshll.u32 %s4493_s17, 4  ;;  %s60_s16 = int_to_ptr.vmem [resolvable:$true] %s59_s16  ;;  %s22_s18 = int_to_ptr.vmem [resolvable:$true] %s21_s18 }
  0x16   :  { %s4371_s21 = scalar_lea.hbm %s5328_s4, 2048 }
  0x17   :  { %p4372_p8 = scmp.ne.s32.totalorder %s5328_s4, %s4371_s21  ;;  %p4375_p9 = scmp.lt.u32.totalorder %s4371_s21, %s5328_s4 }
  0x19   :  { %p4377_p10 = pnand %p4375_p9, %p4372_p8 }
  0x1b   :  { %4380 = shalt.err (!%p4377_p10)
}
  0x1c   :  { %s4381_s1 = scalar_lea.vmem %s60_s16, 2048  ;;  %p4386_p12 = scmp.lt.s32.totalorder %s60_s16, %s60_s16 }
  0x1d   :  { %p4382_p11 = scmp.ne.s32.totalorder %s60_s16, %s4381_s1  ;;  %p4387_p13 = scmp.lt.s32.totalorder %s4381_s1, %s4381_s1 }
  0x1f   :  { %p4388_p0 = por %p4387_p13, %p4386_p12 }
  0x21   :  { %p4389_p1 = pnand %p4388_p0, %p4382_p11 }
  0x23   :  { %4392 = shalt.err (!%p4389_p1)
}
  0x24   :  { %65 = dma.hbm_to_vmem [thread:$0]  %s5328_s4, 2048, %s60_s16, [#allocation14], %s4490_s11, %s4490_s11, %s4491_s12  }
  0x25   :  { %s4393_s30 = scalar_lea.hbm %s5324_s0, 256 }
  0x26   :  { %p4394_p2 = scmp.ne.s32.totalorder %s5324_s0, %s4393_s30  ;;  %p4397_p3 = scmp.lt.u32.totalorder %s4393_s30, %s5324_s0 }
  0x28   :  { %p4399_p4 = pnand %p4397_p3, %p4394_p2 }
  0x2a   :  { %4402 = shalt.err (!%p4399_p4)
}
  0x2b   :  { %s4403_s14 = scalar_lea.vmem %s22_s18, 256  ;;  %p4408_p6 = scmp.lt.s32.totalorder %s22_s18, %s22_s18 }
  0x2c   :  { %p4404_p5 = scmp.ne.s32.totalorder %s22_s18, %s4403_s14  ;;  %p4409_p7 = scmp.lt.s32.totalorder %s4403_s14, %s4403_s14 }
  0x2e   :  { %p4410_p8 = por %p4409_p7, %p4408_p6 }
  0x30   :  { %p4411_p9 = pnand %p4410_p8, %p4404_p5 }
  0x32   :  { %4414 = shalt.err (!%p4411_p9)
}
  0x33   :  { %s4494_s4 = smov 32   ;;  %s4495_s15 = smov 2  }
  0x34   :  { %27 = dma.hbm_to_vmem [thread:$0]  %s5324_s0, 256, %s22_s18, [#allocation8], %s4494_s4, %s4494_s4, %s4495_s15  }
  0x35   :  { %s4496_s19 = smov [#allocation12]   ;;  %s4497_s21 = smov [#allocation15]  }
  0x36   :  { %s45_s20 = sshll.u32 %s4496_s19, 4  ;;  %s71_s22 = sshll.u32 %s4497_s21, 4  ;;  %s46_s20 = int_to_ptr.vmem [resolvable:$true] %s45_s20  ;;  %s72_s22 = int_to_ptr.vmem [resolvable:$true] %s71_s22 }
  0x37   :  { %s4415_s26 = scalar_lea.hbm %s5326_s2, 2048 }
  0x38   :  { %p4416_p10 = scmp.ne.s32.totalorder %s5326_s2, %s4415_s26  ;;  %p4419_p11 = scmp.lt.u32.totalorder %s4415_s26, %s5326_s2 }
  0x3a   :  { %p4421_p12 = pnand %p4419_p11, %p4416_p10 }
  0x3c   :  { %4424 = shalt.err (!%p4421_p12)
}
  0x3d   :  { %s4425_s0 = scalar_lea.vmem %s46_s20, 2048  ;;  %p4430_p0 = scmp.lt.s32.totalorder %s46_s20, %s46_s20 }
  0x3e   :  { %p4426_p13 = scmp.ne.s32.totalorder %s46_s20, %s4425_s0  ;;  %p4431_p1 = scmp.lt.s32.totalorder %s4425_s0, %s4425_s0 }
  0x40   :  { %p4432_p2 = por %p4431_p1, %p4430_p0 }
  0x42   :  { %p4433_p3 = pnand %p4432_p2, %p4426_p13 }
  0x44   :  { %4436 = shalt.err (!%p4433_p3)
}
  0x45   :  { %51 = dma.hbm_to_vmem [thread:$0]  %s5326_s2, 2048, %s46_s20, [#allocation11], %s4490_s11, %s4490_s11, %s4491_s12  }
  0x46   :  { %s4437_s9 = scalar_lea.hbm %s5329_s5, 2048 }
  0x47   :  { %p4438_p4 = scmp.ne.s32.totalorder %s5329_s5, %s4437_s9  ;;  %p4441_p5 = scmp.lt.u32.totalorder %s4437_s9, %s5329_s5 }
  0x49   :  { %p4443_p6 = pnand %p4441_p5, %p4438_p4 }
  0x4b   :  { %4446 = shalt.err (!%p4443_p6)
}
  0x4c   :  { %s4447_s17 = scalar_lea.vmem %s72_s22, 2048  ;;  %p4452_p8 = scmp.lt.s32.totalorder %s72_s22, %s72_s22 }
  0x4d   :  { %p4448_p7 = scmp.ne.s32.totalorder %s72_s22, %s4447_s17  ;;  %p4453_p9 = scmp.lt.s32.totalorder %s4447_s17, %s4447_s17 }
  0x4f   :  { %p4454_p10 = por %p4453_p9, %p4452_p8 }
  0x51   :  { %p4455_p11 = pnand %p4454_p10, %p4448_p7 }
  0x53   :  { %4458 = shalt.err (!%p4455_p11)
}
  0x54   :  { %77 = dma.hbm_to_vmem [thread:$0]  %s5329_s5, 2048, %s72_s22, [#allocation14], %s4490_s11, %s4490_s11, %s4491_s12  }
  0x55   :  { %4481 = dma.done.wait [#allocation8], 256  }
  0x56   :  { %4482 = vsyncadd [#allocation8], 4294967040 }
  0x57   :  { %4483 = dma.done.wait [#allocation11], 2560  }
  0x58   :  { %4484 = vsyncadd [#allocation11], 4294964736 }
  0x59   :  { %4485 = dma.done.wait [#allocation14], 4096  }
  0x5a   :  { %4486 = vsyncadd [#allocation14], 4294963200  ;;  %v4498_v0 = vmov 0.0   ;;  %v109_v1 = vlaneseq  ;;  %v4499_v2 = vmov 1983009808   ;;  %vm299_vm0 = vcmask 517120  }
  0x5b   :  { %230 = vmatprep.mubr.f32.mxu0 %v4498_v0  ;;  %v130_v3 = vunpack.c.l.s4 %v4499_v2  ;;  %387 = vmatprep.mubr.f32.mxu1 %v4498_v0  ;;  %300 = vst.msk [vmem:[#allocation5] sm:$0x3] %vm299_vm0, %v4498_v0  ;;  %301 = vst.msk [vmem:[#allocation6] sm:$0x3] %vm299_vm0, %v4498_v0  ;;  %v104_v6 = vld [vmem:[#allocation10 + $0x8] sm:$0xff]  ;;  %v106_v7 = vld [vmem:[#allocation10 + $0x18] sm:$0xff] }
  0x5c   :  { %v4624_v4 = vshrl.u32 %v109_v1, 7  ;;  %v103_v8 = vld [vmem:[#allocation10] sm:$0xff]  ;;  %v3799_v9 = vpack.c.bf16 %v106_v7, %v104_v6  ;;  %v105_v10 = vld [vmem:[#allocation10 + $0x10] sm:$0xff]  ;;  %v303_v11 = vld [vmem:[#allocation12 + $0x8] sm:$0xff]  ;;  %vm161_vm1 = vcmask 130048   ;;  %vm319_vm2 = vcmask 523264  }
  0x5d   :  { %v131_v5 = vunpack.c.0.s8 %v130_v3  ;;  %v305_v12 = vld [vmem:[#allocation12 + $0x18] sm:$0xff]  ;;  %v3801_v13 = vpack.c.bf16 %v105_v10, %v103_v8  ;;  %v302_v15 = vld [vmem:[#allocation12] sm:$0xff]  ;;  %v304_v16 = vld [vmem:[#allocation12 + $0x10] sm:$0xff]  ;;  %s4501_s12 = smov 96   ;;  %vm500_vm3 = vcmask 254976   ;;  %vm484_vm4 = vcmask 261120  }
  0x5e   :  { %v4626_v14 = vpack.c.bf16 %v305_v12, %v303_v11  ;;  %v95_v17 = vld [vmem:[#allocation7] sm:$0x3]  ;;  %3800 = vmatprep.subr.bf16.mxu0 %v3799_v9  ;;  %v4631_v19 = vpack.c.bf16 %v304_v16, %v302_v15  ;;  %v96_v20 = vld [vmem:[#allocation7 + $0x2] sm:$0x3]  ;;  %v97_v21 = vld [vmem:[#allocation7 + $0x4] sm:$0x3] }
  0x5f   :  { %v4629_v18 = vsub.s32 %v131_v5, %v4624_v4  ;;  %v98_v22 = vld [vmem:[#allocation7 + $0x6] sm:$0x3]  ;;  %3802 = vmatpush1.bf16.msra.mxu0 %v3801_v13  ;;  %v127_v23 = vcombine.low %v95_v17, %v96_v20  ;;  %v307_v25 = vld [vmem:[#allocation12 + $0x28] sm:$0xff]  ;;  %v309_v26 = vld [vmem:[#allocation12 + $0x38] sm:$0xff]  ;;  %v111_v58 = vsub.s32 0, %v4624_v4  ;;  %v115_v60 = vsub.s32 1, %v4624_v4 }
  0x60   :  { %3804 = vmatprep.subr.bf16.mxu1 %v4626_v14  ;;  %v128_v24 = vcombine.low %v97_v21, %v98_v22  ;;  %v306_v27 = vld [vmem:[#allocation12 + $0x20] sm:$0xff]  ;;  %v4635_v28 = vpack.c.bf16 %v309_v26, %v307_v25  ;;  %v308_v29 = vld [vmem:[#allocation12 + $0x30] sm:$0xff]  ;;  %v99_v30 = vld [vmem:[#allocation7 + $0x8] sm:$0x3]  ;;  %3820 = vmatprep.subr.bf16.mxu0 %v4626_v14 }
  0x61   :  { %3806 = vmatpush1.bf16.msra.mxu1 %v4631_v19  ;;  %v100_v31 = vld [vmem:[#allocation7 + $0xa] sm:$0x3]  ;;  %v135_v32 = vrot.slane %v127_v23, %v4629_v18  ;;  %v4640_v34 = vpack.c.bf16 %v308_v29, %v306_v27  ;;  %v101_v35 = vld [vmem:[#allocation7 + $0xc] sm:$0x3]  ;;  %v102_v36 = vld [vmem:[#allocation7 + $0xe] sm:$0x3] }
  0x62   :  { %v142_v33 = vrot.slane %v128_v24, %v4629_v18  ;;  %v144_v37 = vcombine.low %v99_v30, %v100_v31  ;;  %v311_v38 = vld [vmem:[#allocation12 + $0x48] sm:$0xff]  ;;  %3808 = vmatprep.subr.bf16.mxu1 %v4635_v28  ;;  %v145_v39 = vcombine.low %v101_v35, %v102_v36  ;;  %v313_v40 = vld [vmem:[#allocation12 + $0x58] sm:$0xff]  ;;  %v310_v41 = vld [vmem:[#allocation12 + $0x40] sm:$0xff] }
  0x63   :  { %v312_v42 = vld [vmem:[#allocation12 + $0x50] sm:$0xff]  ;;  %v4644_v45 = vpack.c.bf16 %v313_v40, %v311_v38  ;;  %v315_v46 = vld [vmem:[#allocation12 + $0x68] sm:$0xff]  ;;  %v317_v47 = vld [vmem:[#allocation12 + $0x78] sm:$0xff] }
  0x64   :  { %v143_v43 = vcombine.low %v135_v32, %v142_v33  ;;  %v152_v44 = vrot.slane %v144_v37, %v4629_v18  ;;  %v159_v48 = vrot.slane %v145_v39, %v4629_v18  ;;  %v4648_v49 = vpack.c.bf16 %v312_v42, %v310_v41  ;;  %v4650_v50 = vld [vmem:[#allocation6] sm:$0x3]  ;;  %v314_v52 = vld [vmem:[#allocation12 + $0x60] sm:$0xff]  ;;  %v316_v53 = vld [vmem:[#allocation12 + $0x70] sm:$0xff] }
  0x65   :  { %3810 = vmatpush1.bf16.msra.mxu1 %v4640_v34  ;;  %v4654_v51 = vpack.c.bf16 %v317_v47, %v315_v46  ;;  %v417_v54 = vrot.slane %v4650_v50, %v4629_v18  ;;  %v4663_v56 = vpack.c.bf16 %v316_v53, %v314_v52  ;;  %v318_v57 = vld [vmem:[#allocation5] sm:$0x3] }
  0x66   :  { %3737 = vmatmul.mubr.msk.f32.vlgmr.msra.gmra.mrb[0].mxu0 %vm161_vm1, %v143_v43  ;;  %3812 = vmatprep.subr.bf16.mxu1 %v4644_v45  ;;  %v160_v55 = vcombine.low %v152_v44, %v159_v48  ;;  %v107_v59 = vld [vmem:[%s5327_s3] sm:$0x3]  ;;  %s4500_s3 = smov 64  }
  0x67   :  { %236 = vmatprep.mubr.f32.mxu0 %v4498_v0  ;;  %3822 = vmatpush1.bf16.msra.mxu0 %v4631_v19  ;;  %v112_v61 = vrot.slane %v107_v59, %v111_v58  ;;  %v116_v62 = vrot.slane %v107_v59, %v115_v60 }
  0x68   :  { %418 = vrot.lane.b32.xlu1 %v417_v54, %s4494_s4  ;;  %3824 = vmatprep.subr.bf16.mxu0 %v4635_v28 }
  0x69   :  { %3814 = vmatpush1.bf16.msra.mxu1 %v4648_v49 }
  0x6a   :  { %3738 = vmatmul.mubr.msk.f32.gmra.mrb[2].mxu0 %vm161_vm1, %v160_v55  ;;  %3816 = vmatprep.subr.bf16.mxu1 %v4654_v51 }
  0x6b   :  { %3826 = vmatpush1.bf16.msra.mxu0 %v4640_v34  ;;  %575 = vmatprep.mubr.f32.mxu0 %v4498_v0 }
  0x6c   :  { %3828 = vmatprep.subr.bf16.mxu0 %v4644_v45 }
  0x6d   :  { %3818 = vmatpush1.bf16.msra.mxu1 %v4663_v56 }
  0x6e   :  { %3836 = vmatprep.subr.bf16.mxu1 %v4626_v14 }
  0x6f   :  { %3830 = vmatpush1.bf16.msra.mxu0 %v4648_v49 }
  0x70   :  { %3743 = vmatmul.mubr.msk.f32.vlgmr.msra.gmra.mrb[0].mxu1 %vm319_vm2, %v318_v57  ;;  %3832 = vmatprep.subr.bf16.mxu0 %v4654_v51 }
  0x71   :  { %3838 = vmatpush1.bf16.msra.mxu1 %v4631_v19  ;;  %763 = vmatprep.mubr.f32.mxu1 %v4498_v0 }
  0x72   :  { %3840 = vmatprep.subr.bf16.mxu1 %v4635_v28 }
  0x73   :  { %3834 = vmatpush1.bf16.msra.mxu0 %v4663_v56 }
  0x74   :  { %3852 = vmatprep.subr.bf16.mxu0 %v4626_v14 }
  0x75   :  { %3842 = vmatpush1.bf16.msra.mxu1 %v4640_v34 }
  0x76   :  { %3844 = vmatprep.subr.bf16.mxu1 %v4644_v45 }
  0x79   :  { %3846 = vmatpush1.bf16.msra.mxu1 %v4648_v49 }
  0x7a   :  { %3848 = vmatprep.subr.bf16.mxu1 %v4654_v51 }
  0x7d   :  { %3850 = vmatpush1.bf16.msra.mxu1 %v4663_v56 }
  0x7e   :  { %3868 = vmatprep.subr.bf16.mxu1 %v4626_v14 }
  0xda   :  { %v419_v48 = vpop.permute.xlu1 %418 }
 0x139   :  { %v232_v63 = vpop.f32.mrb[0].mxu0 }
 0x13a   :  { %v233_v1 = vadd.f32 %v232_v63, %v112_v61  ;;  %v234_v2 = vpop.f32.mrb[1].mxu0 }
 0x13b   :  { %v235_v3 = vadd.f32 %v234_v2, %v116_v62 }
 0x13d   :  { %v247_v5 = vcombine.low %v233_v1, %v235_v3  ;;  %v248_v6 = vcombine.high %v233_v1, %v235_v3  ;;  %v238_v7 = vpop.f32.mrb[2].mxu0 }
 0x13e   :  { %v239_v8 = vadd.f32 %v238_v7, %v112_v61  ;;  %v240_v9 = vpop.f32.mrb[3].mxu0 }
 0x13f   :  { %v255_v10 = vrot.slane %v247_v5, %v4629_v18  ;;  %v262_v11 = vrot.slane %v248_v6, %v4629_v18  ;;  %3739 = vst.sshfl [vmem:[#allocation2] sm:$0x33 pattern:$0x76325410] %v247_v5  ;;  %v241_v12 = vadd.f32 %v240_v9, %v116_v62 }
 0x140   :  { %3740 = vst.sshfl [vmem:[#allocation2 + $0x8] sm:$0x33 pattern:$0x76325410] %v248_v6 }
 0x141   :  { %v263_v13 = vcombine.high %v255_v10, %v255_v10  ;;  %v264_v15 = vcombine.high %v262_v11, %v262_v11  ;;  %v265_v16 = vcombine.low %v239_v8, %v241_v12  ;;  %v266_v17 = vcombine.high %v239_v8, %v241_v12 }
 0x143   :  { %292 = vst [vmem:[#allocation2 + $0x4] sm:$0xf] %v263_v13  ;;  %294 = vst [vmem:[#allocation2 + $0xc] sm:$0xf] %v264_v15  ;;  %v273_v20 = vrot.slane %v265_v16, %v4629_v18  ;;  %v280_v21 = vrot.slane %v266_v17, %v4629_v18  ;;  %v389_v22 = vpop.f32.mrb[0].mxu1 }
 0x144   :  { %3741 = vst.sshfl [vmem:[#allocation2 + $0x10] sm:$0x33 pattern:$0x76325410] %v265_v16  ;;  %v391_v23 = vpop.f32.mrb[1].mxu1 }
 0x145   :  { %3742 = vst.sshfl [vmem:[#allocation2 + $0x18] sm:$0x33 pattern:$0x76325410] %v266_v17  ;;  %v281_v24 = vcombine.high %v273_v20, %v273_v20  ;;  %v282_v25 = vcombine.high %v280_v21, %v280_v21 }
 0x146   :  { %v394_v26 = vld [vmem:[#allocation2] sm:$0xf] }
 0x147   :  { %296 = vst [vmem:[#allocation2 + $0x14] sm:$0xf] %v281_v24  ;;  %298 = vst [vmem:[#allocation2 + $0x1c] sm:$0xf] %v282_v25  ;;  %v397_v27 = vadd.f32 %v394_v26, %v389_v22 }
 0x149   :  { %4093 = vtanh.f32 %v397_v27  ;;  %v3744_v35 = vmul.f32 -1.442695, %v397_v27 }
 0x14a   :  { %v583_v16 = vld [vmem:[#allocation2 + $0x4] sm:$0xf] }
 0x14c   :  { %v585_v13 = vld [vmem:[#allocation2 + $0x18] sm:$0xf] }
 0x14d   :  { %v588_v17 = vrot.slane %v585_v13, 2 }
 0x14e   :  { %v396_v29 = vld [vmem:[#allocation2 + $0x1c] sm:$0xf] }
 0x14f   :  { %v399_v30 = vrot.slane %v396_v29, 2 }
 0x151   :  { %v401_v31 = vadd.f32 %v399_v30, %v391_v23 }
 0x153   :  { %v4094_v32 = vpop.eup %4093  ;;  %4095 = vtanh.f32 %v401_v31  ;;  %v3745_v36 = vmul.f32 -1.442695, %v401_v31 }
 0x154   :  { %423 = vrot.lane.b32.xlu0 %v4094_v32, %s4500_s3  ;;  %4097 = vpow2.f32 %v3744_v35 }
 0x155   :  { %4099 = vpow2.f32 %v3745_v36 }
 0x15d   :  { %v4096_v33 = vpop.eup %4095 }
 0x15e   :  { %447 = vrot.lane.b32.xlu0 %v4096_v33, %s4500_s3  ;;  %v4098_v37 = vpop.eup %4097 }
 0x15f   :  { %v406_v38 = vadd.f32 1.0, %v4098_v37  ;;  %v4100_v39 = vpop.eup %4099 }
 0x160   :  { %v441_v40 = vadd.f32 1.0, %v4100_v39 }
 0x161   :  { %4101 = vrcp.f32 %v406_v38 }
 0x162   :  { %4103 = vrcp.f32 %v441_v40 }
 0x16b   :  { %v4102_v41 = vpop.eup %4101 }
 0x16c   :  { %v4104_v44 = vpop.eup %4103  ;;  %v421_v52 = vmul.f32 %v4102_v41, %v419_v48 }
 0x16d   :  { %v445_v55 = vmul.f32 %v4104_v44, %v4650_v50 }
 0x1c6   :  { %v424_v42 = vpop.permute.xlu0 %423 }
 0x1c7   :  { %v426_v43 = vmul.f32 %v4102_v41, %v424_v42 }
 0x1c9   :  { %428 = vrot.lane.b32.xlu1 %v426_v43, %s4494_s4 }
 0x1d0   :  { %v448_v46 = vpop.permute.xlu0 %447 }
 0x1d1   :  { %v450_v47 = vmul.f32 %v4104_v44, %v448_v46 }
 0x1d3   :  { %452 = vrot.lane.b32.xlu0 %v450_v47, %s4494_s4 }
 0x23b   :  { %v429_v53 = vpop.permute.xlu1 %428 }
 0x23c   :  { %v431_v54 = vadd.f32 %v429_v53, %v421_v52 }
 0x23e   :  { %4105 = vtanh.f32 %v431_v54  ;;  %v494_v3 = vrot.slane %v431_v54, %v4629_v18 }
 0x245   :  { %v453_v57 = vpop.permute.xlu0 %452 }
 0x246   :  { %v455_v59 = vadd.f32 %v453_v57, %v445_v55 }
 0x248   :  { %v4106_v61 = vpop.eup %4105  ;;  %4107 = vtanh.f32 %v455_v59 }
 0x249   :  { %434 = vrot.lane.b32.xlu1 %v4106_v61, %s4500_s3 }
 0x252   :  { %v4108_v62 = vpop.eup %4107 }
 0x253   :  { %458 = vrot.lane.b32.xlu0 %v4108_v62, %s4500_s3 }
 0x2bb   :  { %v435_v63 = vpop.permute.xlu1 %434 }
 0x2bc   :  { %v437_v1 = vmul.f32 %v4102_v41, %v435_v63 }
 0x2be   :  { %v469_v2 = vrot.slane %v437_v1, %v4629_v18 }
 0x2c0   :  { %470 = vrot.lane.b32.xlu1 %v469_v2, %s4494_s4 }
 0x2c4   :  { %495 = vrot.lane.b32.xlu1 %v494_v3, %s4501_s12 }
 0x2c5   :  { %v459_v50 = vpop.permute.xlu0 %458 }
 0x2c6   :  { %v461_v5 = vmul.f32 %v4104_v44, %v459_v50 }
 0x2c8   :  { %v4711_v6 = vrot.slane %v461_v5, %v4629_v18 }
 0x2ca   :  { %481 = vrot.lane.b32.xlu0 %v4711_v6, %s4500_s3 }
 0x332   :  { %v471_v7 = vpop.permute.xlu1 %470 }
 0x333   :  { %501 = vst.msk [vmem:[#allocation3] sm:$0x3] %vm500_vm3, %v471_v7 }
 0x336   :  { %v496_v8 = vpop.permute.xlu1 %495 }
 0x337   :  { %v498_v9 = vsel %vm484_vm4, %v496_v8, %v455_v59  ;;  %v773_v8 = vld [vmem:[#allocation2 + $0x14] sm:$0xf] }
 0x338   :  { %499 = vst.msk [vmem:[#allocation6] sm:$0x3] %vm299_vm0, %v498_v9 }
 0x33c   :  { %v482_v10 = vpop.permute.xlu0 %481 }
 0x33d   :  { %v485_v11 = vsel %vm484_vm4, %v471_v7, %v482_v10  ;;  %v771_v10 = vld [vmem:[#allocation2 + $0x8] sm:$0xf] }
 0x33e   :  { %486 = vst.msk [vmem:[#allocation5] sm:$0x3] %vm299_vm0, %v485_v11  ;;  %v776_v11 = vrot.slane %v773_v8, 2 }
 0x33f   :  { %v591_v24 = vld [vmem:[#allocation6] sm:$0x3] }
 0x340   :  { %v606_v26 = vrot.slane %v591_v24, %v4629_v18 }
 0x345   :  { %v507_v12 = vld [vmem:[#allocation5] sm:$0x3] }
 0x346   :  { %3746 = vmatmul.mubr.msk.f32.vlgmr.msra.gmra.mrb[4].mxu0 %vm319_vm2, %v507_v12 }
 0x347   :  { %3854 = vmatpush1.bf16.msra.mxu0 %v4631_v19  ;;  %951 = vmatprep.mubr.f32.mxu0 %v4498_v0 }
 0x348   :  { %3856 = vmatprep.subr.bf16.mxu0 %v4635_v28 }
 0x34b   :  { %3858 = vmatpush1.bf16.msra.mxu0 %v4640_v34 }
 0x34c   :  { %3860 = vmatprep.subr.bf16.mxu0 %v4644_v45 }
 0x34f   :  { %3862 = vmatpush1.bf16.msra.mxu0 %v4648_v49 }
 0x350   :  { %3864 = vmatprep.subr.bf16.mxu0 %v4654_v51 }
 0x353   :  { %3866 = vmatpush1.bf16.msra.mxu0 %v4663_v56 }
 0x354   :  { %3884 = vmatprep.subr.bf16.mxu0 %v4626_v14 }
 0x419   :  { %v577_v15 = vpop.f32.mrb[4].mxu0 }
 0x41a   :  { %v586_v20 = vadd.f32 %v583_v16, %v577_v15  ;;  %v579_v21 = vpop.f32.mrb[5].mxu0 }
 0x41b   :  { %v590_v22 = vadd.f32 %v588_v17, %v579_v21 }
 0x41c   :  { %4109 = vtanh.f32 %v586_v20  ;;  %v3747_v27 = vmul.f32 -1.442695, %v586_v20 }
 0x41d   :  { %4111 = vtanh.f32 %v590_v22  ;;  %v3748_v29 = vmul.f32 -1.442695, %v590_v22 }
 0x41e   :  { %4113 = vpow2.f32 %v3747_v27 }
 0x41f   :  { %4115 = vpow2.f32 %v3748_v29 }
 0x426   :  { %v4110_v23 = vpop.eup %4109 }
 0x427   :  { %v4112_v25 = vpop.eup %4111  ;;  %612 = vrot.lane.b32.xlu0 %v4110_v23, %s4500_s3 }
 0x428   :  { %636 = vrot.lane.b32.xlu1 %v4112_v25, %s4500_s3  ;;  %v4114_v30 = vpop.eup %4113 }
 0x429   :  { %v4116_v31 = vpop.eup %4115  ;;  %v595_v32 = vadd.f32 1.0, %v4114_v30 }
 0x42a   :  { %v630_v33 = vadd.f32 1.0, %v4116_v31 }
 0x42b   :  { %607 = vrot.lane.b32.xlu0 %v606_v26, %s4494_s4  ;;  %4117 = vrcp.f32 %v595_v32 }
 0x42c   :  { %4119 = vrcp.f32 %v630_v33 }
 0x435   :  { %v4118_v35 = vpop.eup %4117 }
 0x436   :  { %v4120_v37 = vpop.eup %4119 }
 0x437   :  { %v634_v44 = vmul.f32 %v4120_v37, %v591_v24 }
 0x499   :  { %v613_v36 = vpop.permute.xlu0 %612 }
 0x49a   :  { %v637_v38 = vpop.permute.xlu1 %636  ;;  %v615_v39 = vmul.f32 %v4118_v35, %v613_v36 }
 0x49b   :  { %v639_v40 = vmul.f32 %v4120_v37, %v637_v38 }
 0x49c   :  { %617 = vrot.lane.b32.xlu1 %v615_v39, %s4494_s4 }
 0x49d   :  { %641 = vrot.lane.b32.xlu0 %v639_v40, %s4494_s4  ;;  %v608_v41 = vpop.permute.xlu0 %607 }
 0x49e   :  { %v610_v42 = vmul.f32 %v4118_v35, %v608_v41 }
 0x50e   :  { %v618_v43 = vpop.permute.xlu1 %617 }
 0x50f   :  { %v620_v46 = vadd.f32 %v618_v43, %v610_v42  ;;  %v642_v47 = vpop.permute.xlu0 %641 }
 0x510   :  { %v644_v48 = vadd.f32 %v642_v47, %v634_v44 }
 0x511   :  { %4121 = vtanh.f32 %v620_v46  ;;  %v682_v63 = vrot.slane %v620_v46, %v4629_v18 }
 0x512   :  { %4123 = vtanh.f32 %v644_v48 }
 0x51b   :  { %v4122_v52 = vpop.eup %4121 }
 0x51c   :  { %v4124_v53 = vpop.eup %4123  ;;  %623 = vrot.lane.b32.xlu1 %v4122_v52, %s4500_s3 }
 0x51d   :  { %647 = vrot.lane.b32.xlu0 %v4124_v53, %s4500_s3 }
 0x58e   :  { %v624_v54 = vpop.permute.xlu1 %623 }
 0x58f   :  { %v626_v55 = vmul.f32 %v4118_v35, %v624_v54  ;;  %v648_v57 = vpop.permute.xlu0 %647 }
 0x590   :  { %v650_v59 = vmul.f32 %v4120_v37, %v648_v57 }
 0x591   :  { %v658_v61 = vrot.slane %v626_v55, %v4629_v18 }
 0x592   :  { %v4740_v62 = vrot.slane %v650_v59, %v4629_v18 }
 0x593   :  { %659 = vrot.lane.b32.xlu1 %v658_v61, %s4494_s4 }
 0x594   :  { %670 = vrot.lane.b32.xlu0 %v4740_v62, %s4500_s3 }
 0x597   :  { %683 = vrot.lane.b32.xlu1 %v682_v63, %s4501_s12 }
 0x605   :  { %v660_v1 = vpop.permute.xlu1 %659 }
 0x606   :  { %689 = vst.msk [vmem:[#allocation3 + $0x2] sm:$0x3] %vm500_vm3, %v660_v1  ;;  %v671_v2 = vpop.permute.xlu0 %670 }
 0x607   :  { %v673_v3 = vsel %vm484_vm4, %v660_v1, %v671_v2 }
 0x608   :  { %674 = vst.msk [vmem:[#allocation5] sm:$0x3] %vm299_vm0, %v673_v3  ;;  %v961_v3 = vld [vmem:[#allocation2 + $0x10] sm:$0xf] }
 0x609   :  { %v684_v50 = vpop.permute.xlu1 %683 }
 0x60a   :  { %v686_v5 = vsel %vm484_vm4, %v684_v50, %v644_v48 }
 0x60b   :  { %687 = vst.msk [vmem:[#allocation6] sm:$0x3] %vm299_vm0, %v686_v5  ;;  %v959_v5 = vld [vmem:[#allocation2 + $0xc] sm:$0xf] }
 0x60f   :  { %v695_v7 = vld [vmem:[#allocation5] sm:$0x3] }
 0x610   :  { %3749 = vmatmul.mubr.msk.f32.vlgmr.msra.gmra.mrb[2].mxu1 %vm319_vm2, %v695_v7  ;;  %v964_v7 = vrot.slane %v961_v3, 2 }
 0x611   :  { %3870 = vmatpush1.bf16.msra.mxu1 %v4631_v19  ;;  %1139 = vmatprep.mubr.f32.mxu1 %v4498_v0 }
 0x612   :  { %3872 = vmatprep.subr.bf16.mxu1 %v4635_v28  ;;  %v779_v17 = vld [vmem:[#allocation6] sm:$0x3] }
 0x613   :  { %v794_v21 = vrot.slane %v779_v17, %v4629_v18 }
 0x615   :  { %3874 = vmatpush1.bf16.msra.mxu1 %v4640_v34 }
 0x616   :  { %3876 = vmatprep.subr.bf16.mxu1 %v4644_v45 }
 0x619   :  { %3878 = vmatpush1.bf16.msra.mxu1 %v4648_v49 }
 0x61a   :  { %3880 = vmatprep.subr.bf16.mxu1 %v4654_v51 }
 0x61d   :  { %3882 = vmatpush1.bf16.msra.mxu1 %v4663_v56 }
 0x61e   :  { %3900 = vmatprep.subr.bf16.mxu1 %v4626_v14 }
 0x6e3   :  { %v765_v9 = vpop.f32.mrb[2].mxu1 }
 0x6e4   :  { %v774_v12 = vadd.f32 %v771_v10, %v765_v9  ;;  %v767_v13 = vpop.f32.mrb[3].mxu1 }
 0x6e5   :  { %v778_v15 = vadd.f32 %v776_v11, %v767_v13 }
 0x6e6   :  { %4125 = vtanh.f32 %v774_v12  ;;  %v3750_v22 = vmul.f32 -1.442695, %v774_v12 }
 0x6e7   :  { %4127 = vtanh.f32 %v778_v15  ;;  %v3751_v23 = vmul.f32 -1.442695, %v778_v15 }
 0x6e8   :  { %4129 = vpow2.f32 %v3750_v22 }
 0x6e9   :  { %4131 = vpow2.f32 %v3751_v23 }
 0x6f0   :  { %v4126_v16 = vpop.eup %4125 }
 0x6f1   :  { %v4128_v20 = vpop.eup %4127  ;;  %800 = vrot.lane.b32.xlu0 %v4126_v16, %s4500_s3 }
 0x6f2   :  { %824 = vrot.lane.b32.xlu1 %v4128_v20, %s4500_s3  ;;  %v4130_v24 = vpop.eup %4129 }
 0x6f3   :  { %v4132_v25 = vpop.eup %4131  ;;  %v783_v26 = vadd.f32 1.0, %v4130_v24 }
 0x6f4   :  { %v818_v27 = vadd.f32 1.0, %v4132_v25 }
 0x6f5   :  { %795 = vrot.lane.b32.xlu0 %v794_v21, %s4494_s4  ;;  %4133 = vrcp.f32 %v783_v26 }
 0x6f6   :  { %4135 = vrcp.f32 %v818_v27 }
 0x6ff   :  { %v4134_v29 = vpop.eup %4133 }
 0x700   :  { %v4136_v31 = vpop.eup %4135 }
 0x701   :  { %v822_v39 = vmul.f32 %v4136_v31, %v779_v17 }
 0x763   :  { %v801_v30 = vpop.permute.xlu0 %800 }
 0x764   :  { %v825_v32 = vpop.permute.xlu1 %824  ;;  %v803_v33 = vmul.f32 %v4134_v29, %v801_v30 }
 0x765   :  { %v827_v35 = vmul.f32 %v4136_v31, %v825_v32 }
 0x766   :  { %805 = vrot.lane.b32.xlu1 %v803_v33, %s4494_s4 }
 0x767   :  { %829 = vrot.lane.b32.xlu0 %v827_v35, %s4494_s4  ;;  %v796_v36 = vpop.permute.xlu0 %795 }
 0x768   :  { %v798_v37 = vmul.f32 %v4134_v29, %v796_v36 }
 0x7d8   :  { %v806_v38 = vpop.permute.xlu1 %805 }
 0x7d9   :  { %v808_v40 = vadd.f32 %v806_v38, %v798_v37  ;;  %v830_v41 = vpop.permute.xlu0 %829 }
 0x7da   :  { %v832_v42 = vadd.f32 %v830_v41, %v822_v39 }
 0x7db   :  { %4137 = vtanh.f32 %v808_v40  ;;  %v870_v55 = vrot.slane %v808_v40, %v4629_v18 }
 0x7dc   :  { %4139 = vtanh.f32 %v832_v42 }
 0x7e5   :  { %v4138_v43 = vpop.eup %4137 }
 0x7e6   :  { %v4140_v44 = vpop.eup %4139  ;;  %811 = vrot.lane.b32.xlu1 %v4138_v43, %s4500_s3 }
 0x7e7   :  { %835 = vrot.lane.b32.xlu0 %v4140_v44, %s4500_s3 }
 0x858   :  { %v812_v46 = vpop.permute.xlu1 %811 }
 0x859   :  { %v814_v47 = vmul.f32 %v4134_v29, %v812_v46  ;;  %v836_v48 = vpop.permute.xlu0 %835 }
 0x85a   :  { %v838_v52 = vmul.f32 %v4136_v31, %v836_v48 }
 0x85b   :  { %v846_v53 = vrot.slane %v814_v47, %v4629_v18 }
 0x85c   :  { %v4772_v54 = vrot.slane %v838_v52, %v4629_v18 }
 0x85d   :  { %847 = vrot.lane.b32.xlu1 %v846_v53, %s4494_s4 }
 0x85e   :  { %858 = vrot.lane.b32.xlu0 %v4772_v54, %s4500_s3 }
 0x861   :  { %871 = vrot.lane.b32.xlu1 %v870_v55, %s4501_s12 }
 0x8cf   :  { %v848_v57 = vpop.permute.xlu1 %847 }
 0x8d0   :  { %877 = vst.msk [vmem:[#allocation3 + $0x4] sm:$0x3] %vm500_vm3, %v848_v57  ;;  %v859_v59 = vpop.permute.xlu0 %858 }
 0x8d1   :  { %v861_v61 = vsel %vm484_vm4, %v848_v57, %v859_v59 }
 0x8d2   :  { %862 = vst.msk [vmem:[#allocation5] sm:$0x3] %vm299_vm0, %v861_v61  ;;  %v1147_v61 = vld [vmem:[#allocation2 + $0xc] sm:$0xf] }
 0x8d3   :  { %v872_v63 = vpop.permute.xlu1 %871 }
 0x8d4   :  { %v874_v1 = vsel %vm484_vm4, %v872_v63, %v832_v42 }
 0x8d5   :  { %875 = vst.msk [vmem:[#allocation6] sm:$0x3] %vm299_vm0, %v874_v1  ;;  %v1146_v1 = vld [vmem:[#allocation2 + $0x10] sm:$0xf] }
 0x8d9   :  { %v883_v2 = vld [vmem:[#allocation5] sm:$0x3] }
 0x8da   :  { %3752 = vmatmul.mubr.msk.f32.vlgmr.msra.gmra.mrb[6].mxu0 %vm319_vm2, %v883_v2  ;;  %v1150_v2 = vrot.slane %v1147_v61, 2 }
 0x8db   :  { %3886 = vmatpush1.bf16.msra.mxu0 %v4631_v19  ;;  %1325 = vmatprep.mubr.f32.mxu0 %v4498_v0 }
 0x8dc   :  { %3888 = vmatprep.subr.bf16.mxu0 %v4635_v28  ;;  %v967_v12 = vld [vmem:[#allocation6] sm:$0x3] }
 0x8dd   :  { %v982_v15 = vrot.slane %v967_v12, %v4629_v18 }
 0x8df   :  { %3890 = vmatpush1.bf16.msra.mxu0 %v4640_v34 }
 0x8e0   :  { %3892 = vmatprep.subr.bf16.mxu0 %v4644_v45 }
 0x8e3   :  { %3894 = vmatpush1.bf16.msra.mxu0 %v4648_v49 }
 0x8e4   :  { %3896 = vmatprep.subr.bf16.mxu0 %v4654_v51 }
 0x8e7   :  { %3898 = vmatpush1.bf16.msra.mxu0 %v4663_v56 }
 0x8e8   :  { %3916 = vmatprep.subr.bf16.mxu0 %v4626_v14 }
 0x9ad   :  { %v953_v50 = vpop.f32.mrb[6].mxu0 }
 0x9ae   :  { %v962_v8 = vadd.f32 %v959_v5, %v953_v50  ;;  %v955_v9 = vpop.f32.mrb[7].mxu0 }
 0x9af   :  { %v966_v10 = vadd.f32 %v964_v7, %v955_v9 }
 0x9b0   :  { %4141 = vtanh.f32 %v962_v8  ;;  %v3753_v14 = vmul.f32 -1.442695, %v962_v8 }
 0x9b1   :  { %4143 = vtanh.f32 %v966_v10  ;;  %v3754_v16 = vmul.f32 -1.442695, %v966_v10 }
 0x9b2   :  { %4145 = vpow2.f32 %v3753_v14 }
 0x9b3   :  { %4147 = vpow2.f32 %v3754_v16 }
 0x9ba   :  { %v4142_v11 = vpop.eup %4141 }
 0x9bb   :  { %v4144_v13 = vpop.eup %4143  ;;  %988 = vrot.lane.b32.xlu0 %v4142_v11, %s4500_s3 }
 0x9bc   :  { %1012 = vrot.lane.b32.xlu1 %v4144_v13, %s4500_s3  ;;  %v4146_v17 = vpop.eup %4145 }
 0x9bd   :  { %v4148_v20 = vpop.eup %4147  ;;  %v971_v21 = vadd.f32 1.0, %v4146_v17 }
 0x9be   :  { %v1006_v22 = vadd.f32 1.0, %v4148_v20 }
 0x9bf   :  { %983 = vrot.lane.b32.xlu0 %v982_v15, %s4494_s4  ;;  %4149 = vrcp.f32 %v971_v21 }
 0x9c0   :  { %4151 = vrcp.f32 %v1006_v22 }
 0x9c9   :  { %v4150_v23 = vpop.eup %4149 }
 0x9ca   :  { %v4152_v25 = vpop.eup %4151 }
 0x9cb   :  { %v1010_v33 = vmul.f32 %v4152_v25, %v967_v12 }
 0xa2d   :  { %v989_v24 = vpop.permute.xlu0 %988 }
 0xa2e   :  { %v1013_v26 = vpop.permute.xlu1 %1012  ;;  %v991_v27 = vmul.f32 %v4150_v23, %v989_v24 }
 0xa2f   :  { %v1015_v29 = vmul.f32 %v4152_v25, %v1013_v26 }
 0xa30   :  { %993 = vrot.lane.b32.xlu1 %v991_v27, %s4494_s4 }
 0xa31   :  { %1017 = vrot.lane.b32.xlu0 %v1015_v29, %s4494_s4  ;;  %v984_v30 = vpop.permute.xlu0 %983 }
 0xa32   :  { %v986_v31 = vmul.f32 %v4150_v23, %v984_v30 }
 0xaa2   :  { %v994_v32 = vpop.permute.xlu1 %993 }
 0xaa3   :  { %v996_v35 = vadd.f32 %v994_v32, %v986_v31  ;;  %v1018_v36 = vpop.permute.xlu0 %1017 }
 0xaa4   :  { %v1020_v37 = vadd.f32 %v1018_v36, %v1010_v33 }
 0xaa5   :  { %4153 = vtanh.f32 %v996_v35  ;;  %v1058_v47 = vrot.slane %v996_v35, %v4629_v18 }
 0xaa6   :  { %4155 = vtanh.f32 %v1020_v37 }
 0xaaf   :  { %v4154_v38 = vpop.eup %4153 }
 0xab0   :  { %v4156_v39 = vpop.eup %4155  ;;  %999 = vrot.lane.b32.xlu1 %v4154_v38, %s4500_s3 }
 0xab1   :  { %1023 = vrot.lane.b32.xlu0 %v4156_v39, %s4500_s3 }
 0xb22   :  { %v1000_v40 = vpop.permute.xlu1 %999 }
 0xb23   :  { %v1002_v41 = vmul.f32 %v4150_v23, %v1000_v40  ;;  %v1024_v42 = vpop.permute.xlu0 %1023 }
 0xb24   :  { %v1026_v43 = vmul.f32 %v4152_v25, %v1024_v42 }
 0xb25   :  { %v1034_v44 = vrot.slane %v1002_v41, %v4629_v18 }
 0xb26   :  { %v4804_v46 = vrot.slane %v1026_v43, %v4629_v18 }
 0xb27   :  { %1035 = vrot.lane.b32.xlu1 %v1034_v44, %s4494_s4 }
 0xb28   :  { %1046 = vrot.lane.b32.xlu0 %v4804_v46, %s4500_s3 }
 0xb2b   :  { %1059 = vrot.lane.b32.xlu1 %v1058_v47, %s4501_s12 }
 0xb99   :  { %v1036_v48 = vpop.permute.xlu1 %1035 }
 0xb9a   :  { %1065 = vst.msk [vmem:[#allocation3 + $0x6] sm:$0x3] %vm500_vm3, %v1036_v48  ;;  %v1047_v52 = vpop.permute.xlu0 %1046 }
 0xb9b   :  { %v1049_v53 = vsel %vm484_vm4, %v1036_v48, %v1047_v52 }
 0xb9c   :  { %1050 = vst.msk [vmem:[#allocation5] sm:$0x3] %vm299_vm0, %v1049_v53 }
 0xb9d   :  { %v1060_v55 = vpop.permute.xlu1 %1059 }
 0xb9e   :  { %v1062_v57 = vsel %vm484_vm4, %v1060_v55, %v1020_v37  ;;  %v1333_v55 = vld [vmem:[#allocation2 + $0x8] sm:$0xf] }
 0xb9f   :  { %1063 = vst.msk [vmem:[#allocation6] sm:$0x3] %vm299_vm0, %v1062_v57  ;;  %v1336_v61 = vrot.slane %v1333_v55, 2  ;;  %v1832_v55 = vld [vmem:[#allocation3 + $0x4] sm:$0x3] }
 0xba3   :  { %v1071_v59 = vld [vmem:[#allocation5] sm:$0x3] }
 0xba4   :  { %3755 = vmatmul.mubr.msk.f32.vlgmr.msra.gmra.mrb[4].mxu1 %vm319_vm2, %v1071_v59  ;;  %v1332_v59 = vld [vmem:[#allocation2 + $0x14] sm:$0xf] }
 0xba5   :  { %3902 = vmatpush1.bf16.msra.mxu1 %v4631_v19  ;;  %1511 = vmatprep.mubr.f32.mxu1 %v4498_v0 }
 0xba6   :  { %3904 = vmatprep.subr.bf16.mxu1 %v4635_v28  ;;  %v1153_v8 = vld [vmem:[#allocation6] sm:$0x3] }
 0xba7   :  { %v1168_v10 = vrot.slane %v1153_v8, %v4629_v18 }
 0xba9   :  { %3906 = vmatpush1.bf16.msra.mxu1 %v4640_v34 }
 0xbaa   :  { %3908 = vmatprep.subr.bf16.mxu1 %v4644_v45 }
 0xbad   :  { %3910 = vmatpush1.bf16.msra.mxu1 %v4648_v49 }
 0xbae   :  { %3912 = vmatprep.subr.bf16.mxu1 %v4654_v51 }
 0xbb1   :  { %3914 = vmatpush1.bf16.msra.mxu1 %v4663_v56 }
 0xc77   :  { %v1141_v63 = vpop.f32.mrb[4].mxu1 }
 0xc78   :  { %v1148_v3 = vadd.f32 %v1146_v1, %v1141_v63  ;;  %v1143_v50 = vpop.f32.mrb[5].mxu1 }
 0xc79   :  { %v1152_v5 = vadd.f32 %v1150_v2, %v1143_v50 }
 0xc7a   :  { %4157 = vtanh.f32 %v1148_v3  ;;  %v3756_v11 = vmul.f32 -1.442695, %v1148_v3 }
 0xc7b   :  { %4159 = vtanh.f32 %v1152_v5  ;;  %v3757_v12 = vmul.f32 -1.442695, %v1152_v5 }
 0xc7c   :  { %4161 = vpow2.f32 %v3756_v11 }
 0xc7d   :  { %4163 = vpow2.f32 %v3757_v12 }
 0xc84   :  { %v4158_v7 = vpop.eup %4157 }
 0xc85   :  { %v4160_v9 = vpop.eup %4159  ;;  %1174 = vrot.lane.b32.xlu0 %v4158_v7, %s4500_s3 }
 0xc86   :  { %1198 = vrot.lane.b32.xlu1 %v4160_v9, %s4500_s3  ;;  %v4162_v13 = vpop.eup %4161 }
 0xc87   :  { %v4164_v15 = vpop.eup %4163  ;;  %v1157_v14 = vadd.f32 1.0, %v4162_v13 }
 0xc88   :  { %v1192_v16 = vadd.f32 1.0, %v4164_v15 }
 0xc89   :  { %1169 = vrot.lane.b32.xlu0 %v1168_v10, %s4494_s4  ;;  %4165 = vrcp.f32 %v1157_v14 }
 0xc8a   :  { %4167 = vrcp.f32 %v1192_v16 }
 0xc93   :  { %v4166_v17 = vpop.eup %4165 }
 0xc94   :  { %v4168_v21 = vpop.eup %4167 }
 0xc95   :  { %v1196_v29 = vmul.f32 %v4168_v21, %v1153_v8 }
 0xcf7   :  { %v1175_v20 = vpop.permute.xlu0 %1174 }
 0xcf8   :  { %v1199_v22 = vpop.permute.xlu1 %1198  ;;  %v1177_v23 = vmul.f32 %v4166_v17, %v1175_v20 }
 0xcf9   :  { %v1201_v24 = vmul.f32 %v4168_v21, %v1199_v22 }
 0xcfa   :  { %1179 = vrot.lane.b32.xlu1 %v1177_v23, %s4494_s4 }
 0xcfb   :  { %1203 = vrot.lane.b32.xlu0 %v1201_v24, %s4494_s4  ;;  %v1170_v25 = vpop.permute.xlu0 %1169  ;;  %v1815_v24 = vld [vmem:[#allocation13 + $0x8] sm:$0xff] }
 0xcfc   :  { %v1172_v26 = vmul.f32 %v4166_v17, %v1170_v25  ;;  %v1817_v25 = vld [vmem:[#allocation13 + $0x18] sm:$0xff] }
 0xd6c   :  { %v1180_v27 = vpop.permute.xlu1 %1179 }
 0xd6d   :  { %v1182_v30 = vadd.f32 %v1180_v27, %v1172_v26  ;;  %v1204_v31 = vpop.permute.xlu0 %1203  ;;  %v3939_v26 = vpack.c.bf16 %v1817_v25, %v1815_v24 }
 0xd6e   :  { %v1206_v32 = vadd.f32 %v1204_v31, %v1196_v29 }
 0xd6f   :  { %4169 = vtanh.f32 %v1182_v30  ;;  %v1244_v42 = vrot.slane %v1182_v30, %v4629_v18  ;;  %3940 = vmatprep.subr.bf16.mxu1 %v3939_v26 }
 0xd70   :  { %4171 = vtanh.f32 %v1206_v32 }
 0xd79   :  { %v4170_v33 = vpop.eup %4169 }
 0xd7a   :  { %v4172_v35 = vpop.eup %4171  ;;  %1185 = vrot.lane.b32.xlu1 %v4170_v33, %s4500_s3 }
 0xd7b   :  { %1209 = vrot.lane.b32.xlu0 %v4172_v35, %s4500_s3 }
 0xdec   :  { %v1186_v36 = vpop.permute.xlu1 %1185 }
 0xded   :  { %v1188_v37 = vmul.f32 %v4166_v17, %v1186_v36  ;;  %v1210_v38 = vpop.permute.xlu0 %1209 }
 0xdee   :  { %v1212_v39 = vmul.f32 %v4168_v21, %v1210_v38 }
 0xdef   :  { %v1220_v40 = vrot.slane %v1188_v37, %v4629_v18 }
 0xdf0   :  { %v4835_v41 = vrot.slane %v1212_v39, %v4629_v18 }
 0xdf1   :  { %1221 = vrot.lane.b32.xlu1 %v1220_v40, %s4494_s4 }
 0xdf2   :  { %1232 = vrot.lane.b32.xlu0 %v4835_v41, %s4500_s3 }
 0xdf5   :  { %1245 = vrot.lane.b32.xlu1 %v1244_v42, %s4501_s12  ;;  %v1814_v42 = vld [vmem:[#allocation13] sm:$0xff] }
 0xe63   :  { %v1222_v43 = vpop.permute.xlu1 %1221 }
 0xe64   :  { %1251 = vst.msk [vmem:[#allocation3 + $0x8] sm:$0x3] %vm500_vm3, %v1222_v43  ;;  %v1233_v44 = vpop.permute.xlu0 %1232 }
 0xe65   :  { %v1235_v47 = vsel %vm484_vm4, %v1222_v43, %v1233_v44  ;;  %v1816_v43 = vld [vmem:[#allocation13 + $0x10] sm:$0xff]  ;;  %v1819_v44 = vld [vmem:[#allocation13 + $0x28] sm:$0xff] }
 0xe66   :  { %1236 = vst.msk [vmem:[#allocation5] sm:$0x3] %vm299_vm0, %v1235_v47  ;;  %v1821_v47 = vld [vmem:[#allocation13 + $0x38] sm:$0xff] }
 0xe67   :  { %v1246_v48 = vpop.permute.xlu1 %1245 }
 0xe68   :  { %v1248_v52 = vsel %vm484_vm4, %v1246_v48, %v1206_v32  ;;  %v1833_v48 = vld [vmem:[#allocation3 + $0x6] sm:$0x3] }
 0xe69   :  { %1249 = vst.msk [vmem:[#allocation6] sm:$0x3] %vm299_vm0, %v1248_v52  ;;  %v3941_v52 = vpack.c.bf16 %v1816_v43, %v1814_v42 }
 0xe6d   :  { %v1257_v53 = vld [vmem:[#allocation5] sm:$0x3] }
 0xe6e   :  { %3758 = vmatmul.mubr.msk.f32.vlgmr.msra.gmra.mrb[8].mxu0 %vm319_vm2, %v1257_v53  ;;  %v1831_v53 = vld [vmem:[#allocation3 + $0x2] sm:$0x3] }
 0xe6f   :  { %3918 = vmatpush1.bf16.msra.mxu0 %v4631_v19  ;;  %1697 = vmatprep.mubr.f32.mxu0 %v4498_v0 }
 0xe70   :  { %3920 = vmatprep.subr.bf16.mxu0 %v4635_v28  ;;  %v1339_v2 = vld [vmem:[#allocation6] sm:$0x3] }
 0xe73   :  { %3922 = vmatpush1.bf16.msra.mxu0 %v4640_v34 }
 0xe74   :  { %3924 = vmatprep.subr.bf16.mxu0 %v4644_v45  ;;  %v1354_v45 = vrot.slane %v1339_v2, %v4629_v18 }
 0xe77   :  { %3926 = vmatpush1.bf16.msra.mxu0 %v4648_v49 }
 0xe78   :  { %3928 = vmatprep.subr.bf16.mxu0 %v4654_v51 }
 0xe7b   :  { %3930 = vmatpush1.bf16.msra.mxu0 %v4663_v56 }
 0xf41   :  { %v1327_v57 = vpop.f32.mrb[8].mxu0 }
 0xf42   :  { %v1334_v63 = vadd.f32 %v1332_v59, %v1327_v57  ;;  %v1329_v19 = vpop.f32.mrb[9].mxu0  ;;  %v3943_v57 = vpack.c.bf16 %v1821_v47, %v1819_v44  ;;  %v1818_v59 = vld [vmem:[#allocation13 + $0x20] sm:$0xff] }
 0xf43   :  { %v1338_v1 = vadd.f32 %v1336_v61, %v1329_v19  ;;  %v1820_v61 = vld [vmem:[#allocation13 + $0x30] sm:$0xff] }
 0xf44   :  { %4173 = vtanh.f32 %v1334_v63  ;;  %v3759_v49 = vmul.f32 -1.442695, %v1334_v63  ;;  %v1978_v63 = vcombine.low %v1832_v55, %v1833_v48 }
 0xf45   :  { %4175 = vtanh.f32 %v1338_v1  ;;  %v3760_v51 = vmul.f32 -1.442695, %v1338_v1  ;;  %v1830_v1 = vld [vmem:[#allocation3] sm:$0x3] }
 0xf46   :  { %4177 = vpow2.f32 %v3759_v49 }
 0xf47   :  { %4179 = vpow2.f32 %v3760_v51  ;;  %v1519_v51 = vld [vmem:[#allocation2 + $0x4] sm:$0xf] }
 0xf4e   :  { %v4174_v28 = vpop.eup %4173 }
 0xf4f   :  { %v4176_v34 = vpop.eup %4175  ;;  %1360 = vrot.lane.b32.xlu0 %v4174_v28, %s4500_s3  ;;  %v1977_v28 = vcombine.low %v1830_v1, %v1831_v53  ;;  %v1705_v1 = vld [vmem:[#allocation2] sm:$0xf] }
 0xf50   :  { %1384 = vrot.lane.b32.xlu1 %v4176_v34, %s4500_s3  ;;  %v4178_v56 = vpop.eup %4177  ;;  %v1992_v34 = vrot.slane %v1978_v63, %v4629_v18 }
 0xf51   :  { %v4180_v3 = vpop.eup %4179  ;;  %v1343_v50 = vadd.f32 1.0, %v4178_v56 }
 0xf52   :  { %v1378_v5 = vadd.f32 1.0, %v4180_v3  ;;  %v1518_v3 = vld [vmem:[#allocation2 + $0x18] sm:$0xf] }
 0xf53   :  { %1355 = vrot.lane.b32.xlu0 %v1354_v45, %s4494_s4  ;;  %4181 = vrcp.f32 %v1343_v50  ;;  %v1985_v45 = vrot.slane %v1977_v28, %v4629_v18  ;;  %v1522_v50 = vrot.slane %v1519_v51, 2 }
 0xf54   :  { %4183 = vrcp.f32 %v1378_v5 }
 0xf55   :  { %v1993_v49 = vcombine.low %v1985_v45, %v1992_v34  ;;  %v1708_v34 = vrot.slane %v1705_v1, 2  ;;  %v2171_v1 = vld [vmem:[#allocation15 + $0x28] sm:$0xff] }
 0xf5d   :  { %v4182_v7 = vpop.eup %4181 }
 0xf5e   :  { %v4184_v9 = vpop.eup %4183 }
 0xf5f   :  { %v1382_v16 = vmul.f32 %v4184_v9, %v1339_v2  ;;  %v3945_v2 = vpack.c.bf16 %v1820_v61, %v1818_v59 }
 0xfc1   :  { %v1361_v8 = vpop.permute.xlu0 %1360 }
 0xfc2   :  { %v1385_v10 = vpop.permute.xlu1 %1384  ;;  %v1363_v11 = vmul.f32 %v4182_v7, %v1361_v8 }
 0xfc3   :  { %v1387_v12 = vmul.f32 %v4184_v9, %v1385_v10 }
 0xfc4   :  { %1365 = vrot.lane.b32.xlu1 %v1363_v11, %s4494_s4 }
 0xfc5   :  { %1389 = vrot.lane.b32.xlu0 %v1387_v12, %s4494_s4  ;;  %v1356_v13 = vpop.permute.xlu0 %1355 }
 0xfc6   :  { %v1358_v15 = vmul.f32 %v4182_v7, %v1356_v13 }
0x1036   :  { %v1366_v14 = vpop.permute.xlu1 %1365 }
0x1037   :  { %v1368_v17 = vadd.f32 %v1366_v14, %v1358_v15  ;;  %v1390_v20 = vpop.permute.xlu0 %1389 }
0x1038   :  { %v1392_v21 = vadd.f32 %v1390_v20, %v1382_v16 }
0x1039   :  { %4185 = vtanh.f32 %v1368_v17  ;;  %v1430_v35 = vrot.slane %v1368_v17, %v4629_v18 }
0x103a   :  { %4187 = vtanh.f32 %v1392_v21 }
0x1043   :  { %v4186_v22 = vpop.eup %4185 }
0x1044   :  { %v4188_v23 = vpop.eup %4187  ;;  %1371 = vrot.lane.b32.xlu1 %v4186_v22, %s4500_s3 }
0x1045   :  { %1395 = vrot.lane.b32.xlu0 %v4188_v23, %s4500_s3 }
0x10b6   :  { %v1372_v27 = vpop.permute.xlu1 %1371 }
0x10b7   :  { %v1374_v29 = vmul.f32 %v4182_v7, %v1372_v27  ;;  %v1396_v30 = vpop.permute.xlu0 %1395 }
0x10b8   :  { %v1398_v31 = vmul.f32 %v4184_v9, %v1396_v30 }
0x10b9   :  { %v1406_v32 = vrot.slane %v1374_v29, %v4629_v18 }
0x10ba   :  { %v4866_v33 = vrot.slane %v1398_v31, %v4629_v18 }
0x10bb   :  { %1407 = vrot.lane.b32.xlu1 %v1406_v32, %s4494_s4 }
0x10bc   :  { %1418 = vrot.lane.b32.xlu0 %v4866_v33, %s4500_s3 }
0x10bf   :  { %1431 = vrot.lane.b32.xlu1 %v1430_v35, %s4501_s12 }
0x112d   :  { %v1408_v36 = vpop.permute.xlu1 %1407 }
0x112e   :  { %1437 = vst.msk [vmem:[#allocation3 + $0xa] sm:$0x3] %vm500_vm3, %v1408_v36  ;;  %v1419_v37 = vpop.permute.xlu0 %1418 }
0x112f   :  { %v1421_v38 = vsel %vm484_vm4, %v1408_v36, %v1419_v37 }
0x1130   :  { %1422 = vst.msk [vmem:[#allocation5] sm:$0x3] %vm299_vm0, %v1421_v38 }
0x1131   :  { %v1432_v39 = vpop.permute.xlu1 %1431 }
0x1132   :  { %v1434_v40 = vsel %vm484_vm4, %v1432_v39, %v1392_v21 }
0x1133   :  { %1435 = vst.msk [vmem:[#allocation6] sm:$0x3] %vm299_vm0, %v1434_v40 }
0x1137   :  { %v1443_v19 = vld [vmem:[#allocation5] sm:$0x3] }
0x1138   :  { %3761 = vmatmul.mubr.msk.f32.vlgmr.msra.gmra.mrb[6].mxu1 %vm319_vm2, %v1443_v19 }
0x1139   :  { %3942 = vmatpush1.bf16.msra.mxu1 %v3941_v52  ;;  %2079 = vmatprep.mubr.f32.mxu1 %v4498_v0 }
0x113a   :  { %3944 = vmatprep.subr.bf16.mxu1 %v3943_v57  ;;  %v1525_v12 = vld [vmem:[#allocation6] sm:$0x3] }
0x113b   :  { %v1540_v15 = vrot.slane %v1525_v12, %v4629_v18 }
0x113d   :  { %3946 = vmatpush1.bf16.msra.mxu1 %v3945_v2  ;;  %v1704_v2 = vld [vmem:[#allocation2 + $0x1c] sm:$0xf] }
0x1140   :  { %3769 = vmatmul.mubr.msk.f32.vlgmr.msra.gmra.mrb[8].mxu1 %vm484_vm4, %v1993_v49 }
0x1141   :  { %2085 = vmatprep.mubr.f32.mxu1 %v4498_v0 }
0x120b   :  { %v1513_v56 = vpop.f32.mrb[6].mxu1 }
0x120c   :  { %v1520_v5 = vadd.f32 %v1518_v3, %v1513_v56  ;;  %v1515_v7 = vpop.f32.mrb[7].mxu1 }
0x120d   :  { %v1524_v8 = vadd.f32 %v1522_v50, %v1515_v7 }
0x120e   :  { %4189 = vtanh.f32 %v1520_v5  ;;  %v3762_v14 = vmul.f32 -1.442695, %v1520_v5 }
0x120f   :  { %4191 = vtanh.f32 %v1524_v8  ;;  %v3763_v16 = vmul.f32 -1.442695, %v1524_v8 }
0x1210   :  { %4193 = vpow2.f32 %v3762_v14 }
0x1211   :  { %4195 = vpow2.f32 %v3763_v16 }
0x1213   :  { %v4884_v9 = vpop.f32.mrb[8].mxu1 }
0x1214   :  { %v4886_v10 = vpop.f32.mrb[9].mxu1 }
0x1218   :  { %v4190_v11 = vpop.eup %4189 }
0x1219   :  { %v4192_v13 = vpop.eup %4191  ;;  %1546 = vrot.lane.b32.xlu0 %v4190_v11, %s4500_s3 }
0x121a   :  { %1570 = vrot.lane.b32.xlu1 %v4192_v13, %s4500_s3  ;;  %v4194_v17 = vpop.eup %4193 }
0x121b   :  { %v4196_v20 = vpop.eup %4195  ;;  %v1529_v21 = vadd.f32 1.0, %v4194_v17 }
0x121c   :  { %v1564_v22 = vadd.f32 1.0, %v4196_v20 }
0x121d   :  { %1541 = vrot.lane.b32.xlu0 %v1540_v15, %s4494_s4  ;;  %4197 = vrcp.f32 %v1529_v21 }
0x121e   :  { %4199 = vrcp.f32 %v1564_v22 }
0x1227   :  { %v4198_v23 = vpop.eup %4197 }
0x1228   :  { %v4200_v25 = vpop.eup %4199 }
0x1229   :  { %v1568_v35 = vmul.f32 %v4200_v25, %v1525_v12 }
0x128b   :  { %v1547_v24 = vpop.permute.xlu0 %1546 }
0x128c   :  { %v1571_v26 = vpop.permute.xlu1 %1570  ;;  %v1549_v27 = vmul.f32 %v4198_v23, %v1547_v24 }
0x128d   :  { %v1573_v29 = vmul.f32 %v4200_v25, %v1571_v26 }
0x128e   :  { %1551 = vrot.lane.b32.xlu1 %v1549_v27, %s4494_s4 }
0x128f   :  { %1575 = vrot.lane.b32.xlu0 %v1573_v29, %s4494_s4  ;;  %v1542_v30 = vpop.permute.xlu0 %1541 }
0x1290   :  { %v1544_v31 = vmul.f32 %v4198_v23, %v1542_v30 }
0x1300   :  { %v1552_v32 = vpop.permute.xlu1 %1551 }
0x1301   :  { %v1554_v36 = vadd.f32 %v1552_v32, %v1544_v31  ;;  %v1576_v37 = vpop.permute.xlu0 %1575 }
0x1302   :  { %v1578_v38 = vadd.f32 %v1576_v37, %v1568_v35  ;;  %v1823_v35 = vld [vmem:[#allocation13 + $0x48] sm:$0xff] }
0x1303   :  { %4201 = vtanh.f32 %v1554_v36  ;;  %v1616_v53 = vrot.slane %v1554_v36, %v4629_v18  ;;  %v1825_v36 = vld [vmem:[#allocation13 + $0x58] sm:$0xff] }
0x1304   :  { %4203 = vtanh.f32 %v1578_v38  ;;  %v3931_v37 = vpack.c.bf16 %v1825_v36, %v1823_v35  ;;  %v1835_v35 = vld [vmem:[#allocation3 + $0xa] sm:$0x3] }
0x1306   :  { %3932 = vmatprep.subr.bf16.mxu0 %v3931_v37 }
0x130d   :  { %v4202_v39 = vpop.eup %4201 }
0x130e   :  { %v4204_v40 = vpop.eup %4203  ;;  %1557 = vrot.lane.b32.xlu1 %v4202_v39, %s4500_s3 }
0x130f   :  { %1581 = vrot.lane.b32.xlu0 %v4204_v40, %s4500_s3 }
0x1380   :  { %v1558_v42 = vpop.permute.xlu1 %1557 }
0x1381   :  { %v1560_v43 = vmul.f32 %v4198_v23, %v1558_v42  ;;  %v1582_v44 = vpop.permute.xlu0 %1581 }
0x1382   :  { %v1584_v47 = vmul.f32 %v4200_v25, %v1582_v44  ;;  %v1826_v44 = vld [vmem:[#allocation13 + $0x60] sm:$0xff] }
0x1383   :  { %v1592_v48 = vrot.slane %v1560_v43, %v4629_v18  ;;  %v1829_v43 = vld [vmem:[#allocation13 + $0x78] sm:$0xff] }
0x1384   :  { %v4898_v52 = vrot.slane %v1584_v47, %v4629_v18 }
0x1385   :  { %1593 = vrot.lane.b32.xlu1 %v1592_v48, %s4494_s4  ;;  %v2167_v48 = vld [vmem:[#allocation15 + $0x8] sm:$0xff] }
0x1386   :  { %1604 = vrot.lane.b32.xlu0 %v4898_v52, %s4500_s3 }
0x1389   :  { %1617 = vrot.lane.b32.xlu1 %v1616_v53, %s4501_s12 }
0x13f7   :  { %v1594_v55 = vpop.permute.xlu1 %1593 }
0x13f8   :  { %1623 = vst.msk [vmem:[#allocation3 + $0xc] sm:$0x3] %vm500_vm3, %v1594_v55  ;;  %v1605_v57 = vpop.permute.xlu0 %1604 }
0x13f9   :  { %v1607_v59 = vsel %vm484_vm4, %v1594_v55, %v1605_v57 }
0x13fa   :  { %1608 = vst.msk [vmem:[#allocation5] sm:$0x3] %vm299_vm0, %v1607_v59 }
0x13fb   :  { %v1618_v61 = vpop.permute.xlu1 %1617 }
0x13fc   :  { %v1620_v63 = vsel %vm484_vm4, %v1618_v61, %v1578_v38  ;;  %v1824_v38 = vld [vmem:[#allocation13 + $0x50] sm:$0xff]  ;;  %v2166_v61 = vld [vmem:[#allocation15] sm:$0xff] }
0x13fd   :  { %1621 = vst.msk [vmem:[#allocation6] sm:$0x3] %vm299_vm0, %v1620_v63  ;;  %v2168_v63 = vld [vmem:[#allocation15 + $0x10] sm:$0xff] }
0x1401   :  { %v1629_v19 = vld [vmem:[#allocation5] sm:$0x3] }
0x1402   :  { %3764 = vmatmul.mubr.msk.f32.vlgmr.msra.gmra.mrb[10].mxu0 %vm319_vm2, %v1629_v19 }
0x1403   :  { %1956 = vmatprep.mubr.f32.mxu0 %v4498_v0 }
0x1404   :  { %v1711_v3 = vld [vmem:[#allocation6] sm:$0x3] }
0x1405   :  { %v1726_v5 = vrot.slane %v1711_v3, %v4629_v18 }
0x14d5   :  { %v1699_v28 = vpop.f32.mrb[10].mxu0 }
0x14d6   :  { %v1706_v45 = vadd.f32 %v1704_v2, %v1699_v28  ;;  %v1701_v49 = vpop.f32.mrb[11].mxu0  ;;  %v2173_v28 = vld [vmem:[#allocation15 + $0x38] sm:$0xff] }
0x14d7   :  { %v1710_v51 = vadd.f32 %v1708_v34, %v1701_v49  ;;  %v4953_v49 = vpack.c.bf16 %v2173_v28, %v2171_v1 }
0x14d8   :  { %4205 = vtanh.f32 %v1706_v45  ;;  %v3765_v8 = vmul.f32 -1.442695, %v1706_v45  ;;  %v4946_v45 = vpack.c.bf16 %v2168_v63, %v2166_v61 }
0x14d9   :  { %4207 = vtanh.f32 %v1710_v51  ;;  %v3766_v7 = vmul.f32 -1.442695, %v1710_v51  ;;  %v2170_v51 = vld [vmem:[#allocation15 + $0x20] sm:$0xff] }
0x14db   :  { %4209 = vpow2.f32 %v3766_v7 }
0x14dc   :  { %4211 = vpow2.f32 %v3765_v8 }
0x14e2   :  { %v4206_v56 = vpop.eup %4205 }
0x14e3   :  { %v4208_v50 = vpop.eup %4207  ;;  %1732 = vrot.lane.b32.xlu1 %v4206_v56, %s4500_s3  ;;  %v2172_v56 = vld [vmem:[#allocation15 + $0x30] sm:$0xff] }
0x14e4   :  { %1756 = vrot.lane.b32.xlu0 %v4208_v50, %s4500_s3  ;;  %v2175_v50 = vld [vmem:[#allocation15 + $0x48] sm:$0xff] }
0x14e5   :  { %v4210_v11 = vpop.eup %4209 }
0x14e6   :  { %v1750_v12 = vadd.f32 1.0, %v4210_v11  ;;  %v4212_v13 = vpop.eup %4211  ;;  %v4959_v11 = vpack.c.bf16 %v2172_v56, %v2170_v51  ;;  %v2092_v51 = vld [vmem:[%s5330_s6] sm:$0x3]  ;;  %s4502_s6 = smov [#allocation16]  }
0x14e7   :  { %1727 = vrot.lane.b32.xlu1 %v1726_v5, %s4494_s4  ;;  %v1715_v15 = vadd.f32 1.0, %v4212_v13  ;;  %v2177_v5 = vld [vmem:[#allocation15 + $0x58] sm:$0xff]  ;;  %v2176_v13 = vld [vmem:[#allocation15 + $0x50] sm:$0xff]  ;;  %v2097_v56 = vrot.slane %v2092_v51, %v111_v58  ;;  %s3723_s22 = sshll.u32 %s4502_s6, 4  ;;  %s3724_s22 = int_to_ptr.vmem [resolvable:$true] %s3723_s22 }
0x14e8   :  { %4213 = vrcp.f32 %v1750_v12  ;;  %v2174_v12 = vld [vmem:[#allocation15 + $0x40] sm:$0xff]  ;;  %s4459_s23 = scalar_lea.vmem %s3724_s22, 256  ;;  %p4464_p13 = scmp.lt.s32.totalorder %s3724_s22, %s3724_s22 }
0x14e9   :  { %4215 = vrcp.f32 %v1715_v15  ;;  %v2179_v15 = vld [vmem:[#allocation15 + $0x68] sm:$0xff]  ;;  %p4460_p12 = scmp.ne.s32.totalorder %s3724_s22, %s4459_s23  ;;  %p4465_p0 = scmp.lt.s32.totalorder %s4459_s23, %s4459_s23 }
0x14eb   :  { %p4466_p1 = por %p4465_p0, %p4464_p13 }
0x14ed   :  { %p4467_p2 = pnand %p4466_p1, %p4460_p12 }
0x14f2   :  { %v4214_v14 = vpop.eup %4213 }
0x14f3   :  { %v4216_v21 = vpop.eup %4215  ;;  %v1754_v23 = vmul.f32 %v4214_v14, %v1711_v3 }
0x1555   :  { %v1733_v20 = vpop.permute.xlu1 %1732 }
0x1556   :  { %v1757_v16 = vpop.permute.xlu0 %1756  ;;  %v1735_v22 = vmul.f32 %v4216_v21, %v1733_v20 }
0x1557   :  { %v1759_v17 = vmul.f32 %v4214_v14, %v1757_v16 }
0x1559   :  { %1761 = vrot.lane.b32.xlu0 %v1759_v17, %s4494_s4  ;;  %v1728_v24 = vpop.permute.xlu1 %1727  ;;  %v4969_v17 = vpack.c.bf16 %v2176_v13, %v2174_v12 }
0x155a   :  { %v1730_v27 = vmul.f32 %v4216_v21, %v1728_v24 }
0x155d   :  { %1737 = vrot.lane.b32.xlu0 %v1735_v22, %s4494_s4  ;;  %v2180_v22 = vld [vmem:[#allocation15 + $0x70] sm:$0xff] }
0x15cb   :  { %v1762_v25 = vpop.permute.xlu0 %1761 }
0x15cc   :  { %v4918_v26 = vadd.f32 %v1762_v25, %v1754_v23 }
0x15ce   :  { %4217 = vtanh.f32 %v4918_v26 }
0x15cf   :  { %v1738_v29 = vpop.permute.xlu0 %1737 }
0x15d0   :  { %v4921_v30 = vadd.f32 %v1738_v29, %v1730_v27 }
0x15d2   :  { %4219 = vtanh.f32 %v4921_v30  ;;  %v1802_v3 = vrot.slane %v4921_v30, %v4629_v18 }
0x15d8   :  { %v4218_v31 = vpop.eup %4217 }
0x15d9   :  { %1767 = vrot.lane.b32.xlu1 %v4218_v31, %s4500_s3 }
0x15dc   :  { %v4220_v32 = vpop.eup %4219 }
0x15dd   :  { %1252 = vrot.lane.b32.xlu1 %v4835_v41, %s4494_s4  ;;  %1743 = vrot.lane.b32.xlu0 %v4220_v32, %s4500_s3  ;;  %v1822_v41 = vld [vmem:[#allocation13 + $0x40] sm:$0xff] }
0x15de   :  { %v3933_v39 = vpack.c.bf16 %v1824_v38, %v1822_v41 }
0x15e0   :  { %3934 = vmatpush1.bf16.msra.mxu0 %v3933_v39 }
0x15e1   :  { %1624 = vrot.lane.b32.xlu1 %v4898_v52, %s4494_s4  ;;  %1438 = vrot.lane.b32.xlu0 %v4866_v33, %s4494_s4  ;;  %v1827_v33 = vld [vmem:[#allocation13 + $0x68] sm:$0xff]  ;;  %v2169_v52 = vld [vmem:[#allocation15 + $0x18] sm:$0xff] }
0x15e2   :  { %v3935_v47 = vpack.c.bf16 %v1829_v43, %v1827_v33  ;;  %v4939_v57 = vpack.c.bf16 %v2169_v52, %v2167_v48  ;;  %v1834_v43 = vld [vmem:[#allocation3 + $0x8] sm:$0x3] }
0x15e3   :  { %v1994_v48 = vcombine.low %v1834_v43, %v1835_v35 }
0x15e4   :  { %3936 = vmatprep.subr.bf16.mxu0 %v3935_v47  ;;  %3964 = vmatprep.subr.bf16.mxu1 %v4939_v57 }
0x15e5   :  { %502 = vrot.lane.b32.xlu1 %v4711_v6, %s4494_s4  ;;  %690 = vrot.lane.b32.xlu0 %v4740_v62, %s4494_s4  ;;  %v1828_v62 = vld [vmem:[#allocation13 + $0x70] sm:$0xff] }
0x15e6   :  { %v3937_v55 = vpack.c.bf16 %v1828_v62, %v1826_v44  ;;  %3966 = vmatpush1.bf16.msra.mxu1 %v4946_v45  ;;  %v1836_v62 = vld [vmem:[#allocation3 + $0xc] sm:$0x3] }
0x15e7   :  { %3968 = vmatprep.subr.bf16.mxu1 %v4953_v49 }
0x15e8   :  { %3938 = vmatpush1.bf16.msra.mxu0 %v3937_v55 }
0x15e9   :  { %878 = vrot.lane.b32.xlu1 %v4772_v54, %s4494_s4  ;;  %3948 = vmatprep.subr.bf16.mxu0 %v4939_v57 }
0x15ea   :  { %3970 = vmatpush1.bf16.msra.mxu1 %v4959_v11 }
0x164b   :  { %v1768_v40 = vpop.permute.xlu1 %1767 }
0x164c   :  { %v1770_v42 = vmul.f32 %v4214_v14, %v1768_v40  ;;  %v2181_v14 = vld [vmem:[#allocation15 + $0x78] sm:$0xff] }
0x164d   :  { %v4972_v20 = vpack.c.bf16 %v2181_v14, %v2179_v15 }
0x164e   :  { %v1789_v6 = vrot.slane %v1770_v42, %v4629_v18 }
0x164f   :  { %v1744_v54 = vpop.permute.xlu0 %1743  ;;  %v1253_v53 = vpop.permute.xlu1 %1252 }
0x1650   :  { %v1746_v59 = vmul.f32 %v4216_v21, %v1744_v54  ;;  %1256 = vst.msk [vmem:[#allocation4 + $0x6] sm:$0x3] %vm500_vm3, %v1253_v53  ;;  %1810 = vrot.lane.b32.xlu0 %v1789_v6, %s4494_s4  ;;  %v2178_v21 = vld [vmem:[#allocation15 + $0x60] sm:$0xff] }
0x1651   :  { %v4976_v23 = vpack.c.bf16 %v2180_v22, %v2178_v21 }
0x1652   :  { %v1778_v19 = vrot.slane %v1746_v59, %v4629_v18 }
0x1653   :  { %v1439_v2 = vpop.permute.xlu0 %1438  ;;  %v1625_v34 = vpop.permute.xlu1 %1624 }
0x1654   :  { %1442 = vst.msk [vmem:[#allocation4 + $0x4] sm:$0x3] %vm500_vm3, %v1439_v2  ;;  %1628 = vst.msk [vmem:[#allocation4 + $0x2] sm:$0x3] %vm500_vm3, %v1625_v34  ;;  %1779 = vrot.lane.b32.xlu1 %v1778_v19, %s4494_s4  ;;  %1066 = vrot.lane.b32.xlu0 %v4804_v46, %s4494_s4  ;;  %v4965_v46 = vpack.c.bf16 %v2177_v5, %v2175_v50  ;;  %v2002_v19 = vrot.slane %v1994_v48, %v4629_v18 }
0x1655   :  { %v2101_v50 = vrot.slane %v2092_v51, %v115_v60 }
0x1656   :  { %3972 = vmatprep.subr.bf16.mxu1 %v4965_v46 }
0x1657   :  { %v691_v7 = vpop.permute.xlu0 %690  ;;  %v503_v8 = vpop.permute.xlu1 %502  ;;  %3974 = vmatpush1.bf16.msra.mxu1 %v4969_v17  ;;  %v1841_v30 = vld [vmem:[#allocation4 + $0x6] sm:$0x3] }
0x1658   :  { %694 = vst.msk [vmem:[#allocation4 + $0xc] sm:$0x3] %vm500_vm3, %v691_v7  ;;  %506 = vst.msk [vmem:[#allocation4 + $0xe] sm:$0x3] %vm500_vm3, %v503_v8  ;;  %1803 = vrot.lane.b32.xlu1 %v1802_v3, %s4501_s12  ;;  %1790 = vrot.lane.b32.xlu0 %v1789_v6, %s4500_s3 }
0x1659   :  { %3976 = vmatprep.subr.bf16.mxu1 %v4972_v20 }
0x165b   :  { %v879_v16 = vpop.permute.xlu1 %878  ;;  %3978 = vmatpush1.bf16.msra.mxu1 %v4976_v23  ;;  %v1840_v29 = vld [vmem:[#allocation4 + $0x4] sm:$0x3]  ;;  %v1839_v31 = vld [vmem:[#allocation4 + $0x2] sm:$0x3] }
0x165c   :  { %882 = vst.msk [vmem:[#allocation4 + $0xa] sm:$0x3] %vm500_vm3, %v879_v16  ;;  %3996 = vmatprep.subr.bf16.mxu1 %v4939_v57  ;;  %v1855_v32 = vcombine.low %v1840_v29, %v1841_v30 }
0x165e   :  { %v1869_v6 = vrot.slane %v1855_v32, %v4629_v18 }
0x165f   :  { %v1844_v38 = vld [vmem:[#allocation4 + $0xc] sm:$0x3]  ;;  %v1845_v39 = vld [vmem:[#allocation4 + $0xe] sm:$0x3] }
0x1660   :  { %v1872_v47 = vcombine.low %v1844_v38, %v1845_v39 }
0x1662   :  { %v1886_v63 = vrot.slane %v1872_v47, %v4629_v18 }
0x1663   :  { %v1843_v52 = vld [vmem:[#allocation4 + $0xa] sm:$0x3] }
0x16c2   :  { %v1811_v24 = vpop.permute.xlu0 %1810 }
0x16c3   :  { %1813 = vst.msk [vmem:[#allocation4] sm:$0x3] %vm500_vm3, %v1811_v24 }
0x16c6   :  { %v1067_v25 = vpop.permute.xlu0 %1066  ;;  %v1780_v27 = vpop.permute.xlu1 %1779 }
0x16c7   :  { %1070 = vst.msk [vmem:[#allocation4 + $0x8] sm:$0x3] %vm500_vm3, %v1067_v25  ;;  %1809 = vst.msk [vmem:[#allocation3 + $0xe] sm:$0x3] %vm500_vm3, %v1780_v27 }
0x16ca   :  { %v1791_v36 = vpop.permute.xlu0 %1790  ;;  %v1804_v41 = vpop.permute.xlu1 %1803  ;;  %v1838_v37 = vld [vmem:[#allocation4] sm:$0x3] }
0x16cb   :  { %v1793_v40 = vsel %vm484_vm4, %v1780_v27, %v1791_v36  ;;  %v1806_v42 = vsel %vm484_vm4, %v1804_v41, %v4918_v26  ;;  %v1854_v33 = vcombine.low %v1838_v37, %v1839_v31 }
0x16cc   :  { %1794 = vst.msk [vmem:[#allocation5] sm:$0x3] %vm299_vm0, %v1793_v40  ;;  %1807 = vst.msk [vmem:[#allocation6] sm:$0x3] %vm299_vm0, %v1806_v42 }
0x16cd   :  { %2164 = vst.msk [vmem:[#allocation5] sm:$0x3] %vm299_vm0, %v4498_v0  ;;  %2165 = vst.msk [vmem:[#allocation6] sm:$0x3] %vm299_vm0, %v4498_v0  ;;  %v1862_v44 = vrot.slane %v1854_v33, %v4629_v18 }
0x16ce   :  { %v1842_v26 = vld [vmem:[#allocation4 + $0x8] sm:$0x3]  ;;  %v1837_v54 = vld [vmem:[#allocation3 + $0xe] sm:$0x3] }
0x16cf   :  { %v1870_v53 = vcombine.low %v1862_v44, %v1869_v6  ;;  %v1871_v55 = vcombine.low %v1842_v26, %v1843_v52  ;;  %v1995_v59 = vcombine.low %v1836_v62, %v1837_v54 }
0x16d1   :  { %3767 = vmatmul.mubr.msk.f32.vlgmr.msra.gmra.mrb[12].mxu0 %vm484_vm4, %v1870_v53  ;;  %v1879_v61 = vrot.slane %v1871_v55, %v4629_v18  ;;  %v2009_v1 = vrot.slane %v1995_v59, %v4629_v18 }
0x16d2   :  { %3950 = vmatpush1.bf16.msra.mxu0 %v4946_v45  ;;  %1962 = vmatprep.mubr.f32.mxu0 %v4498_v0 }
0x16d3   :  { %3952 = vmatprep.subr.bf16.mxu0 %v4953_v49  ;;  %v1887_v28 = vcombine.low %v1879_v61, %v1886_v63  ;;  %v2010_v2 = vcombine.low %v2002_v19, %v2009_v1 }
0x16d4   :  { %v2182_v34 = vld [vmem:[#allocation5] sm:$0x3]  ;;  %v2264_v44 = vld [vmem:[#allocation6] sm:$0x3] }
0x16d5   :  { %3768 = vmatmul.mubr.msk.f32.gmra.mrb[14].mxu0 %vm484_vm4, %v1887_v28  ;;  %3770 = vmatmul.mubr.msk.f32.gmra.mrb[10].mxu1 %vm484_vm4, %v2010_v2  ;;  %v2279_v47 = vrot.slane %v2264_v44, %v4629_v18 }
0x16d6   :  { %3954 = vmatpush1.bf16.msra.mxu0 %v4959_v11  ;;  %2250 = vmatprep.mubr.f32.mxu0 %v4498_v0 }
0x16d7   :  { %3956 = vmatprep.subr.bf16.mxu0 %v4965_v46  ;;  %2434 = vmatprep.mubr.f32.mxu1 %v4498_v0 }
0x16da   :  { %3958 = vmatpush1.bf16.msra.mxu0 %v4969_v17 }
0x16db   :  { %3960 = vmatprep.subr.bf16.mxu0 %v4972_v20 }
0x16de   :  { %3962 = vmatpush1.bf16.msra.mxu0 %v4976_v23 }
0x16df   :  { %3980 = vmatprep.subr.bf16.mxu0 %v4939_v57 }
0x16e1   :  { %3775 = vmatmul.mubr.msk.f32.vlgmr.msra.gmra.mrb[16].mxu0 %vm319_vm2, %v2182_v34 }
0x16e2   :  { %3982 = vmatpush1.bf16.msra.mxu0 %v4946_v45  ;;  %2618 = vmatprep.mubr.f32.mxu0 %v4498_v0 }
0x16e3   :  { %3984 = vmatprep.subr.bf16.mxu0 %v4953_v49 }
0x16e6   :  { %3986 = vmatpush1.bf16.msra.mxu0 %v4959_v11 }
0x16e7   :  { %3988 = vmatprep.subr.bf16.mxu0 %v4965_v46 }
0x16ea   :  { %3990 = vmatpush1.bf16.msra.mxu0 %v4969_v17 }
0x16eb   :  { %3992 = vmatprep.subr.bf16.mxu0 %v4972_v20 }
0x16ee   :  { %3994 = vmatpush1.bf16.msra.mxu0 %v4976_v23 }
0x16ef   :  { %4012 = vmatprep.subr.bf16.mxu0 %v4939_v57 }
0x17a4   :  { %v1958_v3 = vpop.f32.mrb[12].mxu0 }
0x17a5   :  { %v2082_v5 = vadd.f32 %v4884_v9, %v1958_v3  ;;  %v1960_v7 = vpop.f32.mrb[13].mxu0 }
0x17a6   :  { %v2084_v8 = vadd.f32 %v4886_v10, %v1960_v7 }
0x17a7   :  { %v2104_v12 = vadd.f32 %v2097_v56, %v2082_v5 }
0x17a8   :  { %v2105_v13 = vadd.f32 %v2101_v50, %v2084_v8  ;;  %v1964_v15 = vpop.f32.mrb[14].mxu0  ;;  %v2087_v14 = vpop.f32.mrb[10].mxu1 }
0x17a9   :  { %v2088_v16 = vadd.f32 %v2087_v14, %v1964_v15  ;;  %v1966_v21 = vpop.f32.mrb[15].mxu0  ;;  %v2089_v22 = vpop.f32.mrb[11].mxu1 }
0x17aa   :  { %v2112_v24 = vcombine.low %v2104_v12, %v2105_v13  ;;  %v2113_v25 = vcombine.high %v2104_v12, %v2105_v13  ;;  %v2090_v27 = vadd.f32 %v2089_v22, %v1966_v21 }
0x17ab   :  { %v2106_v58 = vadd.f32 %v2097_v56, %v2088_v16 }
0x17ac   :  { %v2120_v29 = vrot.slane %v2112_v24, %v4629_v18  ;;  %v2127_v4 = vrot.slane %v2113_v25, %v4629_v18  ;;  %3771 = vst.sshfl [vmem:[#allocation2] sm:$0x33 pattern:$0x76325410] %v2112_v24  ;;  %v2107_v60 = vadd.f32 %v2101_v50, %v2090_v27 }
0x17ad   :  { %3772 = vst.sshfl [vmem:[#allocation2 + $0x8] sm:$0x33 pattern:$0x76325410] %v2113_v25 }
0x17ae   :  { %v2128_v9 = vcombine.high %v2120_v29, %v2120_v29  ;;  %v2129_v10 = vcombine.high %v2127_v4, %v2127_v4  ;;  %v2130_v30 = vcombine.low %v2106_v58, %v2107_v60  ;;  %v2131_v31 = vcombine.high %v2106_v58, %v2107_v60 }
0x17b0   :  { %2157 = vst [vmem:[#allocation2 + $0x4] sm:$0xf] %v2128_v9  ;;  %2159 = vst [vmem:[#allocation2 + $0xc] sm:$0xf] %v2129_v10  ;;  %v2138_v32 = vrot.slane %v2130_v30, %v4629_v18  ;;  %v2145_v35 = vrot.slane %v2131_v31, %v4629_v18 }
0x17b1   :  { %3773 = vst.sshfl [vmem:[#allocation2 + $0x10] sm:$0x33 pattern:$0x76325410] %v2130_v30 }
0x17b2   :  { %3774 = vst.sshfl [vmem:[#allocation2 + $0x18] sm:$0x33 pattern:$0x76325410] %v2131_v31  ;;  %v2146_v36 = vcombine.high %v2138_v32, %v2138_v32  ;;  %v2147_v41 = vcombine.high %v2145_v35, %v2145_v35 }
0x17b3   :  { %v2257_v37 = vld [vmem:[#allocation2] sm:$0xf] }
0x17b4   :  { %2161 = vst [vmem:[#allocation2 + $0x14] sm:$0xf] %v2146_v36  ;;  %2163 = vst [vmem:[#allocation2 + $0x1c] sm:$0xf] %v2147_v41  ;;  %v2252_v38 = vpop.f32.mrb[16].mxu0 }
0x17b5   :  { %v2259_v39 = vadd.f32 %v2257_v37, %v2252_v38  ;;  %v2254_v40 = vpop.f32.mrb[17].mxu0 }
0x17b7   :  { %4221 = vtanh.f32 %v2259_v39  ;;  %v3776_v48 = vmul.f32 -1.442695, %v2259_v39  ;;  %v2441_v10 = vld [vmem:[#allocation2 + $0x4] sm:$0xf] }
0x17b9   :  { %v2442_v60 = vld [vmem:[#allocation2 + $0x18] sm:$0xf] }
0x17ba   :  { %v2445_v30 = vrot.slane %v2442_v60, 2 }
0x17bb   :  { %v2258_v42 = vld [vmem:[#allocation2 + $0x1c] sm:$0xf] }
0x17bc   :  { %v2261_v33 = vrot.slane %v2258_v42, 2 }
0x17be   :  { %v2263_v43 = vadd.f32 %v2261_v33, %v2254_v40 }
0x17c0   :  { %4223 = vtanh.f32 %v2263_v43  ;;  %v3777_v26 = vmul.f32 -1.442695, %v2263_v43 }
0x17c1   :  { %v4222_v6 = vpop.eup %4221  ;;  %4225 = vpow2.f32 %v3776_v48 }
0x17c2   :  { %2285 = vrot.lane.b32.xlu0 %v4222_v6, %s4500_s3  ;;  %4227 = vpow2.f32 %v3777_v26 }
0x17c6   :  { %2280 = vrot.lane.b32.xlu0 %v2279_v47, %s4494_s4 }
0x17ca   :  { %v4224_v62 = vpop.eup %4223 }
0x17cb   :  { %2309 = vrot.lane.b32.xlu1 %v4224_v62, %s4500_s3  ;;  %v4226_v52 = vpop.eup %4225 }
0x17cc   :  { %v2268_v54 = vadd.f32 1.0, %v4226_v52  ;;  %v4228_v53 = vpop.eup %4227 }
0x17cd   :  { %v2303_v55 = vadd.f32 1.0, %v4228_v53 }
0x17ce   :  { %4229 = vrcp.f32 %v2268_v54 }
0x17cf   :  { %4231 = vrcp.f32 %v2303_v55 }
0x17d8   :  { %v4230_v59 = vpop.eup %4229 }
0x17d9   :  { %v4232_v19 = vpop.eup %4231 }
0x17da   :  { %v2307_v3 = vmul.f32 %v4232_v19, %v2264_v44 }
0x1834   :  { %v2286_v61 = vpop.permute.xlu0 %2285 }
0x1835   :  { %v2288_v63 = vmul.f32 %v4230_v59, %v2286_v61 }
0x1837   :  { %2290 = vrot.lane.b32.xlu1 %v2288_v63, %s4494_s4 }
0x1838   :  { %v2281_v2 = vpop.permute.xlu0 %2280 }
0x1839   :  { %v2283_v34 = vmul.f32 %v4230_v59, %v2281_v2 }
0x183d   :  { %v2310_v1 = vpop.permute.xlu1 %2309 }
0x183e   :  { %v2312_v28 = vmul.f32 %v4232_v19, %v2310_v1 }
0x1840   :  { %2314 = vrot.lane.b32.xlu0 %v2312_v28, %s4494_s4 }
0x18a9   :  { %v2291_v51 = vpop.permute.xlu1 %2290 }
0x18aa   :  { %v2293_v56 = vadd.f32 %v2291_v51, %v2283_v34 }
0x18ac   :  { %4233 = vtanh.f32 %v2293_v56  ;;  %v2355_v14 = vrot.slane %v2293_v56, %v4629_v18 }
0x18b2   :  { %v2315_v50 = vpop.permute.xlu0 %2314 }
0x18b3   :  { %v2317_v5 = vadd.f32 %v2315_v50, %v2307_v3 }
0x18b5   :  { %4235 = vtanh.f32 %v2317_v5 }
0x18b6   :  { %v4234_v7 = vpop.eup %4233 }
0x18b7   :  { %2296 = vrot.lane.b32.xlu1 %v4234_v7, %s4500_s3 }
0x18bf   :  { %v4236_v8 = vpop.eup %4235 }
0x18c0   :  { %2320 = vrot.lane.b32.xlu0 %v4236_v8, %s4500_s3 }
0x1929   :  { %v2297_v12 = vpop.permute.xlu1 %2296 }
0x192a   :  { %v2299_v13 = vmul.f32 %v4230_v59, %v2297_v12 }
0x192c   :  { %v2331_v15 = vrot.slane %v2299_v13, %v4629_v18 }
0x192e   :  { %2332 = vrot.lane.b32.xlu1 %v2331_v15, %s4494_s4 }
0x1932   :  { %2356 = vrot.lane.b32.xlu1 %v2355_v14, %s4501_s12  ;;  %v2321_v16 = vpop.permute.xlu0 %2320 }
0x1933   :  { %v2323_v21 = vmul.f32 %v4232_v19, %v2321_v16  ;;  %v2626_v16 = vld [vmem:[#allocation2 + $0x14] sm:$0xf] }
0x1935   :  { %v5048_v22 = vrot.slane %v2323_v21, %v4629_v18 }
0x1937   :  { %2343 = vrot.lane.b32.xlu0 %v5048_v22, %s4500_s3 }
0x19a0   :  { %v2333_v24 = vpop.permute.xlu1 %2332 }
0x19a1   :  { %2361 = vst.msk [vmem:[#allocation3] sm:$0x3] %vm500_vm3, %v2333_v24 }
0x19a4   :  { %v2357_v25 = vpop.permute.xlu1 %2356 }
0x19a5   :  { %v2359_v27 = vsel %vm484_vm4, %v2357_v25, %v2317_v5  ;;  %v2629_v25 = vrot.slane %v2626_v16, 2 }
0x19a6   :  { %2360 = vst.msk [vmem:[#allocation6] sm:$0x3] %vm299_vm0, %v2359_v27 }
0x19a9   :  { %v2344_v58 = vpop.permute.xlu0 %2343 }
0x19aa   :  { %v2346_v29 = vsel %vm484_vm4, %v2333_v24, %v2344_v58  ;;  %v2625_v24 = vld [vmem:[#allocation2 + $0x8] sm:$0xf] }
0x19ab   :  { %2347 = vst.msk [vmem:[#allocation5] sm:$0x3] %vm299_vm0, %v2346_v29 }
0x19ad   :  { %v2448_v41 = vld [vmem:[#allocation6] sm:$0x3] }
0x19ae   :  { %v2463_v38 = vrot.slane %v2448_v41, %v4629_v18 }
0x19b2   :  { %v2366_v4 = vld [vmem:[#allocation5] sm:$0x3] }
0x19b3   :  { %3778 = vmatmul.mubr.msk.f32.vlgmr.msra.gmra.mrb[12].mxu1 %vm319_vm2, %v2366_v4 }
0x19b4   :  { %3998 = vmatpush1.bf16.msra.mxu1 %v4946_v45  ;;  %2802 = vmatprep.mubr.f32.mxu1 %v4498_v0 }
0x19b5   :  { %4000 = vmatprep.subr.bf16.mxu1 %v4953_v49 }
0x19b8   :  { %4002 = vmatpush1.bf16.msra.mxu1 %v4959_v11 }
0x19b9   :  { %4004 = vmatprep.subr.bf16.mxu1 %v4965_v46 }
0x19bc   :  { %4006 = vmatpush1.bf16.msra.mxu1 %v4969_v17 }
0x19bd   :  { %4008 = vmatprep.subr.bf16.mxu1 %v4972_v20 }
0x19c0   :  { %4010 = vmatpush1.bf16.msra.mxu1 %v4976_v23 }
0x19c1   :  { %4028 = vmatprep.subr.bf16.mxu1 %v4939_v57 }
0x1a86   :  { %v2436_v9 = vpop.f32.mrb[12].mxu1 }
0x1a87   :  { %v2443_v31 = vadd.f32 %v2441_v10, %v2436_v9  ;;  %v2438_v32 = vpop.f32.mrb[13].mxu1 }
0x1a88   :  { %v2447_v35 = vadd.f32 %v2445_v30, %v2438_v32 }
0x1a89   :  { %4237 = vtanh.f32 %v2443_v31  ;;  %v3779_v39 = vmul.f32 -1.442695, %v2443_v31 }
0x1a8a   :  { %4239 = vtanh.f32 %v2447_v35  ;;  %v3780_v40 = vmul.f32 -1.442695, %v2447_v35 }
0x1a8b   :  { %4241 = vpow2.f32 %v3779_v39 }
0x1a8c   :  { %4243 = vpow2.f32 %v3780_v40 }
0x1a93   :  { %v4238_v36 = vpop.eup %4237 }
0x1a94   :  { %v4240_v37 = vpop.eup %4239  ;;  %2469 = vrot.lane.b32.xlu0 %v4238_v36, %s4500_s3 }
0x1a95   :  { %2493 = vrot.lane.b32.xlu1 %v4240_v37, %s4500_s3  ;;  %v4242_v42 = vpop.eup %4241 }
0x1a96   :  { %v4244_v33 = vpop.eup %4243  ;;  %v2452_v43 = vadd.f32 1.0, %v4242_v42 }
0x1a97   :  { %v2487_v44 = vadd.f32 1.0, %v4244_v33 }
0x1a98   :  { %2464 = vrot.lane.b32.xlu0 %v2463_v38, %s4494_s4  ;;  %4245 = vrcp.f32 %v2452_v43 }
0x1a99   :  { %4247 = vrcp.f32 %v2487_v44 }
0x1aa2   :  { %v4246_v6 = vpop.eup %4245 }
0x1aa3   :  { %v4248_v62 = vpop.eup %4247 }
0x1aa4   :  { %v2491_v59 = vmul.f32 %v4248_v62, %v2448_v41 }
0x1b06   :  { %v2470_v47 = vpop.permute.xlu0 %2469 }
0x1b07   :  { %v2472_v48 = vmul.f32 %v4246_v6, %v2470_v47  ;;  %v2494_v26 = vpop.permute.xlu1 %2493 }
0x1b08   :  { %v2496_v52 = vmul.f32 %v4248_v62, %v2494_v26 }
0x1b09   :  { %2474 = vrot.lane.b32.xlu1 %v2472_v48, %s4494_s4 }
0x1b0a   :  { %2498 = vrot.lane.b32.xlu0 %v2496_v52, %s4494_s4  ;;  %v2465_v54 = vpop.permute.xlu0 %2464 }
0x1b0b   :  { %v2467_v53 = vmul.f32 %v4246_v6, %v2465_v54 }
0x1b7b   :  { %v2475_v55 = vpop.permute.xlu1 %2474 }
0x1b7c   :  { %v2477_v61 = vadd.f32 %v2475_v55, %v2467_v53  ;;  %v2499_v63 = vpop.permute.xlu0 %2498 }
0x1b7d   :  { %v2501_v19 = vadd.f32 %v2499_v63, %v2491_v59 }
0x1b7e   :  { %4249 = vtanh.f32 %v2477_v61  ;;  %v2539_v5 = vrot.slane %v2477_v61, %v4629_v18 }
0x1b7f   :  { %4251 = vtanh.f32 %v2501_v19 }
0x1b88   :  { %v4250_v1 = vpop.eup %4249 }
0x1b89   :  { %v4252_v28 = vpop.eup %4251  ;;  %2480 = vrot.lane.b32.xlu1 %v4250_v1, %s4500_s3 }
0x1b8a   :  { %2504 = vrot.lane.b32.xlu0 %v4252_v28, %s4500_s3 }
0x1bfb   :  { %v2481_v2 = vpop.permute.xlu1 %2480 }
0x1bfc   :  { %v2483_v34 = vmul.f32 %v4246_v6, %v2481_v2  ;;  %v2505_v51 = vpop.permute.xlu0 %2504 }
0x1bfd   :  { %v2507_v56 = vmul.f32 %v4248_v62, %v2505_v51 }
0x1bfe   :  { %v2515_v3 = vrot.slane %v2483_v34, %v4629_v18 }
0x1bff   :  { %v5077_v50 = vrot.slane %v2507_v56, %v4629_v18 }
0x1c00   :  { %2516 = vrot.lane.b32.xlu1 %v2515_v3, %s4494_s4 }
0x1c01   :  { %2527 = vrot.lane.b32.xlu0 %v5077_v50, %s4500_s3 }
0x1c04   :  { %2540 = vrot.lane.b32.xlu1 %v2539_v5, %s4501_s12  ;;  %v2810_v5 = vld [vmem:[#allocation2 + $0x10] sm:$0xf] }
0x1c72   :  { %v2517_v7 = vpop.permute.xlu1 %2516 }
0x1c73   :  { %2545 = vst.msk [vmem:[#allocation3 + $0x2] sm:$0x3] %vm500_vm3, %v2517_v7  ;;  %v2528_v8 = vpop.permute.xlu0 %2527 }
0x1c74   :  { %v2530_v12 = vsel %vm484_vm4, %v2517_v7, %v2528_v8  ;;  %v2809_v8 = vld [vmem:[#allocation2 + $0xc] sm:$0xf] }
0x1c75   :  { %2531 = vst.msk [vmem:[#allocation5] sm:$0x3] %vm299_vm0, %v2530_v12  ;;  %v2813_v12 = vrot.slane %v2810_v5, 2 }
0x1c76   :  { %v2541_v13 = vpop.permute.xlu1 %2540 }
0x1c77   :  { %v2543_v15 = vsel %vm484_vm4, %v2541_v13, %v2501_v19 }
0x1c78   :  { %2544 = vst.msk [vmem:[#allocation6] sm:$0x3] %vm299_vm0, %v2543_v15 }
0x1c7c   :  { %v2550_v14 = vld [vmem:[#allocation5] sm:$0x3] }
0x1c7d   :  { %3781 = vmatmul.mubr.msk.f32.vlgmr.msra.gmra.mrb[18].mxu0 %vm319_vm2, %v2550_v14 }
0x1c7e   :  { %4014 = vmatpush1.bf16.msra.mxu0 %v4946_v45  ;;  %2986 = vmatprep.mubr.f32.mxu0 %v4498_v0 }
0x1c7f   :  { %4016 = vmatprep.subr.bf16.mxu0 %v4953_v49  ;;  %v2632_v60 = vld [vmem:[#allocation6] sm:$0x3] }
0x1c80   :  { %v2647_v10 = vrot.slane %v2632_v60, %v4629_v18 }
0x1c82   :  { %4018 = vmatpush1.bf16.msra.mxu0 %v4959_v11 }
0x1c83   :  { %4020 = vmatprep.subr.bf16.mxu0 %v4965_v46 }
0x1c86   :  { %4022 = vmatpush1.bf16.msra.mxu0 %v4969_v17 }
0x1c87   :  { %4024 = vmatprep.subr.bf16.mxu0 %v4972_v20 }
0x1c8a   :  { %4026 = vmatpush1.bf16.msra.mxu0 %v4976_v23 }
0x1c8b   :  { %4044 = vmatprep.subr.bf16.mxu0 %v4939_v57 }
0x1d50   :  { %v2620_v21 = vpop.f32.mrb[18].mxu0 }
0x1d51   :  { %v2627_v27 = vadd.f32 %v2625_v24, %v2620_v21  ;;  %v2622_v58 = vpop.f32.mrb[19].mxu0 }
0x1d52   :  { %v2631_v29 = vadd.f32 %v2629_v25, %v2622_v58 }
0x1d53   :  { %4253 = vtanh.f32 %v2627_v27  ;;  %v3782_v30 = vmul.f32 -1.442695, %v2627_v27 }
0x1d54   :  { %4255 = vtanh.f32 %v2631_v29  ;;  %v3783_v31 = vmul.f32 -1.442695, %v2631_v29 }
0x1d55   :  { %4257 = vpow2.f32 %v3782_v30 }
0x1d56   :  { %4259 = vpow2.f32 %v3783_v31 }
0x1d5d   :  { %v4254_v4 = vpop.eup %4253 }
0x1d5e   :  { %v4256_v9 = vpop.eup %4255  ;;  %2653 = vrot.lane.b32.xlu0 %v4254_v4, %s4500_s3 }
0x1d5f   :  { %2677 = vrot.lane.b32.xlu1 %v4256_v9, %s4500_s3  ;;  %v4258_v32 = vpop.eup %4257 }
0x1d60   :  { %v4260_v35 = vpop.eup %4259  ;;  %v2636_v36 = vadd.f32 1.0, %v4258_v32 }
0x1d61   :  { %v2671_v41 = vadd.f32 1.0, %v4260_v35 }
0x1d62   :  { %2648 = vrot.lane.b32.xlu0 %v2647_v10, %s4494_s4  ;;  %4261 = vrcp.f32 %v2636_v36 }
0x1d63   :  { %4263 = vrcp.f32 %v2671_v41 }
0x1d6c   :  { %v4262_v37 = vpop.eup %4261 }
0x1d6d   :  { %v4264_v39 = vpop.eup %4263 }
0x1d6e   :  { %v2675_v47 = vmul.f32 %v4264_v39, %v2632_v60 }
0x1dd0   :  { %v2654_v38 = vpop.permute.xlu0 %2653 }
0x1dd1   :  { %v2656_v40 = vmul.f32 %v4262_v37, %v2654_v38  ;;  %v2678_v42 = vpop.permute.xlu1 %2677 }
0x1dd2   :  { %v2680_v33 = vmul.f32 %v4264_v39, %v2678_v42 }
0x1dd3   :  { %2658 = vrot.lane.b32.xlu1 %v2656_v40, %s4494_s4 }
0x1dd4   :  { %2682 = vrot.lane.b32.xlu0 %v2680_v33, %s4494_s4  ;;  %v2649_v43 = vpop.permute.xlu0 %2648 }
0x1dd5   :  { %v2651_v44 = vmul.f32 %v4262_v37, %v2649_v43 }
0x1e45   :  { %v2659_v6 = vpop.permute.xlu1 %2658 }
0x1e46   :  { %v2661_v62 = vadd.f32 %v2659_v6, %v2651_v44  ;;  %v2683_v48 = vpop.permute.xlu0 %2682 }
0x1e47   :  { %v2685_v26 = vadd.f32 %v2683_v48, %v2675_v47 }
0x1e48   :  { %4265 = vtanh.f32 %v2661_v62  ;;  %v2723_v1 = vrot.slane %v2661_v62, %v4629_v18 }
0x1e49   :  { %4267 = vtanh.f32 %v2685_v26 }
0x1e52   :  { %v4266_v52 = vpop.eup %4265 }
0x1e53   :  { %v4268_v54 = vpop.eup %4267  ;;  %2664 = vrot.lane.b32.xlu1 %v4266_v52, %s4500_s3 }
0x1e54   :  { %2688 = vrot.lane.b32.xlu0 %v4268_v54, %s4500_s3 }
0x1ec5   :  { %v2665_v53 = vpop.permute.xlu1 %2664 }
0x1ec6   :  { %v2667_v55 = vmul.f32 %v4262_v37, %v2665_v53  ;;  %v2689_v59 = vpop.permute.xlu0 %2688 }
0x1ec7   :  { %v2691_v61 = vmul.f32 %v4264_v39, %v2689_v59 }
0x1ec8   :  { %v2699_v63 = vrot.slane %v2667_v55, %v4629_v18 }
0x1ec9   :  { %v5109_v19 = vrot.slane %v2691_v61, %v4629_v18 }
0x1eca   :  { %2700 = vrot.lane.b32.xlu1 %v2699_v63, %s4494_s4 }
0x1ecb   :  { %2711 = vrot.lane.b32.xlu0 %v5109_v19, %s4500_s3 }
0x1ece   :  { %2724 = vrot.lane.b32.xlu1 %v2723_v1, %s4501_s12  ;;  %v2994_v1 = vld [vmem:[#allocation2 + $0xc] sm:$0xf] }
0x1f3c   :  { %v2701_v28 = vpop.permute.xlu1 %2700 }
0x1f3d   :  { %2729 = vst.msk [vmem:[#allocation3 + $0x4] sm:$0x3] %vm500_vm3, %v2701_v28  ;;  %v2712_v2 = vpop.permute.xlu0 %2711 }
0x1f3e   :  { %v2714_v34 = vsel %vm484_vm4, %v2701_v28, %v2712_v2  ;;  %v2993_v2 = vld [vmem:[#allocation2 + $0x10] sm:$0xf] }
0x1f3f   :  { %2715 = vst.msk [vmem:[#allocation5] sm:$0x3] %vm299_vm0, %v2714_v34  ;;  %v2997_v34 = vrot.slane %v2994_v1, 2 }
0x1f40   :  { %v2725_v51 = vpop.permute.xlu1 %2724 }
0x1f41   :  { %v2727_v56 = vsel %vm484_vm4, %v2725_v51, %v2685_v26 }
0x1f42   :  { %2728 = vst.msk [vmem:[#allocation6] sm:$0x3] %vm299_vm0, %v2727_v56 }
0x1f46   :  { %v2734_v3 = vld [vmem:[#allocation5] sm:$0x3] }
0x1f47   :  { %3784 = vmatmul.mubr.msk.f32.vlgmr.msra.gmra.mrb[14].mxu1 %vm319_vm2, %v2734_v3 }
0x1f48   :  { %4030 = vmatpush1.bf16.msra.mxu1 %v4946_v45  ;;  %3170 = vmatprep.mubr.f32.mxu1 %v4498_v0 }
0x1f49   :  { %4032 = vmatprep.subr.bf16.mxu1 %v4953_v49  ;;  %v2816_v21 = vld [vmem:[#allocation6] sm:$0x3] }
0x1f4a   :  { %v2831_v25 = vrot.slane %v2816_v21, %v4629_v18 }
0x1f4c   :  { %4034 = vmatpush1.bf16.msra.mxu1 %v4959_v11 }
0x1f4d   :  { %4036 = vmatprep.subr.bf16.mxu1 %v4965_v46 }
0x1f50   :  { %4038 = vmatpush1.bf16.msra.mxu1 %v4969_v17 }
0x1f51   :  { %4040 = vmatprep.subr.bf16.mxu1 %v4972_v20 }
0x1f54   :  { %4042 = vmatpush1.bf16.msra.mxu1 %v4976_v23 }
0x1f55   :  { %4060 = vmatprep.subr.bf16.mxu1 %v4939_v57 }
0x201a   :  { %v2804_v7 = vpop.f32.mrb[14].mxu1 }
0x201b   :  { %v2811_v13 = vadd.f32 %v2809_v8, %v2804_v7  ;;  %v2806_v15 = vpop.f32.mrb[15].mxu1 }
0x201c   :  { %v2815_v14 = vadd.f32 %v2813_v12, %v2806_v15 }
0x201d   :  { %4269 = vtanh.f32 %v2811_v13  ;;  %v3785_v57 = vmul.f32 -1.442695, %v2811_v13 }
0x201e   :  { %4271 = vtanh.f32 %v2815_v14  ;;  %v3786_v27 = vmul.f32 -1.442695, %v2815_v14 }
0x201f   :  { %4273 = vpow2.f32 %v3785_v57 }
0x2020   :  { %4275 = vpow2.f32 %v3786_v27 }
0x2027   :  { %v4270_v16 = vpop.eup %4269 }
0x2028   :  { %v4272_v24 = vpop.eup %4271  ;;  %2837 = vrot.lane.b32.xlu0 %v4270_v16, %s4500_s3 }
0x2029   :  { %2861 = vrot.lane.b32.xlu1 %v4272_v24, %s4500_s3  ;;  %v4274_v58 = vpop.eup %4273 }
0x202a   :  { %v4276_v29 = vpop.eup %4275  ;;  %v2820_v4 = vadd.f32 1.0, %v4274_v58 }
0x202b   :  { %v2855_v60 = vadd.f32 1.0, %v4276_v29 }
0x202c   :  { %2832 = vrot.lane.b32.xlu0 %v2831_v25, %s4494_s4  ;;  %4277 = vrcp.f32 %v2820_v4 }
0x202d   :  { %4279 = vrcp.f32 %v2855_v60 }
0x2036   :  { %v4278_v9 = vpop.eup %4277 }
0x2037   :  { %v4280_v30 = vpop.eup %4279 }
0x2038   :  { %v2859_v38 = vmul.f32 %v4280_v30, %v2816_v21 }
0x209a   :  { %v2838_v10 = vpop.permute.xlu0 %2837 }
0x209b   :  { %v2840_v31 = vmul.f32 %v4278_v9, %v2838_v10  ;;  %v2862_v32 = vpop.permute.xlu1 %2861 }
0x209c   :  { %v2864_v35 = vmul.f32 %v4280_v30, %v2862_v32 }
0x209d   :  { %2842 = vrot.lane.b32.xlu1 %v2840_v31, %s4494_s4 }
0x209e   :  { %2866 = vrot.lane.b32.xlu0 %v2864_v35, %s4494_s4  ;;  %v2833_v36 = vpop.permute.xlu0 %2832 }
0x209f   :  { %v2835_v41 = vmul.f32 %v4278_v9, %v2833_v36 }
0x210f   :  { %v2843_v37 = vpop.permute.xlu1 %2842 }
0x2110   :  { %v2845_v39 = vadd.f32 %v2843_v37, %v2835_v41  ;;  %v2867_v40 = vpop.permute.xlu0 %2866 }
0x2111   :  { %v2869_v42 = vadd.f32 %v2867_v40, %v2859_v38 }
0x2112   :  { %4281 = vtanh.f32 %v2845_v39  ;;  %v2907_v52 = vrot.slane %v2845_v39, %v4629_v18 }
0x2113   :  { %4283 = vtanh.f32 %v2869_v42 }
0x211c   :  { %v4282_v33 = vpop.eup %4281 }
0x211d   :  { %v4284_v43 = vpop.eup %4283  ;;  %2848 = vrot.lane.b32.xlu1 %v4282_v33, %s4500_s3 }
0x211e   :  { %2872 = vrot.lane.b32.xlu0 %v4284_v43, %s4500_s3 }
0x218f   :  { %v2849_v44 = vpop.permute.xlu1 %2848 }
0x2190   :  { %v2851_v6 = vmul.f32 %v4278_v9, %v2849_v44  ;;  %v2873_v47 = vpop.permute.xlu0 %2872 }
0x2191   :  { %v2875_v62 = vmul.f32 %v4280_v30, %v2873_v47 }
0x2192   :  { %v2883_v48 = vrot.slane %v2851_v6, %v4629_v18 }
0x2193   :  { %v5141_v26 = vrot.slane %v2875_v62, %v4629_v18 }
0x2194   :  { %2884 = vrot.lane.b32.xlu1 %v2883_v48, %s4494_s4 }
0x2195   :  { %2895 = vrot.lane.b32.xlu0 %v5141_v26, %s4500_s3 }
0x2198   :  { %2908 = vrot.lane.b32.xlu1 %v2907_v52, %s4501_s12 }
0x2206   :  { %v2885_v54 = vpop.permute.xlu1 %2884 }
0x2207   :  { %2913 = vst.msk [vmem:[#allocation3 + $0x6] sm:$0x3] %vm500_vm3, %v2885_v54  ;;  %v2896_v53 = vpop.permute.xlu0 %2895 }
0x2208   :  { %v2898_v55 = vsel %vm484_vm4, %v2885_v54, %v2896_v53  ;;  %v3178_v54 = vld [vmem:[#allocation2 + $0x8] sm:$0xf] }
0x2209   :  { %2899 = vst.msk [vmem:[#allocation5] sm:$0x3] %vm299_vm0, %v2898_v55  ;;  %v3177_v55 = vld [vmem:[#allocation2 + $0x14] sm:$0xf] }
0x220a   :  { %v2909_v59 = vpop.permute.xlu1 %2908 }
0x220b   :  { %v2911_v61 = vsel %vm484_vm4, %v2909_v59, %v2869_v42  ;;  %v3181_v59 = vrot.slane %v3178_v54, 2 }
0x220c   :  { %2912 = vst.msk [vmem:[#allocation6] sm:$0x3] %vm299_vm0, %v2911_v61 }
0x2210   :  { %v2918_v63 = vld [vmem:[#allocation5] sm:$0x3] }
0x2211   :  { %3787 = vmatmul.mubr.msk.f32.vlgmr.msra.gmra.mrb[20].mxu0 %vm319_vm2, %v2918_v63 }
0x2212   :  { %4046 = vmatpush1.bf16.msra.mxu0 %v4946_v45  ;;  %3354 = vmatprep.mubr.f32.mxu0 %v4498_v0 }
0x2213   :  { %4048 = vmatprep.subr.bf16.mxu0 %v4953_v49  ;;  %v3000_v7 = vld [vmem:[#allocation6] sm:$0x3] }
0x2214   :  { %v3015_v12 = vrot.slane %v3000_v7, %v4629_v18 }
0x2216   :  { %4050 = vmatpush1.bf16.msra.mxu0 %v4959_v11 }
0x2217   :  { %4052 = vmatprep.subr.bf16.mxu0 %v4965_v46 }
0x221a   :  { %4054 = vmatpush1.bf16.msra.mxu0 %v4969_v17 }
0x221b   :  { %4056 = vmatprep.subr.bf16.mxu0 %v4972_v20 }
0x221e   :  { %4058 = vmatpush1.bf16.msra.mxu0 %v4976_v23 }
0x22e4   :  { %v2988_v28 = vpop.f32.mrb[20].mxu0 }
0x22e5   :  { %v2995_v51 = vadd.f32 %v2993_v2, %v2988_v28  ;;  %v2990_v56 = vpop.f32.mrb[21].mxu0 }
0x22e6   :  { %v2999_v3 = vadd.f32 %v2997_v34, %v2990_v56 }
0x22e7   :  { %4285 = vtanh.f32 %v2995_v51  ;;  %v3788_v13 = vmul.f32 -1.442695, %v2995_v51 }
0x22e8   :  { %4287 = vtanh.f32 %v2999_v3  ;;  %v3789_v15 = vmul.f32 -1.442695, %v2999_v3 }
0x22e9   :  { %4289 = vpow2.f32 %v3788_v13 }
0x22ea   :  { %4291 = vpow2.f32 %v3789_v15 }
0x22f1   :  { %v4286_v5 = vpop.eup %4285 }
0x22f2   :  { %v4288_v8 = vpop.eup %4287  ;;  %3021 = vrot.lane.b32.xlu0 %v4286_v5, %s4500_s3 }
0x22f3   :  { %3045 = vrot.lane.b32.xlu1 %v4288_v8, %s4500_s3  ;;  %v4290_v14 = vpop.eup %4289 }
0x22f4   :  { %v4292_v16 = vpop.eup %4291  ;;  %v3004_v21 = vadd.f32 1.0, %v4290_v14 }
0x22f5   :  { %v3039_v24 = vadd.f32 1.0, %v4292_v16 }
0x22f6   :  { %3016 = vrot.lane.b32.xlu0 %v3015_v12, %s4494_s4  ;;  %4293 = vrcp.f32 %v3004_v21 }
0x22f7   :  { %4295 = vrcp.f32 %v3039_v24 }
0x2300   :  { %v4294_v25 = vpop.eup %4293 }
0x2301   :  { %v4296_v27 = vpop.eup %4295 }
0x2302   :  { %v3043_v30 = vmul.f32 %v4296_v27, %v3000_v7 }
0x2364   :  { %v3022_v57 = vpop.permute.xlu0 %3021 }
0x2365   :  { %v3024_v58 = vmul.f32 %v4294_v25, %v3022_v57  ;;  %v3046_v29 = vpop.permute.xlu1 %3045 }
0x2366   :  { %v3048_v4 = vmul.f32 %v4296_v27, %v3046_v29 }
0x2367   :  { %3026 = vrot.lane.b32.xlu1 %v3024_v58, %s4494_s4 }
0x2368   :  { %3050 = vrot.lane.b32.xlu0 %v3048_v4, %s4494_s4  ;;  %v3017_v60 = vpop.permute.xlu0 %3016 }
0x2369   :  { %v3019_v9 = vmul.f32 %v4294_v25, %v3017_v60 }
0x23d9   :  { %v3027_v10 = vpop.permute.xlu1 %3026 }
0x23da   :  { %v3029_v31 = vadd.f32 %v3027_v10, %v3019_v9  ;;  %v3051_v32 = vpop.permute.xlu0 %3050 }
0x23db   :  { %v3053_v35 = vadd.f32 %v3051_v32, %v3043_v30 }
0x23dc   :  { %4297 = vtanh.f32 %v3029_v31  ;;  %v3091_v43 = vrot.slane %v3029_v31, %v4629_v18 }
0x23dd   :  { %4299 = vtanh.f32 %v3053_v35 }
0x23e6   :  { %v4298_v36 = vpop.eup %4297 }
0x23e7   :  { %v4300_v41 = vpop.eup %4299  ;;  %3032 = vrot.lane.b32.xlu1 %v4298_v36, %s4500_s3 }
0x23e8   :  { %3056 = vrot.lane.b32.xlu0 %v4300_v41, %s4500_s3  ;;  %v3362_v41 = vld [vmem:[#allocation2 + $0x4] sm:$0xf] }
0x2459   :  { %v3033_v37 = vpop.permute.xlu1 %3032 }
0x245a   :  { %v3035_v38 = vmul.f32 %v4294_v25, %v3033_v37  ;;  %v3057_v39 = vpop.permute.xlu0 %3056 }
0x245b   :  { %v3059_v40 = vmul.f32 %v4296_v27, %v3057_v39  ;;  %v3365_v39 = vrot.slane %v3362_v41, 2 }
0x245c   :  { %v3067_v42 = vrot.slane %v3035_v38, %v4629_v18  ;;  %v3361_v38 = vld [vmem:[#allocation2 + $0x18] sm:$0xf] }
0x245d   :  { %v5172_v33 = vrot.slane %v3059_v40, %v4629_v18 }
0x245e   :  { %3068 = vrot.lane.b32.xlu1 %v3067_v42, %s4494_s4 }
0x245f   :  { %3079 = vrot.lane.b32.xlu0 %v5172_v33, %s4500_s3 }
0x2462   :  { %3092 = vrot.lane.b32.xlu1 %v3091_v43, %s4501_s12 }
0x24d0   :  { %v3069_v44 = vpop.permute.xlu1 %3068 }
0x24d1   :  { %3097 = vst.msk [vmem:[#allocation3 + $0x8] sm:$0x3] %vm500_vm3, %v3069_v44  ;;  %v3080_v6 = vpop.permute.xlu0 %3079 }
0x24d2   :  { %v3082_v47 = vsel %vm484_vm4, %v3069_v44, %v3080_v6 }
0x24d3   :  { %3083 = vst.msk [vmem:[#allocation5] sm:$0x3] %vm299_vm0, %v3082_v47 }
0x24d4   :  { %v3093_v62 = vpop.permute.xlu1 %3092 }
0x24d5   :  { %v3095_v48 = vsel %vm484_vm4, %v3093_v62, %v3053_v35 }
0x24d6   :  { %3096 = vst.msk [vmem:[#allocation6] sm:$0x3] %vm299_vm0, %v3095_v48 }
0x24da   :  { %v3102_v52 = vld [vmem:[#allocation5] sm:$0x3] }
0x24db   :  { %3790 = vmatmul.mubr.msk.f32.vlgmr.msra.gmra.mrb[16].mxu1 %vm319_vm2, %v3102_v52 }
0x24dc   :  { %4062 = vmatpush1.bf16.msra.mxu1 %v4946_v45  ;;  %3538 = vmatprep.mubr.f32.mxu1 %v4498_v0 }
0x24dd   :  { %4064 = vmatprep.subr.bf16.mxu1 %v4953_v49  ;;  %v3184_v49 = vld [vmem:[#allocation6] sm:$0x3] }
0x24e0   :  { %4066 = vmatpush1.bf16.msra.mxu1 %v4959_v11 }
0x24e1   :  { %4068 = vmatprep.subr.bf16.mxu1 %v4965_v46  ;;  %v3199_v46 = vrot.slane %v3184_v49, %v4629_v18 }
0x24e4   :  { %4070 = vmatpush1.bf16.msra.mxu1 %v4969_v17 }
0x24e5   :  { %4072 = vmatprep.subr.bf16.mxu1 %v4972_v20 }
0x24e8   :  { %4074 = vmatpush1.bf16.msra.mxu1 %v4976_v23 }
0x25ae   :  { %v3172_v53 = vpop.f32.mrb[16].mxu1 }
0x25af   :  { %v3179_v61 = vadd.f32 %v3177_v55, %v3172_v53  ;;  %v3174_v45 = vpop.f32.mrb[17].mxu1 }
0x25b0   :  { %v3183_v63 = vadd.f32 %v3181_v59, %v3174_v45 }
0x25b1   :  { %4301 = vtanh.f32 %v3179_v61  ;;  %v3791_v17 = vmul.f32 -1.442695, %v3179_v61 }
0x25b2   :  { %4303 = vtanh.f32 %v3183_v63  ;;  %v3792_v20 = vmul.f32 -1.442695, %v3183_v63 }
0x25b3   :  { %4305 = vpow2.f32 %v3791_v17 }
0x25b4   :  { %4307 = vpow2.f32 %v3792_v20 }
0x25bb   :  { %v4302_v0 = vpop.eup %4301 }
0x25bc   :  { %v4304_v11 = vpop.eup %4303  ;;  %3205 = vrot.lane.b32.xlu0 %v4302_v0, %s4500_s3 }
0x25bd   :  { %3229 = vrot.lane.b32.xlu1 %v4304_v11, %s4500_s3  ;;  %v4306_v23 = vpop.eup %4305 }
0x25be   :  { %v4308_v1 = vpop.eup %4307  ;;  %v3188_v28 = vadd.f32 1.0, %v4306_v23 }
0x25bf   :  { %v3223_v2 = vadd.f32 1.0, %v4308_v1 }
0x25c0   :  { %3200 = vrot.lane.b32.xlu0 %v3199_v46, %s4494_s4  ;;  %4309 = vrcp.f32 %v3188_v28 }
0x25c1   :  { %4311 = vrcp.f32 %v3223_v2 }
0x25ca   :  { %v4310_v34 = vpop.eup %4309 }
0x25cb   :  { %v4312_v56 = vpop.eup %4311 }
0x25cc   :  { %v3227_v15 = vmul.f32 %v4312_v56, %v3184_v49 }
0x262e   :  { %v3206_v51 = vpop.permute.xlu0 %3205 }
0x262f   :  { %v3208_v3 = vmul.f32 %v4310_v34, %v3206_v51  ;;  %v3230_v5 = vpop.permute.xlu1 %3229 }
0x2630   :  { %v3232_v7 = vmul.f32 %v4312_v56, %v3230_v5 }
0x2631   :  { %3210 = vrot.lane.b32.xlu1 %v3208_v3, %s4494_s4 }
0x2632   :  { %3234 = vrot.lane.b32.xlu0 %v3232_v7, %s4494_s4  ;;  %v3201_v8 = vpop.permute.xlu0 %3200 }
0x2633   :  { %v3203_v12 = vmul.f32 %v4310_v34, %v3201_v8 }
0x26a3   :  { %v3211_v13 = vpop.permute.xlu1 %3210 }
0x26a4   :  { %v3213_v14 = vadd.f32 %v3211_v13, %v3203_v12  ;;  %v3235_v16 = vpop.permute.xlu0 %3234 }
0x26a5   :  { %v3237_v21 = vadd.f32 %v3235_v16, %v3227_v15 }
0x26a6   :  { %4313 = vtanh.f32 %v3213_v14  ;;  %v3275_v9 = vrot.slane %v3213_v14, %v4629_v18 }
0x26a7   :  { %4315 = vtanh.f32 %v3237_v21 }
0x26b0   :  { %v4314_v24 = vpop.eup %4313 }
0x26b1   :  { %v4316_v25 = vpop.eup %4315  ;;  %3216 = vrot.lane.b32.xlu1 %v4314_v24, %s4500_s3 }
0x26b2   :  { %3240 = vrot.lane.b32.xlu0 %v4316_v25, %s4500_s3 }
0x2723   :  { %v3217_v57 = vpop.permute.xlu1 %3216 }
0x2724   :  { %v3219_v27 = vmul.f32 %v4310_v34, %v3217_v57  ;;  %v3241_v58 = vpop.permute.xlu0 %3240  ;;  %v3546_v57 = vld [vmem:[#allocation2] sm:$0xf] }
0x2725   :  { %v3243_v29 = vmul.f32 %v4312_v56, %v3241_v58  ;;  %v3549_v58 = vrot.slane %v3546_v57, 2  ;;  %v3657_v57 = vld [vmem:[#allocation3 + $0x6] sm:$0x3] }
0x2726   :  { %v3251_v4 = vrot.slane %v3219_v27, %v4629_v18 }
0x2727   :  { %v5203_v60 = vrot.slane %v3243_v29, %v4629_v18 }
0x2728   :  { %3252 = vrot.lane.b32.xlu1 %v3251_v4, %s4494_s4 }
0x2729   :  { %3263 = vrot.lane.b32.xlu0 %v5203_v60, %s4500_s3 }
0x272c   :  { %3276 = vrot.lane.b32.xlu1 %v3275_v9, %s4501_s12  ;;  %v3545_v9 = vld [vmem:[#allocation2 + $0x1c] sm:$0xf] }
0x279a   :  { %v3253_v10 = vpop.permute.xlu1 %3252 }
0x279b   :  { %3281 = vst.msk [vmem:[#allocation3 + $0xa] sm:$0x3] %vm500_vm3, %v3253_v10  ;;  %v3264_v30 = vpop.permute.xlu0 %3263 }
0x279c   :  { %v3266_v31 = vsel %vm484_vm4, %v3253_v10, %v3264_v30 }
0x279d   :  { %3267 = vst.msk [vmem:[#allocation5] sm:$0x3] %vm299_vm0, %v3266_v31 }
0x279e   :  { %v3277_v32 = vpop.permute.xlu1 %3276 }
0x279f   :  { %v3279_v35 = vsel %vm484_vm4, %v3277_v32, %v3237_v21 }
0x27a0   :  { %3280 = vst.msk [vmem:[#allocation6] sm:$0x3] %vm299_vm0, %v3279_v35 }
0x27a4   :  { %v3286_v36 = vld [vmem:[#allocation5] sm:$0x3] }
0x27a5   :  { %3793 = vmatmul.mubr.msk.f32.vlgmr.msra.gmra.mrb[22].mxu0 %vm319_vm2, %v3286_v36 }
0x27a7   :  { %v3368_v6 = vld [vmem:[#allocation6] sm:$0x3] }
0x27a8   :  { %v3383_v62 = vrot.slane %v3368_v6, %v4629_v18 }
0x2878   :  { %v3356_v37 = vpop.f32.mrb[22].mxu0 }
0x2879   :  { %v3363_v40 = vadd.f32 %v3361_v38, %v3356_v37  ;;  %v3358_v42 = vpop.f32.mrb[23].mxu0 }
0x287a   :  { %v3367_v43 = vadd.f32 %v3365_v39, %v3358_v42 }
0x287b   :  { %4317 = vtanh.f32 %v3363_v40  ;;  %v3794_v48 = vmul.f32 -1.442695, %v3363_v40 }
0x287c   :  { %4319 = vtanh.f32 %v3367_v43  ;;  %v3795_v52 = vmul.f32 -1.442695, %v3367_v43 }
0x287d   :  { %4321 = vpow2.f32 %v3794_v48 }
0x287e   :  { %4323 = vpow2.f32 %v3795_v52 }
0x2885   :  { %v4318_v44 = vpop.eup %4317 }
0x2886   :  { %v4320_v47 = vpop.eup %4319  ;;  %3389 = vrot.lane.b32.xlu0 %v4318_v44, %s4500_s3 }
0x2887   :  { %3413 = vrot.lane.b32.xlu1 %v4320_v47, %s4500_s3  ;;  %v4322_v54 = vpop.eup %4321 }
0x2888   :  { %v4324_v53 = vpop.eup %4323  ;;  %v3372_v55 = vadd.f32 1.0, %v4322_v54 }
0x2889   :  { %v3407_v59 = vadd.f32 1.0, %v4324_v53 }
0x288a   :  { %3384 = vrot.lane.b32.xlu0 %v3383_v62, %s4494_s4  ;;  %4325 = vrcp.f32 %v3372_v55 }
0x288b   :  { %4327 = vrcp.f32 %v3407_v59 }
0x2894   :  { %v4326_v61 = vpop.eup %4325 }
0x2895   :  { %v4328_v63 = vpop.eup %4327 }
0x2896   :  { %v3411_v23 = vmul.f32 %v4328_v63, %v3368_v6 }
0x28f8   :  { %v3390_v45 = vpop.permute.xlu0 %3389 }
0x28f9   :  { %v3392_v0 = vmul.f32 %v4326_v61, %v3390_v45  ;;  %v3414_v49 = vpop.permute.xlu1 %3413 }
0x28fa   :  { %v3416_v11 = vmul.f32 %v4328_v63, %v3414_v49 }
0x28fb   :  { %3394 = vrot.lane.b32.xlu1 %v3392_v0, %s4494_s4 }
0x28fc   :  { %3418 = vrot.lane.b32.xlu0 %v3416_v11, %s4494_s4  ;;  %v3385_v46 = vpop.permute.xlu0 %3384 }
0x28fd   :  { %v3387_v17 = vmul.f32 %v4326_v61, %v3385_v46 }
0x296d   :  { %v3395_v20 = vpop.permute.xlu1 %3394 }
0x296e   :  { %v3397_v1 = vadd.f32 %v3395_v20, %v3387_v17  ;;  %v3419_v28 = vpop.permute.xlu0 %3418 }
0x296f   :  { %v3421_v2 = vadd.f32 %v3419_v28, %v3411_v23 }
0x2970   :  { %4329 = vtanh.f32 %v3397_v1  ;;  %v3459_v13 = vrot.slane %v3397_v1, %v4629_v18 }
0x2971   :  { %4331 = vtanh.f32 %v3421_v2 }
0x297a   :  { %v4330_v34 = vpop.eup %4329 }
0x297b   :  { %v4332_v51 = vpop.eup %4331  ;;  %3400 = vrot.lane.b32.xlu1 %v4330_v34, %s4500_s3 }
0x297c   :  { %3424 = vrot.lane.b32.xlu0 %v4332_v51, %s4500_s3 }
0x29ed   :  { %v3401_v56 = vpop.permute.xlu1 %3400 }
0x29ee   :  { %v3403_v3 = vmul.f32 %v4326_v61, %v3401_v56  ;;  %v3425_v5 = vpop.permute.xlu0 %3424 }
0x29ef   :  { %v3427_v7 = vmul.f32 %v4328_v63, %v3425_v5 }
0x29f0   :  { %v3435_v8 = vrot.slane %v3403_v3, %v4629_v18 }
0x29f1   :  { %v5226_v12 = vrot.slane %v3427_v7, %v4629_v18 }
0x29f2   :  { %3436 = vrot.lane.b32.xlu1 %v3435_v8, %s4494_s4 }
0x29f3   :  { %3447 = vrot.lane.b32.xlu0 %v5226_v12, %s4500_s3 }
0x29f7   :  { %3460 = vrot.lane.b32.xlu0 %v3459_v13, %s4501_s12  ;;  %v3656_v13 = vld [vmem:[#allocation3 + $0x4] sm:$0x3] }
0x2a64   :  { %v3437_v15 = vpop.permute.xlu1 %3436 }
0x2a65   :  { %3465 = vst.msk [vmem:[#allocation3 + $0xc] sm:$0x3] %vm500_vm3, %v3437_v15  ;;  %v3448_v14 = vpop.permute.xlu0 %3447 }
0x2a66   :  { %v3450_v16 = vsel %vm484_vm4, %v3437_v15, %v3448_v14  ;;  %v3655_v14 = vld [vmem:[#allocation3 + $0x2] sm:$0x3] }
0x2a67   :  { %3451 = vst.msk [vmem:[#allocation5] sm:$0x3] %vm299_vm0, %v3450_v16 }
0x2a69   :  { %v3461_v21 = vpop.permute.xlu0 %3460 }
0x2a6a   :  { %v3463_v24 = vsel %vm484_vm4, %v3461_v21, %v3421_v2 }
0x2a6b   :  { %3464 = vst.msk [vmem:[#allocation6] sm:$0x3] %vm299_vm0, %v3463_v24  ;;  %v3658_v24 = vld [vmem:[#allocation3 + $0x8] sm:$0x3] }
0x2a6e   :  { %v3470_v25 = vld [vmem:[#allocation5] sm:$0x3] }
0x2a6f   :  { %3796 = vmatmul.mubr.msk.f32.vlgmr.msra.gmra.mrb[18].mxu1 %vm319_vm2, %v3470_v25 }
0x2a72   :  { %v3552_v32 = vld [vmem:[#allocation6] sm:$0x3] }
0x2a73   :  { %v3567_v35 = vrot.slane %v3552_v32, %v4629_v18 }
0x2b42   :  { %v3540_v27 = vpop.f32.mrb[18].mxu1 }
0x2b43   :  { %v3542_v29 = vpop.f32.mrb[19].mxu1  ;;  %v3547_v10 = vadd.f32 %v3545_v9, %v3540_v27 }
0x2b44   :  { %v3551_v4 = vadd.f32 %v3549_v58, %v3542_v29 }
0x2b45   :  { %v3797_v41 = vmul.f32 -1.442695, %v3547_v10 }
0x2b46   :  { %4333 = vtanh.f32 %v3551_v4  ;;  %v3798_v36 = vmul.f32 -1.442695, %v3551_v4  ;;  %v3660_v4 = vld [vmem:[#allocation3 + $0xc] sm:$0x3] }
0x2b47   :  { %4335 = vtanh.f32 %v3547_v10  ;;  %v3659_v10 = vld [vmem:[#allocation3 + $0xa] sm:$0x3] }
0x2b48   :  { %4337 = vpow2.f32 %v3798_v36 }
0x2b49   :  { %4339 = vpow2.f32 %v3797_v41 }
0x2b50   :  { %v4334_v30 = vpop.eup %4333 }
0x2b51   :  { %3597 = vrot.lane.b32.xlu1 %v4334_v30, %s4500_s3  ;;  %v4336_v31 = vpop.eup %4335 }
0x2b52   :  { %v4338_v37 = vpop.eup %4337 }
0x2b53   :  { %v3591_v38 = vadd.f32 1.0, %v4338_v37  ;;  %v4340_v39 = vpop.eup %4339 }
0x2b54   :  { %v3556_v40 = vadd.f32 1.0, %v4340_v39  ;;  %v3654_v39 = vld [vmem:[#allocation3] sm:$0x3] }
0x2b55   :  { %3573 = vrot.lane.b32.xlu1 %v4336_v31, %s4500_s3  ;;  %4341 = vrcp.f32 %v3591_v38 }
0x2b56   :  { %4343 = vrcp.f32 %v3556_v40 }
0x2b59   :  { %3568 = vrot.lane.b32.xlu1 %v3567_v35, %s4494_s4 }
0x2b5f   :  { %v4342_v42 = vpop.eup %4341 }
0x2b60   :  { %v4344_v6 = vpop.eup %4343  ;;  %v3595_v48 = vmul.f32 %v4342_v42, %v3552_v32 }
0x2bc3   :  { %v3598_v43 = vpop.permute.xlu1 %3597 }
0x2bc4   :  { %v3600_v44 = vmul.f32 %v4342_v42, %v3598_v43 }
0x2bc6   :  { %3602 = vrot.lane.b32.xlu0 %v3600_v44, %s4494_s4 }
0x2bc7   :  { %v3574_v47 = vpop.permute.xlu1 %3573 }
0x2bc8   :  { %v3576_v62 = vmul.f32 %v4344_v6, %v3574_v47 }
0x2bca   :  { %3578 = vrot.lane.b32.xlu0 %v3576_v62, %s4494_s4 }
0x2bcb   :  { %v3569_v52 = vpop.permute.xlu1 %3568 }
0x2bcc   :  { %v3571_v55 = vmul.f32 %v4344_v6, %v3569_v52 }
0x2c38   :  { %v3603_v54 = vpop.permute.xlu0 %3602 }
0x2c39   :  { %v5245_v53 = vadd.f32 %v3603_v54, %v3595_v48 }
0x2c3b   :  { %4345 = vtanh.f32 %v5245_v53 }
0x2c3c   :  { %v3579_v59 = vpop.permute.xlu0 %3578 }
0x2c3d   :  { %v3581_v61 = vadd.f32 %v3579_v59, %v3571_v55 }
0x2c3f   :  { %4347 = vtanh.f32 %v3581_v61  ;;  %v3643_v5 = vrot.slane %v3581_v61, %v4629_v18 }
0x2c45   :  { %v4346_v45 = vpop.eup %4345 }
0x2c46   :  { %3608 = vrot.lane.b32.xlu1 %v4346_v45, %s4500_s3 }
0x2c49   :  { %v4348_v63 = vpop.eup %4347 }
0x2c4a   :  { %3584 = vrot.lane.b32.xlu0 %v4348_v63, %s4500_s3  ;;  %2362 = vrot.lane.b32.xlu1 %v5048_v22, %s4494_s4 }
0x2c4e   :  { %2546 = vrot.lane.b32.xlu0 %v5077_v50, %s4494_s4  ;;  %2730 = vrot.lane.b32.xlu1 %v5109_v19, %s4494_s4 }
0x2c52   :  { %2914 = vrot.lane.b32.xlu0 %v5141_v26, %s4494_s4  ;;  %3098 = vrot.lane.b32.xlu1 %v5172_v33, %s4494_s4 }
0x2c56   :  { %3282 = vrot.lane.b32.xlu0 %v5203_v60, %s4494_s4  ;;  %3466 = vrot.lane.b32.xlu1 %v5226_v12, %s4494_s4 }
0x2cb8   :  { %v3609_v0 = vpop.permute.xlu1 %3608 }
0x2cb9   :  { %v3611_v22 = vmul.f32 %v4342_v42, %v3609_v0 }
0x2cbb   :  { %v3630_v49 = vrot.slane %v3611_v22, %v4629_v18 }
0x2cbc   :  { %v3585_v50 = vpop.permute.xlu0 %3584  ;;  %v2363_v11 = vpop.permute.xlu1 %2362 }
0x2cbd   :  { %v3587_v46 = vmul.f32 %v4344_v6, %v3585_v50  ;;  %2365 = vst.msk [vmem:[#allocation4 + $0xe] sm:$0x3] %vm500_vm3, %v2363_v11  ;;  %3650 = vrot.lane.b32.xlu0 %v3630_v49, %s4494_s4 }
0x2cbf   :  { %v3619_v19 = vrot.slane %v3587_v46, %v4629_v18 }
0x2cc0   :  { %v2547_v26 = vpop.permute.xlu0 %2546  ;;  %v2731_v33 = vpop.permute.xlu1 %2730 }
0x2cc1   :  { %2549 = vst.msk [vmem:[#allocation4 + $0xc] sm:$0x3] %vm500_vm3, %v2547_v26  ;;  %2733 = vst.msk [vmem:[#allocation4 + $0xa] sm:$0x3] %vm500_vm3, %v2731_v33  ;;  %3620 = vrot.lane.b32.xlu1 %v3619_v19, %s4494_s4 }
0x2cc4   :  { %v2915_v60 = vpop.permute.xlu0 %2914  ;;  %v3099_v17 = vpop.permute.xlu1 %3098  ;;  %v3669_v3 = vld [vmem:[#allocation4 + $0xe] sm:$0x3] }
0x2cc5   :  { %2917 = vst.msk [vmem:[#allocation4 + $0x8] sm:$0x3] %vm500_vm3, %v2915_v60  ;;  %3101 = vst.msk [vmem:[#allocation4 + $0x6] sm:$0x3] %vm500_vm3, %v3099_v17 }
0x2cc8   :  { %v3283_v20 = vpop.permute.xlu0 %3282  ;;  %v3467_v23 = vpop.permute.xlu1 %3466  ;;  %v3668_v51 = vld [vmem:[#allocation4 + $0xc] sm:$0x3]  ;;  %v3667_v56 = vld [vmem:[#allocation4 + $0xa] sm:$0x3] }
0x2cc9   :  { %3285 = vst.msk [vmem:[#allocation4 + $0x4] sm:$0x3] %vm500_vm3, %v3283_v20  ;;  %3469 = vst.msk [vmem:[#allocation4 + $0x2] sm:$0x3] %vm500_vm3, %v3467_v23 }
0x2ccc   :  { %v3666_v2 = vld [vmem:[#allocation4 + $0x8] sm:$0x3]  ;;  %v3665_v34 = vld [vmem:[#allocation4 + $0x6] sm:$0x3] }
0x2cd0   :  { %v3664_v1 = vld [vmem:[#allocation4 + $0x4] sm:$0x3]  ;;  %v3663_v28 = vld [vmem:[#allocation4 + $0x2] sm:$0x3] }
0x2cd1   :  { %3682 = vrot.lane.b32.xlu0 %v3664_v1, %s4494_s4  ;;  %3680 = vrot.lane.b32.xlu1 %v3663_v28, %s4494_s4 }
0x2cd5   :  { %3686 = vrot.lane.b32.xlu0 %v3666_v2, %s4494_s4  ;;  %3684 = vrot.lane.b32.xlu1 %v3665_v34, %s4494_s4 }
0x2cd9   :  { %3690 = vrot.lane.b32.xlu0 %v3668_v51, %s4494_s4  ;;  %3688 = vrot.lane.b32.xlu1 %v3667_v56, %s4494_s4 }
0x2cdd   :  { %3692 = vrot.lane.b32.xlu1 %v3669_v3, %s4494_s4 }
0x2ce1   :  { %3644 = vrot.lane.b32.xlu1 %v3643_v5, %s4501_s12 }
0x2d2f   :  { %v3651_v7 = vpop.permute.xlu0 %3650 }
0x2d30   :  { %3653 = vst.msk [vmem:[#allocation4] sm:$0x3] %vm500_vm3, %v3651_v7 }
0x2d33   :  { %v3621_v8 = vpop.permute.xlu1 %3620 }
0x2d34   :  { %3649 = vst.msk [vmem:[#allocation3 + $0xe] sm:$0x3] %vm500_vm3, %v3621_v8 }
0x2d37   :  { %v3662_v12 = vld [vmem:[#allocation4] sm:$0x3] }
0x2d38   :  { %3678 = vrot.lane.b32.xlu0 %v3662_v12, %s4494_s4 }
0x2d3b   :  { %v3661_v35 = vld [vmem:[#allocation3 + $0xe] sm:$0x3] }
0x2d3c   :  { %3631 = vrot.lane.b32.xlu0 %v3630_v49, %s4500_s3 }
0x2d43   :  { %v3683_v15 = vpop.permute.xlu0 %3682  ;;  %v3681_v16 = vpop.permute.xlu1 %3680 }
0x2d44   :  { %v3704_v21 = vsel %vm484_vm4, %v3656_v13, %v3683_v15  ;;  %v3703_v18 = vsel %vm484_vm4, %v3655_v14, %v3681_v16 }
0x2d45   :  { %3712 = vst.msk [vmem:[#allocation16 + $0x4] sm:$0x3] %vm299_vm0, %v3704_v21  ;;  %3711 = vst.msk [vmem:[#allocation16 + $0x2] sm:$0x3] %vm299_vm0, %v3703_v18 }
0x2d47   :  { %v3687_v25 = vpop.permute.xlu0 %3686  ;;  %v3685_v27 = vpop.permute.xlu1 %3684 }
0x2d48   :  { %v3706_v58 = vsel %vm484_vm4, %v3658_v24, %v3687_v25  ;;  %v3705_v29 = vsel %vm484_vm4, %v3657_v57, %v3685_v27 }
0x2d49   :  { %3714 = vst.msk [vmem:[#allocation16 + $0x8] sm:$0x3] %vm299_vm0, %v3706_v58  ;;  %3713 = vst.msk [vmem:[#allocation16 + $0x6] sm:$0x3] %vm299_vm0, %v3705_v29 }
0x2d4b   :  { %v3691_v9 = vpop.permute.xlu0 %3690  ;;  %v3689_v30 = vpop.permute.xlu1 %3688 }
0x2d4c   :  { %v3708_v31 = vsel %vm484_vm4, %v3660_v4, %v3691_v9  ;;  %v3707_v32 = vsel %vm484_vm4, %v3659_v10, %v3689_v30 }
0x2d4d   :  { %3716 = vst.msk [vmem:[#allocation16 + $0xc] sm:$0x3] %vm299_vm0, %v3708_v31  ;;  %3715 = vst.msk [vmem:[#allocation16 + $0xa] sm:$0x3] %vm299_vm0, %v3707_v32 }
0x2d4f   :  { %v3693_v36 = vpop.permute.xlu1 %3692 }
0x2d50   :  { %v3709_v41 = vsel %vm484_vm4, %v3661_v35, %v3693_v36 }
0x2d51   :  { %3717 = vst.msk [vmem:[#allocation16 + $0xe] sm:$0x3] %vm299_vm0, %v3709_v41 }
0x2d53   :  { %v3645_v37 = vpop.permute.xlu1 %3644 }
0x2d54   :  { %v3647_v38 = vsel %vm484_vm4, %v3645_v37, %v5245_v53 }
0x2d55   :  { %3648 = vst.msk [vmem:[#allocation6] sm:$0x3] %vm299_vm0, %v3647_v38 }
0x2daa   :  { %v3679_v40 = vpop.permute.xlu0 %3678 }
0x2dab   :  { %v3702_v42 = vsel %vm484_vm4, %v3654_v39, %v3679_v40 }
0x2dac   :  { %3710 = vst.msk [vmem:[#allocation16] sm:$0x3] %vm299_vm0, %v3702_v42 }
0x2dad   :  { %4470 = shalt.err (!%p4467_p2)
}
0x2dae   :  { %s4471_s1 = scalar_lea.hbm %s5331_s7, 256 }
0x2daf   :  { %p4472_p3 = scmp.ne.s32.totalorder %s5331_s7, %s4471_s1  ;;  %p4475_p4 = scmp.lt.u32.totalorder %s4471_s1, %s5331_s7 }
0x2db1   :  { %p4477_p5 = pnand %p4475_p4, %p4472_p3 }
0x2db3   :  { %4480 = shalt.err (!%p4477_p5)
}
0x2db4   :  { %3729 = dma.vmem_to_hbm [thread:$0]  %s3724_s22, 256, %s5331_s7, [#allocation9], %s4494_s4, %s4494_s4, %s4495_s15   ;;  %v3632_v43 = vpop.permute.xlu0 %3631 }
0x2db5   :  { %v3634_v44 = vsel %vm484_vm4, %v3621_v8, %v3632_v43 }
0x2db6   :  { %3635 = vst.msk [vmem:[#allocation5] sm:$0x3] %vm299_vm0, %v3634_v44 }
0x2db7   :  { %4487 = dma.done.wait [#allocation9], 256  }
0x2db8   :  { %4488 = vsyncadd [#allocation9], 4294967040 }
0x2db9   :  { %3733 = vsyncpa [#allocation8], 1 }
0x2dba   :  { %3734 = vsyncpa [#allocation11], 1 }
0x2dbb   :  { %3735 = vsyncpa [#allocation14], 1 }
0x2dbc   :  { %3736 = vsyncpa [#allocation9], 1 }

</bundles_post_ra>
